<compile_context>
chip_gen: v7x
topology: tpu7x:2x2x1
jax: 0.10.0
libtpu: 0.0.40
codegen_flags: <defaults>
</compile_context>

<pallas_src>
import jax
import jax.numpy as jnp
import numpy as np
from jax import lax
from jax.experimental import pallas as pl
from jax.experimental.pallas import tpu as pltpu

# ---- model config (ModelArgs scaled down: dim=128, n_head=4) ----
D = 128                       # config.dim
H = 4                         # config.n_head
HD = D // H                   # head_dim = 32
FF = 512                      # intermediate_size (= 4 * dim here)
EPS = 1e-5
NEG_INF = -1e9


# --------------------------- in-kernel helpers ------------------------------
def _layernorm(x, w, b):
    # PyTorch LayerNorm: biased variance over the last dim, f32 math.
    mu = jnp.mean(x, axis=-1, keepdims=True)
    var = jnp.mean((x - mu) ** 2, axis=-1, keepdims=True)
    return (x - mu) * lax.rsqrt(var + EPS) * w + b


def _erf(z):
    # Abramowitz & Stegun 7.1.26 rational approximation, |err| <= 1.5e-7.
    # torch's F.gelu default is the exact erf GELU; this matches it far below
    # the bf16 noise floor using only ops guaranteed to lower (VPU + EUP exp).
    a1, a2, a3, a4, a5 = (0.254829592, -0.284496736, 1.421413741,
                          -1.453152027, 1.061405429)
    p = 0.3275911
    sgn = jnp.where(z >= 0.0, 1.0, -1.0)
    az = jnp.abs(z)
    t = 1.0 / (1.0 + p * az)
    poly = ((((a5 * t + a4) * t + a3) * t + a2) * t + a1) * t
    return sgn * (1.0 - poly * jnp.exp(-az * az))


def _gelu_exact(x):
    return 0.5 * x * (1.0 + _erf(x * 0.7071067811865476))


def _split_heads(x2d, base):
    # x2d: (M, >= base + D) f32, columns ordered (head, head_dim) within the
    # D-wide group starting at `base` (torch .view(bsz, T, n_head, head_dim)
    # layout).  Static 32-lane slices stacked on a new leading head axis.
    return jnp.stack(
        [x2d[:, base + h * HD: base + (h + 1) * HD] for h in range(H)], axis=0)


def _merge_heads(o):
    # o: (H, M, HD) f32 -> (M, D) with columns ordered (head, head_dim),
    # matching torch's y.transpose(1, 2).view(bsz, T, dim) before wo.
    return jnp.concatenate([o[h] for h in range(H)], axis=-1)


def _softmax_lastdim(s):
    s = s - jnp.max(s, axis=-1, keepdims=True)
    p = jnp.exp(s)
    return p / jnp.sum(p, axis=-1, keepdims=True)   # exact divide (tiny denom)


def _batch_ids(rows, cols, row_period, col_period):
    # same-batch selector for packed rows/cols without integer division
    # (float multiply + floor lower cleanly on the VPU).
    r = lax.broadcasted_iota(jnp.int32, (rows, cols), 0).astype(jnp.float32)
    c = lax.broadcasted_iota(jnp.int32, (rows, cols), 1).astype(jnp.float32)
    rb = jnp.floor(r * (1.0 / row_period))
    cb = jnp.floor(c * (1.0 / col_period))
    return rb == cb


def _tile_mask(mask, bb):
    # tile a (T, T) mask to (bb*T, bb*T) with concatenates only (safe lowering).
    row = jnp.concatenate([mask] * bb, axis=1)
    return jnp.concatenate([row] * bb, axis=0)


# ------------------------------- the kernel ---------------------------------
def transformer_block_kernel(
    tgt_ref, mem_ref, tgt_mask_ref,
    n1w_ref, n1b_ref, wqkv_ref, bqkv_ref, wo_ref, bo_ref,
    n2w_ref, n2b_ref, wq_ref, bq_ref, wkv_ref, bkv_ref, wco_ref, bco_ref,
    n3w_ref, n3b_ref, w1_ref, b1_ref, w2_ref, b2_ref,
    out_ref,
):
    bb, T, _ = tgt_ref.shape
    S = mem_ref.shape[1]
    Mq = bb * T
    Mk = bb * S
    bf = jnp.bfloat16

    x = tgt_ref[...].reshape(Mq, D)      # packed residual stream, f32
    mem = mem_ref[...].reshape(Mk, D)

    # Block-diagonal additive masks, built in-kernel (no per-call host prep).
    # Packed batches never attend to each other: off-block score = -1e9, and
    # exp(-1e9 - rowmax) underflows to exactly 0 in f32.
    if bb > 1:
        sa_mask = jnp.where(_batch_ids(Mq, Mq, T, T),
                            _tile_mask(tgt_mask_ref[...], bb),
                            jnp.float32(NEG_INF))
        ca_mask = jnp.where(_batch_ids(Mq, Mk, T, S),
                            jnp.float32(0.0), jnp.float32(NEG_INF))
    else:
        sa_mask = tgt_mask_ref[...]
        ca_mask = None                   # cross-attn is unmasked in the module

    # ---- self-attention (pre-norm) ----
    h = _layernorm(x, n1w_ref[...], n1b_ref[...])
    qkv = jnp.dot(h.astype(bf), wqkv_ref[...],
                  preferred_element_type=jnp.float32) + bqkv_ref[...]  # (Mq, 3D)
    q = _split_heads(qkv, 0)             # (H, Mq, HD); 1/sqrt(HD) folded in w
    k = _split_heads(qkv, D)
    v = _split_heads(qkv, 2 * D)
    s = jnp.einsum('hqd,hkd->hqk', q.astype(bf), k.astype(bf),
                   preferred_element_type=jnp.float32)
    s = s + sa_mask[None]
    p = _softmax_lastdim(s)
    o = jnp.einsum('hqk,hkd->hqd', p.astype(bf), v.astype(bf),
                   preferred_element_type=jnp.float32)
    ctx = _merge_heads(o)                # (Mq, D) lane-dense
    x = x + (jnp.dot(ctx.astype(bf), wo_ref[...],
                     preferred_element_type=jnp.float32) + bo_ref[...])

    # ---- cross-attention over memory ----
    h = _layernorm(x, n2w_ref[...], n2b_ref[...])
    qx = jnp.dot(h.astype(bf), wq_ref[...],
                 preferred_element_type=jnp.float32) + bq_ref[...]     # (Mq, D)
    kv = jnp.dot(mem.astype(bf), wkv_ref[...],
                 preferred_element_type=jnp.float32) + bkv_ref[...]    # (Mk, 2D)
    q = _split_heads(qx, 0)
    k = _split_heads(kv, 0)
    v = _split_heads(kv, D)
    s = jnp.einsum('hqd,hkd->hqk', q.astype(bf), k.astype(bf),
                   preferred_element_type=jnp.float32)
    if ca_mask is not None:
        s = s + ca_mask[None]
    p = _softmax_lastdim(s)
    o = jnp.einsum('hqk,hkd->hqd', p.astype(bf), v.astype(bf),
                   preferred_element_type=jnp.float32)
    ctx = _merge_heads(o)
    x = x + (jnp.dot(ctx.astype(bf), wco_ref[...],
                     preferred_element_type=jnp.float32) + bco_ref[...])

    # ---- feed-forward (exact erf-GELU, as torch F.gelu default) ----
    h = _layernorm(x, n3w_ref[...], n3b_ref[...])
    f = jnp.dot(h.astype(bf), w1_ref[...],
                preferred_element_type=jnp.float32) + b1_ref[...]
    f = _gelu_exact(f)
    x = x + (jnp.dot(f.astype(bf), w2_ref[...],
                     preferred_element_type=jnp.float32) + b2_ref[...])

    out_ref[...] = x.reshape(bb, T, D)


# --------------------------- one-time host prep ------------------------------
def prepare_params(params):
    """One-time re-layout of torch-layout weights (pre-transposed to (in, out))
    into kernel-ready operands.  Call ONCE and reuse the result for every
    decode step — the per-call wrapper below does no host-side math."""
    (n1w, n1b, wqkv, bqkv, wo, bo,
     n2w, n2b, wq, bq, wk, bk, wv, bv, wco, bco,
     n3w, n3b, w1, b1, w2, b2) = params

    scale = jnp.float32(1.0 / np.sqrt(HD))      # SDPA 1/sqrt(head_dim)
    # fold the scale into the q projection (first D output columns of wqkv).
    col = jnp.concatenate([jnp.full((D,), scale, jnp.float32),
                           jnp.ones((2 * D,), jnp.float32)])[None, :]
    wqkv_s = wqkv * col
    bqkv_s = bqkv * col
    wq_s, bq_s = wq * scale, bq * scale
    wkv = jnp.concatenate([wk, wv], axis=1)     # stacked cross-attn k/v (D, 2D)
    bkv = jnp.concatenate([bk, bv], axis=1)

    bfc = lambda a: a.astype(jnp.bfloat16)      # weights bf16, biases/LN f32
    kparams = (n1w, n1b, bfc(wqkv_s), bqkv_s, bfc(wo), bo,
               n2w, n2b, bfc(wq_s), bq_s, bfc(wkv), bkv, bfc(wco), bco,
               n3w, n3b, bfc(w1), b1, bfc(w2), b2)
    return jax.tree.map(jax.block_until_ready, kparams)


# ------------------------------ host wrapper ---------------------------------
def transformer_block(tgt, memory, tgt_mask, kparams, batch_block=None):
    """kparams = prepare_params(raw_params).  No per-call host prep here."""
    B, T, Dm = tgt.shape
    S = memory.shape[1]
    assert Dm == D
    bb = B if batch_block is None else batch_block   # batches per grid step
    assert B % bb == 0
    # Default bb=B -> grid=(1,).  Only split (e.g. batch_block=B//2 on v7x)
    # once per-core rows bb*T are large enough to fill the MXU M dimension.

    def full_spec(x):
        n = x.ndim
        return pl.BlockSpec(x.shape, lambda i, _n=n: (0,) * _n)

    in_specs = ([pl.BlockSpec((bb, T, D), lambda i: (i, 0, 0)),    # tgt
                 pl.BlockSpec((bb, S, D), lambda i: (i, 0, 0)),    # memory
                 full_spec(tgt_mask)]
                + [full_spec(p) for p in kparams])

    return pl.pallas_call(
        transformer_block_kernel,
        out_shape=jax.ShapeDtypeStruct((B, T, D), jnp.float32),
        grid=(B // bb,),
        in_specs=in_specs,
        out_specs=pl.BlockSpec((bb, T, D), lambda i: (i, 0, 0)),
        compiler_params=pltpu.CompilerParams(
            dimension_semantics=("parallel",)),
    )(tgt, memory, tgt_mask, *kparams)


# -------------------- pure-JAX f32 reference for verification ----------------
def reference_block(tgt, memory, mask, params):
    (n1w, n1b, wqkv, bqkv, wo, bo,
     n2w, n2b, wq, bq, wk, bk, wv, bv, wco, bco,
     n3w, n3b, w1, b1, w2, b2) = params

    def ln(x, w, b):
        mu = jnp.mean(x, axis=-1, keepdims=True)
        var = jnp.mean((x - mu) ** 2, axis=-1, keepdims=True)
        return (x - mu) / jnp.sqrt(var + EPS) * w + b

    def mha(q, k, v, m):
        B_, T_, _ = q.shape
        S_ = k.shape[1]
        qh = q.reshape(B_, T_, H, HD).transpose(0, 2, 1, 3)
        kh = k.reshape(B_, S_, H, HD).transpose(0, 2, 1, 3)
        vh = v.reshape(B_, S_, H, HD).transpose(0, 2, 1, 3)
        s = jnp.einsum("bhqd,bhkd->bhqk", qh, kh) / jnp.sqrt(jnp.float32(HD))
        if m is not None:
            s = s + m
        p = jax.nn.softmax(s, axis=-1)
        o = jnp.einsum("bhqk,bhkd->bhqd", p, vh)
        return o.transpose(0, 2, 1, 3).reshape(B_, T_, D)

    x = tgt
    h = ln(x, n1w[0], n1b[0])
    qkv = h @ wqkv + bqkv[0]
    q, k, v = qkv[..., :D], qkv[..., D:2 * D], qkv[..., 2 * D:]
    x = x + (mha(q, k, v, mask) @ wo + bo[0])

    h = ln(x, n2w[0], n2b[0])
    q = h @ wq + bq[0]
    k = memory @ wk + bk[0]
    v = memory @ wv + bv[0]
    x = x + (mha(q, k, v, None) @ wco + bco[0])

    h = ln(x, n3w[0], n3b[0])
    x = x + (jax.nn.gelu(h @ w1 + b1[0], approximate=False) @ w2 + b2[0])
    return x


if __name__ == "__main__":
    key = jax.random.PRNGKey(0)
    B, T, S = 2, 8, 16

    keys = jax.random.split(key, 32)
    ki = iter(keys)

    def w(shape, scale=0.05):
        return (scale * jax.random.normal(next(ki), shape)).astype(jnp.float32)

    # parameters (deterministic, synthetic), torch layout pre-transposed to (in, out)
    n1w, n1b = 1.0 + w((1, D)), w((1, D))
    wqkv, bqkv = w((D, 3 * D)), w((1, 3 * D))
    wo, bo = w((D, D)), w((1, D))
    n2w, n2b = 1.0 + w((1, D)), w((1, D))
    wq, bq = w((D, D)), w((1, D))
    wk, bk = w((D, D)), w((1, D))
    wv, bv = w((D, D)), w((1, D))
    wco, bco = w((D, D)), w((1, D))
    n3w, n3b = 1.0 + w((1, D)), w((1, D))
    w1, b1 = w((D, FF)), w((1, FF))
    w2, b2 = w((FF, D)), w((1, D))

    params = [n1w, n1b, wqkv, bqkv, wo, bo,
              n2w, n2b, wq, bq, wk, bk, wv, bv, wco, bco,
              n3w, n3b, w1, b1, w2, b2]

    tgt = jax.random.normal(next(ki), (B, T, D), dtype=jnp.float32)
    memory = jax.random.normal(next(ki), (B, S, D), dtype=jnp.float32)
    # additive causal mask (float), as accepted by F.scaled_dot_product_attention
    causal = jnp.tril(jnp.ones((T, T), dtype=bool))
    tgt_mask = jnp.where(causal, 0.0, NEG_INF).astype(jnp.float32)
    # input_pos is unused: self_attn.kv_cache is None in the reference module.

    kparams = prepare_params(params)            # ONE-TIME prep, reused per step
    out = transformer_block(tgt, memory, tgt_mask, kparams)
    out = jax.block_until_ready(out)

    ref = reference_block(tgt, memory, tgt_mask, params)
    # Tolerance covers bf16 MXU inputs with f32 accumulation.
    np.testing.assert_allclose(np.asarray(out), np.asarray(ref), rtol=3e-2, atol=3e-2)

    print("KERNEL_OK")
</pallas_src>

<mosaic_0001>
module attributes {stable_mosaic.version = 11 : i64} {
  func.func @transformer_block_kernel(%arg0: i32, %arg1: memref<2x8x128xf32, #tpu.memory_space<vmem>>, %arg2: memref<2x16x128xf32, #tpu.memory_space<vmem>>, %arg3: memref<8x8xf32, #tpu.memory_space<vmem>>, %arg4: memref<1x128xf32, #tpu.memory_space<vmem>>, %arg5: memref<1x128xf32, #tpu.memory_space<vmem>>, %arg6: memref<128x384xbf16, #tpu.memory_space<vmem>>, %arg7: memref<1x384xf32, #tpu.memory_space<vmem>>, %arg8: memref<128x128xbf16, #tpu.memory_space<vmem>>, %arg9: memref<1x128xf32, #tpu.memory_space<vmem>>, %arg10: memref<1x128xf32, #tpu.memory_space<vmem>>, %arg11: memref<1x128xf32, #tpu.memory_space<vmem>>, %arg12: memref<128x128xbf16, #tpu.memory_space<vmem>>, %arg13: memref<1x128xf32, #tpu.memory_space<vmem>>, %arg14: memref<128x256xbf16, #tpu.memory_space<vmem>>, %arg15: memref<1x256xf32, #tpu.memory_space<vmem>>, %arg16: memref<128x128xbf16, #tpu.memory_space<vmem>>, %arg17: memref<1x128xf32, #tpu.memory_space<vmem>>, %arg18: memref<1x128xf32, #tpu.memory_space<vmem>>, %arg19: memref<1x128xf32, #tpu.memory_space<vmem>>, %arg20: memref<128x512xbf16, #tpu.memory_space<vmem>>, %arg21: memref<1x512xf32, #tpu.memory_space<vmem>>, %arg22: memref<512x128xbf16, #tpu.memory_space<vmem>>, %arg23: memref<1x128xf32, #tpu.memory_space<vmem>>, %arg24: memref<2x8x128xf32, #tpu.memory_space<vmem>>) attributes {dimension_semantics = [#tpu.dimension_semantics<parallel>], iteration_bounds = array<i64: 1>, scalar_prefetch = 0 : i64, scratch_operands = 0 : i64, tpu.core_type = #tpu.core_type<tc>, window_params = [{transform_indices = @transform_0, window_bounds = array<i64: 2, 8, 128>}, {transform_indices = @transform_1, window_bounds = array<i64: 2, 16, 128>}, {pipeline_mode = #tpu.pipeline_mode<synchronous>, transform_indices = @transform_2, window_bounds = array<i64: 8, 8>}, {pipeline_mode = #tpu.pipeline_mode<synchronous>, transform_indices = @transform_3, window_bounds = array<i64: 1, 128>}, {pipeline_mode = #tpu.pipeline_mode<synchronous>, transform_indices = @transform_4, window_bounds = array<i64: 1, 128>}, {pipeline_mode = #tpu.pipeline_mode<synchronous>, transform_indices = @transform_5, window_bounds = array<i64: 128, 384>}, {pipeline_mode = #tpu.pipeline_mode<synchronous>, transform_indices = @transform_6, window_bounds = array<i64: 1, 384>}, {pipeline_mode = #tpu.pipeline_mode<synchronous>, transform_indices = @transform_7, window_bounds = array<i64: 128, 128>}, {pipeline_mode = #tpu.pipeline_mode<synchronous>, transform_indices = @transform_8, window_bounds = array<i64: 1, 128>}, {pipeline_mode = #tpu.pipeline_mode<synchronous>, transform_indices = @transform_9, window_bounds = array<i64: 1, 128>}, {pipeline_mode = #tpu.pipeline_mode<synchronous>, transform_indices = @transform_10, window_bounds = array<i64: 1, 128>}, {pipeline_mode = #tpu.pipeline_mode<synchronous>, transform_indices = @transform_11, window_bounds = array<i64: 128, 128>}, {pipeline_mode = #tpu.pipeline_mode<synchronous>, transform_indices = @transform_12, window_bounds = array<i64: 1, 128>}, {pipeline_mode = #tpu.pipeline_mode<synchronous>, transform_indices = @transform_13, window_bounds = array<i64: 128, 256>}, {pipeline_mode = #tpu.pipeline_mode<synchronous>, transform_indices = @transform_14, window_bounds = array<i64: 1, 256>}, {pipeline_mode = #tpu.pipeline_mode<synchronous>, transform_indices = @transform_15, window_bounds = array<i64: 128, 128>}, {pipeline_mode = #tpu.pipeline_mode<synchronous>, transform_indices = @transform_16, window_bounds = array<i64: 1, 128>}, {pipeline_mode = #tpu.pipeline_mode<synchronous>, transform_indices = @transform_17, window_bounds = array<i64: 1, 128>}, {pipeline_mode = #tpu.pipeline_mode<synchronous>, transform_indices = @transform_18, window_bounds = array<i64: 1, 128>}, {pipeline_mode = #tpu.pipeline_mode<synchronous>, transform_indices = @transform_19, window_bounds = array<i64: 128, 512>}, {pipeline_mode = #tpu.pipeline_mode<synchronous>, transform_indices = @transform_20, window_bounds = array<i64: 1, 512>}, {pipeline_mode = #tpu.pipeline_mode<synchronous>, transform_indices = @transform_21, window_bounds = array<i64: 512, 128>}, {pipeline_mode = #tpu.pipeline_mode<synchronous>, transform_indices = @transform_22, window_bounds = array<i64: 1, 128>}, {transform_indices = @transform_23, window_bounds = array<i64: 2, 8, 128>}]} {
    %c0 = arith.constant 0 : index
    %c0_0 = arith.constant 0 : index
    %c0_1 = arith.constant 0 : index
    %0 = vector.load %arg1[%c0, %c0_0, %c0_1] : memref<2x8x128xf32, #tpu.memory_space<vmem>>, vector<2x8x128xf32>
    %1 = vector.shape_cast %0 : vector<2x8x128xf32> to vector<16x128xf32>
    %c0_2 = arith.constant 0 : index
    %c0_3 = arith.constant 0 : index
    %c0_4 = arith.constant 0 : index
    %2 = vector.load %arg2[%c0_2, %c0_3, %c0_4] : memref<2x16x128xf32, #tpu.memory_space<vmem>>, vector<2x16x128xf32>
    %3 = vector.shape_cast %2 : vector<2x16x128xf32> to vector<32x128xf32>
    %4 = tpu.iota {dimensions = array<i32: 0>} : vector<16x16xi32>
    %5 = arith.sitofp %4 : vector<16x16xi32> to vector<16x16xf32>
    %6 = tpu.iota {dimensions = array<i32: 1>} : vector<16x16xi32>
    %7 = arith.sitofp %6 : vector<16x16xi32> to vector<16x16xf32>
    %cst = arith.constant 1.250000e-01 : f32
    %8 = vector.broadcast %cst : f32 to vector<16x16xf32>
    %9 = arith.mulf %5, %8 : vector<16x16xf32>
    %10 = math.floor %9 : vector<16x16xf32>
    %cst_5 = arith.constant 1.250000e-01 : f32
    %11 = vector.broadcast %cst_5 : f32 to vector<16x16xf32>
    %12 = arith.mulf %7, %11 : vector<16x16xf32>
    %13 = math.floor %12 : vector<16x16xf32>
    %14 = arith.cmpf oeq, %10, %13 : vector<16x16xf32>
    %c0_6 = arith.constant 0 : index
    %c0_7 = arith.constant 0 : index
    %15 = vector.load %arg3[%c0_6, %c0_7] : memref<8x8xf32, #tpu.memory_space<vmem>>, vector<8x8xf32>
    %16 = tpu.concatenate %15, %15 in 1 : vector<8x8xf32>, vector<8x8xf32> -> vector<8x16xf32>
    %17 = tpu.concatenate %16, %16 in 0 : vector<8x16xf32>, vector<8x16xf32> -> vector<16x16xf32>
    %cst_8 = arith.constant -1.000000e+09 : f32
    %18 = vector.broadcast %cst_8 : f32 to vector<16x16xf32>
    %19 = arith.select %14, %17, %18 : vector<16x16xi1>, vector<16x16xf32>
    %20 = tpu.iota {dimensions = array<i32: 0>} : vector<16x32xi32>
    %21 = arith.sitofp %20 : vector<16x32xi32> to vector<16x32xf32>
    %22 = tpu.iota {dimensions = array<i32: 1>} : vector<16x32xi32>
    %23 = arith.sitofp %22 : vector<16x32xi32> to vector<16x32xf32>
    %cst_9 = arith.constant 1.250000e-01 : f32
    %24 = vector.broadcast %cst_9 : f32 to vector<16x32xf32>
    %25 = arith.mulf %21, %24 : vector<16x32xf32>
    %26 = math.floor %25 : vector<16x32xf32>
    %cst_10 = arith.constant 6.250000e-02 : f32
    %27 = vector.broadcast %cst_10 : f32 to vector<16x32xf32>
    %28 = arith.mulf %23, %27 : vector<16x32xf32>
    %29 = math.floor %28 : vector<16x32xf32>
    %30 = arith.cmpf oeq, %26, %29 : vector<16x32xf32>
    %cst_11 = arith.constant 0.000000e+00 : f32
    %cst_12 = arith.constant -1.000000e+09 : f32
    %31 = vector.broadcast %cst_11 : f32 to vector<16x32xf32>
    %32 = vector.broadcast %cst_12 : f32 to vector<16x32xf32>
    %33 = arith.select %30, %31, %32 : vector<16x32xi1>, vector<16x32xf32>
    %c0_13 = arith.constant 0 : index
    %c0_14 = arith.constant 0 : index
    %34 = vector.load %arg4[%c0_13, %c0_14] : memref<1x128xf32, #tpu.memory_space<vmem>>, vector<1x128xf32>
    %c0_15 = arith.constant 0 : index
    %c0_16 = arith.constant 0 : index
    %35 = vector.load %arg5[%c0_15, %c0_16] : memref<1x128xf32, #tpu.memory_space<vmem>>, vector<1x128xf32>
    %cst_17 = arith.constant dense<0.000000e+00> : vector<16xf32>
    %36 = vector.multi_reduction <add>, %1, %cst_17 [1] : vector<16x128xf32> to vector<16xf32>
    %37 = vector.shape_cast %36 : vector<16xf32> to vector<16x1xf32>
    %cst_18 = arith.constant 1.280000e+02 : f32
    %38 = vector.broadcast %cst_18 : f32 to vector<16x1xf32>
    %39 = arith.divf %37, %38 : vector<16x1xf32>
    %40 = vector.broadcast %39 : vector<16x1xf32> to vector<16x128xf32>
    %41 = arith.subf %1, %40 : vector<16x128xf32>
    %42 = arith.mulf %41, %41 : vector<16x128xf32>
    %cst_19 = arith.constant dense<0.000000e+00> : vector<16xf32>
    %43 = vector.multi_reduction <add>, %42, %cst_19 [1] : vector<16x128xf32> to vector<16xf32>
    %44 = vector.shape_cast %43 : vector<16xf32> to vector<16x1xf32>
    %cst_20 = arith.constant 1.280000e+02 : f32
    %45 = vector.broadcast %cst_20 : f32 to vector<16x1xf32>
    %46 = arith.divf %44, %45 : vector<16x1xf32>
    %47 = vector.broadcast %39 : vector<16x1xf32> to vector<16x128xf32>
    %48 = arith.subf %1, %47 : vector<16x128xf32>
    %cst_21 = arith.constant 9.99999974E-6 : f32
    %49 = vector.broadcast %cst_21 : f32 to vector<16x1xf32>
    %50 = arith.addf %46, %49 : vector<16x1xf32>
    %51 = math.rsqrt %50 : vector<16x1xf32>
    %52 = vector.broadcast %51 : vector<16x1xf32> to vector<16x128xf32>
    %53 = arith.mulf %48, %52 : vector<16x128xf32>
    %54 = vector.broadcast %34 : vector<1x128xf32> to vector<16x128xf32>
    %55 = arith.mulf %53, %54 : vector<16x128xf32>
    %56 = vector.broadcast %35 : vector<1x128xf32> to vector<16x128xf32>
    %57 = arith.addf %55, %56 : vector<16x128xf32>
    %58 = arith.truncf %57 : vector<16x128xf32> to vector<16x128xbf16>
    %c0_22 = arith.constant 0 : index
    %c0_23 = arith.constant 0 : index
    %59 = vector.load %arg6[%c0_22, %c0_23] : memref<128x384xbf16, #tpu.memory_space<vmem>>, vector<128x384xbf16>
    %cst_24 = arith.constant dense<0.000000e+00> : vector<16x384xf32>
    %60 = tpu.matmul %58, %59, %cst_24 {dimension_numbers = #tpu.dot_dimension_numbers<[1], [0], [0], [1], [0, 0, 1, 1], [], []>} : vector<16x128xbf16>, vector<128x384xbf16>, vector<16x384xf32> -> vector<16x384xf32>
    %c0_25 = arith.constant 0 : index
    %c0_26 = arith.constant 0 : index
    %61 = vector.load %arg7[%c0_25, %c0_26] : memref<1x384xf32, #tpu.memory_space<vmem>>, vector<1x384xf32>
    %62 = vector.broadcast %61 : vector<1x384xf32> to vector<16x384xf32>
    %63 = arith.addf %60, %62 : vector<16x384xf32>
    %64 = vector.extract_strided_slice %63 {offsets = [0, 0], sizes = [16, 32], strides = [1, 1]} : vector<16x384xf32> to vector<16x32xf32>
    %65 = vector.extract_strided_slice %63 {offsets = [0, 32], sizes = [16, 32], strides = [1, 1]} : vector<16x384xf32> to vector<16x32xf32>
    %66 = vector.extract_strided_slice %63 {offsets = [0, 64], sizes = [16, 32], strides = [1, 1]} : vector<16x384xf32> to vector<16x32xf32>
    %67 = vector.extract_strided_slice %63 {offsets = [0, 96], sizes = [16, 32], strides = [1, 1]} : vector<16x384xf32> to vector<16x32xf32>
    %68 = vector.shape_cast %64 : vector<16x32xf32> to vector<1x16x32xf32>
    %69 = vector.shape_cast %65 : vector<16x32xf32> to vector<1x16x32xf32>
    %70 = vector.shape_cast %66 : vector<16x32xf32> to vector<1x16x32xf32>
    %71 = vector.shape_cast %67 : vector<16x32xf32> to vector<1x16x32xf32>
    %72 = tpu.concatenate %68, %69, %70, %71 in 0 : vector<1x16x32xf32>, vector<1x16x32xf32>, vector<1x16x32xf32>, vector<1x16x32xf32> -> vector<4x16x32xf32>
    %73 = vector.extract_strided_slice %63 {offsets = [0, 128], sizes = [16, 32], strides = [1, 1]} : vector<16x384xf32> to vector<16x32xf32>
    %74 = vector.extract_strided_slice %63 {offsets = [0, 160], sizes = [16, 32], strides = [1, 1]} : vector<16x384xf32> to vector<16x32xf32>
    %75 = vector.extract_strided_slice %63 {offsets = [0, 192], sizes = [16, 32], strides = [1, 1]} : vector<16x384xf32> to vector<16x32xf32>
    %76 = vector.extract_strided_slice %63 {offsets = [0, 224], sizes = [16, 32], strides = [1, 1]} : vector<16x384xf32> to vector<16x32xf32>
    %77 = vector.shape_cast %73 : vector<16x32xf32> to vector<1x16x32xf32>
    %78 = vector.shape_cast %74 : vector<16x32xf32> to vector<1x16x32xf32>
    %79 = vector.shape_cast %75 : vector<16x32xf32> to vector<1x16x32xf32>
    %80 = vector.shape_cast %76 : vector<16x32xf32> to vector<1x16x32xf32>
    %81 = tpu.concatenate %77, %78, %79, %80 in 0 : vector<1x16x32xf32>, vector<1x16x32xf32>, vector<1x16x32xf32>, vector<1x16x32xf32> -> vector<4x16x32xf32>
    %82 = vector.extract_strided_slice %63 {offsets = [0, 256], sizes = [16, 32], strides = [1, 1]} : vector<16x384xf32> to vector<16x32xf32>
    %83 = vector.extract_strided_slice %63 {offsets = [0, 288], sizes = [16, 32], strides = [1, 1]} : vector<16x384xf32> to vector<16x32xf32>
    %84 = vector.extract_strided_slice %63 {offsets = [0, 320], sizes = [16, 32], strides = [1, 1]} : vector<16x384xf32> to vector<16x32xf32>
    %85 = vector.extract_strided_slice %63 {offsets = [0, 352], sizes = [16, 32], strides = [1, 1]} : vector<16x384xf32> to vector<16x32xf32>
    %86 = vector.shape_cast %82 : vector<16x32xf32> to vector<1x16x32xf32>
    %87 = vector.shape_cast %83 : vector<16x32xf32> to vector<1x16x32xf32>
    %88 = vector.shape_cast %84 : vector<16x32xf32> to vector<1x16x32xf32>
    %89 = vector.shape_cast %85 : vector<16x32xf32> to vector<1x16x32xf32>
    %90 = tpu.concatenate %86, %87, %88, %89 in 0 : vector<1x16x32xf32>, vector<1x16x32xf32>, vector<1x16x32xf32>, vector<1x16x32xf32> -> vector<4x16x32xf32>
    %91 = arith.truncf %72 : vector<4x16x32xf32> to vector<4x16x32xbf16>
    %92 = arith.truncf %81 : vector<4x16x32xf32> to vector<4x16x32xbf16>
    "tpu.trace_start"() <{level = 10 : i32, message = "hqd,hkd->hqk"}> : () -> ()
    %cst_27 = arith.constant dense<0.000000e+00> : vector<4x16x16xf32>
    %93 = tpu.matmul %91, %92, %cst_27 {dimension_numbers = #tpu.dot_dimension_numbers<[2], [2], [1], [1], [0, 0, 0, 1, 1, 1], [0], [0]>} : vector<4x16x32xbf16>, vector<4x16x32xbf16>, vector<4x16x16xf32> -> vector<4x16x16xf32>
    "tpu.trace_stop"() : () -> ()
    %94 = vector.shape_cast %19 : vector<16x16xf32> to vector<1x16x16xf32>
    %95 = vector.broadcast %94 : vector<1x16x16xf32> to vector<4x16x16xf32>
    %96 = arith.addf %93, %95 : vector<4x16x16xf32>
    %cst_28 = arith.constant dense<0xFF800000> : vector<4x16xf32>
    %97 = vector.multi_reduction <maximumf>, %96, %cst_28 [2] : vector<4x16x16xf32> to vector<4x16xf32>
    %98 = vector.shape_cast %97 : vector<4x16xf32> to vector<4x16x1xf32>
    %99 = vector.broadcast %98 : vector<4x16x1xf32> to vector<4x16x16xf32>
    %100 = arith.subf %96, %99 : vector<4x16x16xf32>
    %101 = math.exp %100 : vector<4x16x16xf32>
    %cst_29 = arith.constant dense<0.000000e+00> : vector<4x16xf32>
    %102 = vector.multi_reduction <add>, %101, %cst_29 [2] : vector<4x16x16xf32> to vector<4x16xf32>
    %103 = vector.shape_cast %102 : vector<4x16xf32> to vector<4x16x1xf32>
    %104 = vector.broadcast %103 : vector<4x16x1xf32> to vector<4x16x16xf32>
    %105 = arith.divf %101, %104 : vector<4x16x16xf32>
    %106 = arith.truncf %105 : vector<4x16x16xf32> to vector<4x16x16xbf16>
    %107 = arith.truncf %90 : vector<4x16x32xf32> to vector<4x16x32xbf16>
    "tpu.trace_start"() <{level = 10 : i32, message = "hqk,hkd->hqd"}> : () -> ()
    %cst_30 = arith.constant dense<0.000000e+00> : vector<4x16x32xf32>
    %108 = tpu.matmul %106, %107, %cst_30 {dimension_numbers = #tpu.dot_dimension_numbers<[2], [1], [1], [2], [0, 0, 0, 1, 1, 2], [0], [0]>} : vector<4x16x16xbf16>, vector<4x16x32xbf16>, vector<4x16x32xf32> -> vector<4x16x32xf32>
    "tpu.trace_stop"() : () -> ()
    %109 = vector.extract_strided_slice %108 {offsets = [0, 0, 0], sizes = [1, 16, 32], strides = [1, 1, 1]} : vector<4x16x32xf32> to vector<1x16x32xf32>
    %110 = vector.shape_cast %109 : vector<1x16x32xf32> to vector<16x32xf32>
    %111 = vector.extract_strided_slice %108 {offsets = [1, 0, 0], sizes = [1, 16, 32], strides = [1, 1, 1]} : vector<4x16x32xf32> to vector<1x16x32xf32>
    %112 = vector.shape_cast %111 : vector<1x16x32xf32> to vector<16x32xf32>
    %113 = vector.extract_strided_slice %108 {offsets = [2, 0, 0], sizes = [1, 16, 32], strides = [1, 1, 1]} : vector<4x16x32xf32> to vector<1x16x32xf32>
    %114 = vector.shape_cast %113 : vector<1x16x32xf32> to vector<16x32xf32>
    %115 = vector.extract_strided_slice %108 {offsets = [3, 0, 0], sizes = [1, 16, 32], strides = [1, 1, 1]} : vector<4x16x32xf32> to vector<1x16x32xf32>
    %116 = vector.shape_cast %115 : vector<1x16x32xf32> to vector<16x32xf32>
    %117 = tpu.concatenate %110, %112, %114, %116 in 1 : vector<16x32xf32>, vector<16x32xf32>, vector<16x32xf32>, vector<16x32xf32> -> vector<16x128xf32>
    %118 = arith.truncf %117 : vector<16x128xf32> to vector<16x128xbf16>
    %c0_31 = arith.constant 0 : index
    %c0_32 = arith.constant 0 : index
    %119 = vector.load %arg8[%c0_31, %c0_32] : memref<128x128xbf16, #tpu.memory_space<vmem>>, vector<128x128xbf16>
    %cst_33 = arith.constant dense<0.000000e+00> : vector<16x128xf32>
    %120 = tpu.matmul %118, %119, %cst_33 {dimension_numbers = #tpu.dot_dimension_numbers<[1], [0], [0], [1], [0, 0, 1, 1], [], []>} : vector<16x128xbf16>, vector<128x128xbf16>, vector<16x128xf32> -> vector<16x128xf32>
    %c0_34 = arith.constant 0 : index
    %c0_35 = arith.constant 0 : index
    %121 = vector.load %arg9[%c0_34, %c0_35] : memref<1x128xf32, #tpu.memory_space<vmem>>, vector<1x128xf32>
    %122 = vector.broadcast %121 : vector<1x128xf32> to vector<16x128xf32>
    %123 = arith.addf %120, %122 : vector<16x128xf32>
    %124 = arith.addf %1, %123 : vector<16x128xf32>
    %c0_36 = arith.constant 0 : index
    %c0_37 = arith.constant 0 : index
    %125 = vector.load %arg10[%c0_36, %c0_37] : memref<1x128xf32, #tpu.memory_space<vmem>>, vector<1x128xf32>
    %c0_38 = arith.constant 0 : index
    %c0_39 = arith.constant 0 : index
    %126 = vector.load %arg11[%c0_38, %c0_39] : memref<1x128xf32, #tpu.memory_space<vmem>>, vector<1x128xf32>
    %cst_40 = arith.constant dense<0.000000e+00> : vector<16xf32>
    %127 = vector.multi_reduction <add>, %124, %cst_40 [1] : vector<16x128xf32> to vector<16xf32>
    %128 = vector.shape_cast %127 : vector<16xf32> to vector<16x1xf32>
    %cst_41 = arith.constant 1.280000e+02 : f32
    %129 = vector.broadcast %cst_41 : f32 to vector<16x1xf32>
    %130 = arith.divf %128, %129 : vector<16x1xf32>
    %131 = vector.broadcast %130 : vector<16x1xf32> to vector<16x128xf32>
    %132 = arith.subf %124, %131 : vector<16x128xf32>
    %133 = arith.mulf %132, %132 : vector<16x128xf32>
    %cst_42 = arith.constant dense<0.000000e+00> : vector<16xf32>
    %134 = vector.multi_reduction <add>, %133, %cst_42 [1] : vector<16x128xf32> to vector<16xf32>
    %135 = vector.shape_cast %134 : vector<16xf32> to vector<16x1xf32>
    %cst_43 = arith.constant 1.280000e+02 : f32
    %136 = vector.broadcast %cst_43 : f32 to vector<16x1xf32>
    %137 = arith.divf %135, %136 : vector<16x1xf32>
    %138 = vector.broadcast %130 : vector<16x1xf32> to vector<16x128xf32>
    %139 = arith.subf %124, %138 : vector<16x128xf32>
    %cst_44 = arith.constant 9.99999974E-6 : f32
    %140 = vector.broadcast %cst_44 : f32 to vector<16x1xf32>
    %141 = arith.addf %137, %140 : vector<16x1xf32>
    %142 = math.rsqrt %141 : vector<16x1xf32>
    %143 = vector.broadcast %142 : vector<16x1xf32> to vector<16x128xf32>
    %144 = arith.mulf %139, %143 : vector<16x128xf32>
    %145 = vector.broadcast %125 : vector<1x128xf32> to vector<16x128xf32>
    %146 = arith.mulf %144, %145 : vector<16x128xf32>
    %147 = vector.broadcast %126 : vector<1x128xf32> to vector<16x128xf32>
    %148 = arith.addf %146, %147 : vector<16x128xf32>
    %149 = arith.truncf %148 : vector<16x128xf32> to vector<16x128xbf16>
    %c0_45 = arith.constant 0 : index
    %c0_46 = arith.constant 0 : index
    %150 = vector.load %arg12[%c0_45, %c0_46] : memref<128x128xbf16, #tpu.memory_space<vmem>>, vector<128x128xbf16>
    %cst_47 = arith.constant dense<0.000000e+00> : vector<16x128xf32>
    %151 = tpu.matmul %149, %150, %cst_47 {dimension_numbers = #tpu.dot_dimension_numbers<[1], [0], [0], [1], [0, 0, 1, 1], [], []>} : vector<16x128xbf16>, vector<128x128xbf16>, vector<16x128xf32> -> vector<16x128xf32>
    %c0_48 = arith.constant 0 : index
    %c0_49 = arith.constant 0 : index
    %152 = vector.load %arg13[%c0_48, %c0_49] : memref<1x128xf32, #tpu.memory_space<vmem>>, vector<1x128xf32>
    %153 = vector.broadcast %152 : vector<1x128xf32> to vector<16x128xf32>
    %154 = arith.addf %151, %153 : vector<16x128xf32>
    %155 = arith.truncf %3 : vector<32x128xf32> to vector<32x128xbf16>
    %c0_50 = arith.constant 0 : index
    %c0_51 = arith.constant 0 : index
    %156 = vector.load %arg14[%c0_50, %c0_51] : memref<128x256xbf16, #tpu.memory_space<vmem>>, vector<128x256xbf16>
    %cst_52 = arith.constant dense<0.000000e+00> : vector<32x256xf32>
    %157 = tpu.matmul %155, %156, %cst_52 {dimension_numbers = #tpu.dot_dimension_numbers<[1], [0], [0], [1], [0, 0, 1, 1], [], []>} : vector<32x128xbf16>, vector<128x256xbf16>, vector<32x256xf32> -> vector<32x256xf32>
    %c0_53 = arith.constant 0 : index
    %c0_54 = arith.constant 0 : index
    %158 = vector.load %arg15[%c0_53, %c0_54] : memref<1x256xf32, #tpu.memory_space<vmem>>, vector<1x256xf32>
    %159 = vector.broadcast %158 : vector<1x256xf32> to vector<32x256xf32>
    %160 = arith.addf %157, %159 : vector<32x256xf32>
    %161 = vector.extract_strided_slice %154 {offsets = [0, 0], sizes = [16, 32], strides = [1, 1]} : vector<16x128xf32> to vector<16x32xf32>
    %162 = vector.extract_strided_slice %154 {offsets = [0, 32], sizes = [16, 32], strides = [1, 1]} : vector<16x128xf32> to vector<16x32xf32>
    %163 = vector.extract_strided_slice %154 {offsets = [0, 64], sizes = [16, 32], strides = [1, 1]} : vector<16x128xf32> to vector<16x32xf32>
    %164 = vector.extract_strided_slice %154 {offsets = [0, 96], sizes = [16, 32], strides = [1, 1]} : vector<16x128xf32> to vector<16x32xf32>
    %165 = vector.shape_cast %161 : vector<16x32xf32> to vector<1x16x32xf32>
    %166 = vector.shape_cast %162 : vector<16x32xf32> to vector<1x16x32xf32>
    %167 = vector.shape_cast %163 : vector<16x32xf32> to vector<1x16x32xf32>
    %168 = vector.shape_cast %164 : vector<16x32xf32> to vector<1x16x32xf32>
    %169 = tpu.concatenate %165, %166, %167, %168 in 0 : vector<1x16x32xf32>, vector<1x16x32xf32>, vector<1x16x32xf32>, vector<1x16x32xf32> -> vector<4x16x32xf32>
    %170 = vector.extract_strided_slice %160 {offsets = [0, 0], sizes = [32, 32], strides = [1, 1]} : vector<32x256xf32> to vector<32x32xf32>
    %171 = vector.extract_strided_slice %160 {offsets = [0, 32], sizes = [32, 32], strides = [1, 1]} : vector<32x256xf32> to vector<32x32xf32>
    %172 = vector.extract_strided_slice %160 {offsets = [0, 64], sizes = [32, 32], strides = [1, 1]} : vector<32x256xf32> to vector<32x32xf32>
    %173 = vector.extract_strided_slice %160 {offsets = [0, 96], sizes = [32, 32], strides = [1, 1]} : vector<32x256xf32> to vector<32x32xf32>
    %174 = vector.shape_cast %170 : vector<32x32xf32> to vector<1x32x32xf32>
    %175 = vector.shape_cast %171 : vector<32x32xf32> to vector<1x32x32xf32>
    %176 = vector.shape_cast %172 : vector<32x32xf32> to vector<1x32x32xf32>
    %177 = vector.shape_cast %173 : vector<32x32xf32> to vector<1x32x32xf32>
    %178 = tpu.concatenate %174, %175, %176, %177 in 0 : vector<1x32x32xf32>, vector<1x32x32xf32>, vector<1x32x32xf32>, vector<1x32x32xf32> -> vector<4x32x32xf32>
    %179 = vector.extract_strided_slice %160 {offsets = [0, 128], sizes = [32, 32], strides = [1, 1]} : vector<32x256xf32> to vector<32x32xf32>
    %180 = vector.extract_strided_slice %160 {offsets = [0, 160], sizes = [32, 32], strides = [1, 1]} : vector<32x256xf32> to vector<32x32xf32>
    %181 = vector.extract_strided_slice %160 {offsets = [0, 192], sizes = [32, 32], strides = [1, 1]} : vector<32x256xf32> to vector<32x32xf32>
    %182 = vector.extract_strided_slice %160 {offsets = [0, 224], sizes = [32, 32], strides = [1, 1]} : vector<32x256xf32> to vector<32x32xf32>
    %183 = vector.shape_cast %179 : vector<32x32xf32> to vector<1x32x32xf32>
    %184 = vector.shape_cast %180 : vector<32x32xf32> to vector<1x32x32xf32>
    %185 = vector.shape_cast %181 : vector<32x32xf32> to vector<1x32x32xf32>
    %186 = vector.shape_cast %182 : vector<32x32xf32> to vector<1x32x32xf32>
    %187 = tpu.concatenate %183, %184, %185, %186 in 0 : vector<1x32x32xf32>, vector<1x32x32xf32>, vector<1x32x32xf32>, vector<1x32x32xf32> -> vector<4x32x32xf32>
    %188 = arith.truncf %169 : vector<4x16x32xf32> to vector<4x16x32xbf16>
    %189 = arith.truncf %178 : vector<4x32x32xf32> to vector<4x32x32xbf16>
    "tpu.trace_start"() <{level = 10 : i32, message = "hqd,hkd->hqk"}> : () -> ()
    %cst_55 = arith.constant dense<0.000000e+00> : vector<4x16x32xf32>
    %190 = tpu.matmul %188, %189, %cst_55 {dimension_numbers = #tpu.dot_dimension_numbers<[2], [2], [1], [1], [0, 0, 0, 1, 1, 1], [0], [0]>} : vector<4x16x32xbf16>, vector<4x32x32xbf16>, vector<4x16x32xf32> -> vector<4x16x32xf32>
    "tpu.trace_stop"() : () -> ()
    %191 = vector.shape_cast %33 : vector<16x32xf32> to vector<1x16x32xf32>
    %192 = vector.broadcast %191 : vector<1x16x32xf32> to vector<4x16x32xf32>
    %193 = arith.addf %190, %192 : vector<4x16x32xf32>
    %cst_56 = arith.constant dense<0xFF800000> : vector<4x16xf32>
    %194 = vector.multi_reduction <maximumf>, %193, %cst_56 [2] : vector<4x16x32xf32> to vector<4x16xf32>
    %195 = vector.shape_cast %194 : vector<4x16xf32> to vector<4x16x1xf32>
    %196 = vector.broadcast %195 : vector<4x16x1xf32> to vector<4x16x32xf32>
    %197 = arith.subf %193, %196 : vector<4x16x32xf32>
    %198 = math.exp %197 : vector<4x16x32xf32>
    %cst_57 = arith.constant dense<0.000000e+00> : vector<4x16xf32>
    %199 = vector.multi_reduction <add>, %198, %cst_57 [2] : vector<4x16x32xf32> to vector<4x16xf32>
    %200 = vector.shape_cast %199 : vector<4x16xf32> to vector<4x16x1xf32>
    %201 = vector.broadcast %200 : vector<4x16x1xf32> to vector<4x16x32xf32>
    %202 = arith.divf %198, %201 : vector<4x16x32xf32>
    %203 = arith.truncf %202 : vector<4x16x32xf32> to vector<4x16x32xbf16>
    %204 = arith.truncf %187 : vector<4x32x32xf32> to vector<4x32x32xbf16>
    "tpu.trace_start"() <{level = 10 : i32, message = "hqk,hkd->hqd"}> : () -> ()
    %cst_58 = arith.constant dense<0.000000e+00> : vector<4x16x32xf32>
    %205 = tpu.matmul %203, %204, %cst_58 {dimension_numbers = #tpu.dot_dimension_numbers<[2], [1], [1], [2], [0, 0, 0, 1, 1, 2], [0], [0]>} : vector<4x16x32xbf16>, vector<4x32x32xbf16>, vector<4x16x32xf32> -> vector<4x16x32xf32>
    "tpu.trace_stop"() : () -> ()
    %206 = vector.extract_strided_slice %205 {offsets = [0, 0, 0], sizes = [1, 16, 32], strides = [1, 1, 1]} : vector<4x16x32xf32> to vector<1x16x32xf32>
    %207 = vector.shape_cast %206 : vector<1x16x32xf32> to vector<16x32xf32>
    %208 = vector.extract_strided_slice %205 {offsets = [1, 0, 0], sizes = [1, 16, 32], strides = [1, 1, 1]} : vector<4x16x32xf32> to vector<1x16x32xf32>
    %209 = vector.shape_cast %208 : vector<1x16x32xf32> to vector<16x32xf32>
    %210 = vector.extract_strided_slice %205 {offsets = [2, 0, 0], sizes = [1, 16, 32], strides = [1, 1, 1]} : vector<4x16x32xf32> to vector<1x16x32xf32>
    %211 = vector.shape_cast %210 : vector<1x16x32xf32> to vector<16x32xf32>
    %212 = vector.extract_strided_slice %205 {offsets = [3, 0, 0], sizes = [1, 16, 32], strides = [1, 1, 1]} : vector<4x16x32xf32> to vector<1x16x32xf32>
    %213 = vector.shape_cast %212 : vector<1x16x32xf32> to vector<16x32xf32>
    %214 = tpu.concatenate %207, %209, %211, %213 in 1 : vector<16x32xf32>, vector<16x32xf32>, vector<16x32xf32>, vector<16x32xf32> -> vector<16x128xf32>
    %215 = arith.truncf %214 : vector<16x128xf32> to vector<16x128xbf16>
    %c0_59 = arith.constant 0 : index
    %c0_60 = arith.constant 0 : index
    %216 = vector.load %arg16[%c0_59, %c0_60] : memref<128x128xbf16, #tpu.memory_space<vmem>>, vector<128x128xbf16>
    %cst_61 = arith.constant dense<0.000000e+00> : vector<16x128xf32>
    %217 = tpu.matmul %215, %216, %cst_61 {dimension_numbers = #tpu.dot_dimension_numbers<[1], [0], [0], [1], [0, 0, 1, 1], [], []>} : vector<16x128xbf16>, vector<128x128xbf16>, vector<16x128xf32> -> vector<16x128xf32>
    %c0_62 = arith.constant 0 : index
    %c0_63 = arith.constant 0 : index
    %218 = vector.load %arg17[%c0_62, %c0_63] : memref<1x128xf32, #tpu.memory_space<vmem>>, vector<1x128xf32>
    %219 = vector.broadcast %218 : vector<1x128xf32> to vector<16x128xf32>
    %220 = arith.addf %217, %219 : vector<16x128xf32>
    %221 = arith.addf %124, %220 : vector<16x128xf32>
    %c0_64 = arith.constant 0 : index
    %c0_65 = arith.constant 0 : index
    %222 = vector.load %arg18[%c0_64, %c0_65] : memref<1x128xf32, #tpu.memory_space<vmem>>, vector<1x128xf32>
    %c0_66 = arith.constant 0 : index
    %c0_67 = arith.constant 0 : index
    %223 = vector.load %arg19[%c0_66, %c0_67] : memref<1x128xf32, #tpu.memory_space<vmem>>, vector<1x128xf32>
    %cst_68 = arith.constant dense<0.000000e+00> : vector<16xf32>
    %224 = vector.multi_reduction <add>, %221, %cst_68 [1] : vector<16x128xf32> to vector<16xf32>
    %225 = vector.shape_cast %224 : vector<16xf32> to vector<16x1xf32>
    %cst_69 = arith.constant 1.280000e+02 : f32
    %226 = vector.broadcast %cst_69 : f32 to vector<16x1xf32>
    %227 = arith.divf %225, %226 : vector<16x1xf32>
    %228 = vector.broadcast %227 : vector<16x1xf32> to vector<16x128xf32>
    %229 = arith.subf %221, %228 : vector<16x128xf32>
    %230 = arith.mulf %229, %229 : vector<16x128xf32>
    %cst_70 = arith.constant dense<0.000000e+00> : vector<16xf32>
    %231 = vector.multi_reduction <add>, %230, %cst_70 [1] : vector<16x128xf32> to vector<16xf32>
    %232 = vector.shape_cast %231 : vector<16xf32> to vector<16x1xf32>
    %cst_71 = arith.constant 1.280000e+02 : f32
    %233 = vector.broadcast %cst_71 : f32 to vector<16x1xf32>
    %234 = arith.divf %232, %233 : vector<16x1xf32>
    %235 = vector.broadcast %227 : vector<16x1xf32> to vector<16x128xf32>
    %236 = arith.subf %221, %235 : vector<16x128xf32>
    %cst_72 = arith.constant 9.99999974E-6 : f32
    %237 = vector.broadcast %cst_72 : f32 to vector<16x1xf32>
    %238 = arith.addf %234, %237 : vector<16x1xf32>
    %239 = math.rsqrt %238 : vector<16x1xf32>
    %240 = vector.broadcast %239 : vector<16x1xf32> to vector<16x128xf32>
    %241 = arith.mulf %236, %240 : vector<16x128xf32>
    %242 = vector.broadcast %222 : vector<1x128xf32> to vector<16x128xf32>
    %243 = arith.mulf %241, %242 : vector<16x128xf32>
    %244 = vector.broadcast %223 : vector<1x128xf32> to vector<16x128xf32>
    %245 = arith.addf %243, %244 : vector<16x128xf32>
    %246 = arith.truncf %245 : vector<16x128xf32> to vector<16x128xbf16>
    %c0_73 = arith.constant 0 : index
    %c0_74 = arith.constant 0 : index
    %247 = vector.load %arg20[%c0_73, %c0_74] : memref<128x512xbf16, #tpu.memory_space<vmem>>, vector<128x512xbf16>
    %cst_75 = arith.constant dense<0.000000e+00> : vector<16x512xf32>
    %248 = tpu.matmul %246, %247, %cst_75 {dimension_numbers = #tpu.dot_dimension_numbers<[1], [0], [0], [1], [0, 0, 1, 1], [], []>} : vector<16x128xbf16>, vector<128x512xbf16>, vector<16x512xf32> -> vector<16x512xf32>
    %c0_76 = arith.constant 0 : index
    %c0_77 = arith.constant 0 : index
    %249 = vector.load %arg21[%c0_76, %c0_77] : memref<1x512xf32, #tpu.memory_space<vmem>>, vector<1x512xf32>
    %250 = vector.broadcast %249 : vector<1x512xf32> to vector<16x512xf32>
    %251 = arith.addf %248, %250 : vector<16x512xf32>
    %cst_78 = arith.constant 5.000000e-01 : f32
    %252 = vector.broadcast %cst_78 : f32 to vector<16x512xf32>
    %253 = arith.mulf %252, %251 : vector<16x512xf32>
    %cst_79 = arith.constant 0.707106769 : f32
    %254 = vector.broadcast %cst_79 : f32 to vector<16x512xf32>
    %255 = arith.mulf %251, %254 : vector<16x512xf32>
    %cst_80 = arith.constant 0.000000e+00 : f32
    %256 = vector.broadcast %cst_80 : f32 to vector<16x512xf32>
    %257 = arith.cmpf oge, %255, %256 : vector<16x512xf32>
    %cst_81 = arith.constant 1.000000e+00 : f32
    %cst_82 = arith.constant -1.000000e+00 : f32
    %258 = vector.broadcast %cst_81 : f32 to vector<16x512xf32>
    %259 = vector.broadcast %cst_82 : f32 to vector<16x512xf32>
    %260 = arith.select %257, %258, %259 : vector<16x512xi1>, vector<16x512xf32>
    %261 = math.absf %255 : vector<16x512xf32>
    %cst_83 = arith.constant 0.327591091 : f32
    %262 = vector.broadcast %cst_83 : f32 to vector<16x512xf32>
    %263 = arith.mulf %262, %261 : vector<16x512xf32>
    %cst_84 = arith.constant 1.000000e+00 : f32
    %264 = vector.broadcast %cst_84 : f32 to vector<16x512xf32>
    %265 = arith.addf %264, %263 : vector<16x512xf32>
    %cst_85 = arith.constant 1.000000e+00 : f32
    %266 = vector.broadcast %cst_85 : f32 to vector<16x512xf32>
    %267 = arith.divf %266, %265 : vector<16x512xf32>
    %cst_86 = arith.constant 1.06140542 : f32
    %268 = vector.broadcast %cst_86 : f32 to vector<16x512xf32>
    %269 = arith.mulf %268, %267 : vector<16x512xf32>
    %cst_87 = arith.constant -1.45315206 : f32
    %270 = vector.broadcast %cst_87 : f32 to vector<16x512xf32>
    %271 = arith.addf %269, %270 : vector<16x512xf32>
    %272 = arith.mulf %271, %267 : vector<16x512xf32>
    %cst_88 = arith.constant 1.42141378 : f32
    %273 = vector.broadcast %cst_88 : f32 to vector<16x512xf32>
    %274 = arith.addf %272, %273 : vector<16x512xf32>
    %275 = arith.mulf %274, %267 : vector<16x512xf32>
    %cst_89 = arith.constant -0.284496725 : f32
    %276 = vector.broadcast %cst_89 : f32 to vector<16x512xf32>
    %277 = arith.addf %275, %276 : vector<16x512xf32>
    %278 = arith.mulf %277, %267 : vector<16x512xf32>
    %cst_90 = arith.constant 0.254829586 : f32
    %279 = vector.broadcast %cst_90 : f32 to vector<16x512xf32>
    %280 = arith.addf %278, %279 : vector<16x512xf32>
    %281 = arith.mulf %280, %267 : vector<16x512xf32>
    %cst_91 = arith.constant 0.000000e+00 : f32
    %282 = vector.broadcast %cst_91 : f32 to vector<16x512xf32>
    %283 = arith.subf %282, %261 : vector<16x512xf32>
    %284 = arith.mulf %283, %261 : vector<16x512xf32>
    %285 = math.exp %284 : vector<16x512xf32>
    %286 = arith.mulf %281, %285 : vector<16x512xf32>
    %cst_92 = arith.constant 1.000000e+00 : f32
    %287 = vector.broadcast %cst_92 : f32 to vector<16x512xf32>
    %288 = arith.subf %287, %286 : vector<16x512xf32>
    %289 = arith.mulf %260, %288 : vector<16x512xf32>
    %cst_93 = arith.constant 1.000000e+00 : f32
    %290 = vector.broadcast %cst_93 : f32 to vector<16x512xf32>
    %291 = arith.addf %290, %289 : vector<16x512xf32>
    %292 = arith.mulf %253, %291 : vector<16x512xf32>
    %293 = arith.truncf %292 : vector<16x512xf32> to vector<16x512xbf16>
    %c0_94 = arith.constant 0 : index
    %c0_95 = arith.constant 0 : index
    %294 = vector.load %arg22[%c0_94, %c0_95] : memref<512x128xbf16, #tpu.memory_space<vmem>>, vector<512x128xbf16>
    %cst_96 = arith.constant dense<0.000000e+00> : vector<16x128xf32>
    %295 = tpu.matmul %293, %294, %cst_96 {dimension_numbers = #tpu.dot_dimension_numbers<[1], [0], [0], [1], [0, 0, 1, 1], [], []>} : vector<16x512xbf16>, vector<512x128xbf16>, vector<16x128xf32> -> vector<16x128xf32>
    %c0_97 = arith.constant 0 : index
    %c0_98 = arith.constant 0 : index
    %296 = vector.load %arg23[%c0_97, %c0_98] : memref<1x128xf32, #tpu.memory_space<vmem>>, vector<1x128xf32>
    %297 = vector.broadcast %296 : vector<1x128xf32> to vector<16x128xf32>
    %298 = arith.addf %295, %297 : vector<16x128xf32>
    %299 = arith.addf %221, %298 : vector<16x128xf32>
    %300 = vector.shape_cast %299 : vector<16x128xf32> to vector<2x8x128xf32>
    %c0_99 = arith.constant 0 : index
    %c0_100 = arith.constant 0 : index
    %c0_101 = arith.constant 0 : index
    %301 = vector.load %arg24[%c0_99, %c0_100, %c0_101] : memref<2x8x128xf32, #tpu.memory_space<vmem>>, vector<2x8x128xf32>
    tpu.vector_store %arg24[%c0_99, %c0_100, %c0_101], %300 {strides = array<i32>} : memref<2x8x128xf32, #tpu.memory_space<vmem>>, vector<2x8x128xf32>,
    return
  }
  func.func @transform_0(%arg0: i32) -> (i32, i32, i32) {
    %c0_i32 = arith.constant 0 : i32
    %c0_i32_0 = arith.constant 0 : i32
    %c0_i32_1 = arith.constant 0 : i32
    return %arg0, %c0_i32, %c0_i32_0 : i32, i32, i32
  }
  func.func @transform_1(%arg0: i32) -> (i32, i32, i32) {
    %c0_i32 = arith.constant 0 : i32
    %c0_i32_0 = arith.constant 0 : i32
    %c0_i32_1 = arith.constant 0 : i32
    return %arg0, %c0_i32, %c0_i32_0 : i32, i32, i32
  }
  func.func @transform_2(%arg0: i32) -> (i32, i32) {
    %c0_i32 = arith.constant 0 : i32
    %c0_i32_0 = arith.constant 0 : i32
    %c0_i32_1 = arith.constant 0 : i32
    return %c0_i32, %c0_i32_0 : i32, i32
  }
  func.func @transform_3(%arg0: i32) -> (i32, i32) {
    %c0_i32 = arith.constant 0 : i32
    %c0_i32_0 = arith.constant 0 : i32
    %c0_i32_1 = arith.constant 0 : i32
    return %c0_i32, %c0_i32_0 : i32, i32
  }
  func.func @transform_4(%arg0: i32) -> (i32, i32) {
    %c0_i32 = arith.constant 0 : i32
    %c0_i32_0 = arith.constant 0 : i32
    %c0_i32_1 = arith.constant 0 : i32
    return %c0_i32, %c0_i32_0 : i32, i32
  }
  func.func @transform_5(%arg0: i32) -> (i32, i32) {
    %c0_i32 = arith.constant 0 : i32
    %c0_i32_0 = arith.constant 0 : i32
    %c0_i32_1 = arith.constant 0 : i32
    return %c0_i32, %c0_i32_0 : i32, i32
  }
  func.func @transform_6(%arg0: i32) -> (i32, i32) {
    %c0_i32 = arith.constant 0 : i32
    %c0_i32_0 = arith.constant 0 : i32
    %c0_i32_1 = arith.constant 0 : i32
    return %c0_i32, %c0_i32_0 : i32, i32
  }
  func.func @transform_7(%arg0: i32) -> (i32, i32) {
    %c0_i32 = arith.constant 0 : i32
    %c0_i32_0 = arith.constant 0 : i32
    %c0_i32_1 = arith.constant 0 : i32
    return %c0_i32, %c0_i32_0 : i32, i32
  }
  func.func @transform_8(%arg0: i32) -> (i32, i32) {
    %c0_i32 = arith.constant 0 : i32
    %c0_i32_0 = arith.constant 0 : i32
    %c0_i32_1 = arith.constant 0 : i32
    return %c0_i32, %c0_i32_0 : i32, i32
  }
  func.func @transform_9(%arg0: i32) -> (i32, i32) {
    %c0_i32 = arith.constant 0 : i32
    %c0_i32_0 = arith.constant 0 : i32
    %c0_i32_1 = arith.constant 0 : i32
    return %c0_i32, %c0_i32_0 : i32, i32
  }
  func.func @transform_10(%arg0: i32) -> (i32, i32) {
    %c0_i32 = arith.constant 0 : i32
    %c0_i32_0 = arith.constant 0 : i32
    %c0_i32_1 = arith.constant 0 : i32
    return %c0_i32, %c0_i32_0 : i32, i32
  }
  func.func @transform_11(%arg0: i32) -> (i32, i32) {
    %c0_i32 = arith.constant 0 : i32
    %c0_i32_0 = arith.constant 0 : i32
    %c0_i32_1 = arith.constant 0 : i32
    return %c0_i32, %c0_i32_0 : i32, i32
  }
  func.func @transform_12(%arg0: i32) -> (i32, i32) {
    %c0_i32 = arith.constant 0 : i32
    %c0_i32_0 = arith.constant 0 : i32
    %c0_i32_1 = arith.constant 0 : i32
    return %c0_i32, %c0_i32_0 : i32, i32
  }
  func.func @transform_13(%arg0: i32) -> (i32, i32) {
    %c0_i32 = arith.constant 0 : i32
    %c0_i32_0 = arith.constant 0 : i32
    %c0_i32_1 = arith.constant 0 : i32
    return %c0_i32, %c0_i32_0 : i32, i32
  }
  func.func @transform_14(%arg0: i32) -> (i32, i32) {
    %c0_i32 = arith.constant 0 : i32
    %c0_i32_0 = arith.constant 0 : i32
    %c0_i32_1 = arith.constant 0 : i32
    return %c0_i32, %c0_i32_0 : i32, i32
  }
  func.func @transform_15(%arg0: i32) -> (i32, i32) {
    %c0_i32 = arith.constant 0 : i32
    %c0_i32_0 = arith.constant 0 : i32
    %c0_i32_1 = arith.constant 0 : i32
    return %c0_i32, %c0_i32_0 : i32, i32
  }
  func.func @transform_16(%arg0: i32) -> (i32, i32) {
    %c0_i32 = arith.constant 0 : i32
    %c0_i32_0 = arith.constant 0 : i32
    %c0_i32_1 = arith.constant 0 : i32
    return %c0_i32, %c0_i32_0 : i32, i32
  }
  func.func @transform_17(%arg0: i32) -> (i32, i32) {
    %c0_i32 = arith.constant 0 : i32
    %c0_i32_0 = arith.constant 0 : i32
    %c0_i32_1 = arith.constant 0 : i32
    return %c0_i32, %c0_i32_0 : i32, i32
  }
  func.func @transform_18(%arg0: i32) -> (i32, i32) {
    %c0_i32 = arith.constant 0 : i32
    %c0_i32_0 = arith.constant 0 : i32
    %c0_i32_1 = arith.constant 0 : i32
    return %c0_i32, %c0_i32_0 : i32, i32
  }
  func.func @transform_19(%arg0: i32) -> (i32, i32) {
    %c0_i32 = arith.constant 0 : i32
    %c0_i32_0 = arith.constant 0 : i32
    %c0_i32_1 = arith.constant 0 : i32
    return %c0_i32, %c0_i32_0 : i32, i32
  }
  func.func @transform_20(%arg0: i32) -> (i32, i32) {
    %c0_i32 = arith.constant 0 : i32
    %c0_i32_0 = arith.constant 0 : i32
    %c0_i32_1 = arith.constant 0 : i32
    return %c0_i32, %c0_i32_0 : i32, i32
  }
  func.func @transform_21(%arg0: i32) -> (i32, i32) {
    %c0_i32 = arith.constant 0 : i32
    %c0_i32_0 = arith.constant 0 : i32
    %c0_i32_1 = arith.constant 0 : i32
    return %c0_i32, %c0_i32_0 : i32, i32
  }
  func.func @transform_22(%arg0: i32) -> (i32, i32) {
    %c0_i32 = arith.constant 0 : i32
    %c0_i32_0 = arith.constant 0 : i32
    %c0_i32_1 = arith.constant 0 : i32
    return %c0_i32, %c0_i32_0 : i32, i32
  }
  func.func @transform_23(%arg0: i32) -> (i32, i32, i32) {
    %c0_i32 = arith.constant 0 : i32
    %c0_i32_0 = arith.constant 0 : i32
    %c0_i32_1 = arith.constant 0 : i32
    return %arg0, %c0_i32, %c0_i32_0 : i32, i32, i32
  }
}

</mosaic_0001>

<bundles_post_ra>
// kernel: tpu_custom_call.1
= control target key start
LH: loop header
LB: loop body
LE: loop exit
PB: predicated region body
PF: predicated region fallthrough
CT: control target
= control target key end

     0   :  { %s5242_s0 = inlined_call_operand.hbm [shape: f32[2,8,128], index: 0, kind: input, shape index: {}]   ;;  %s5243_s1 = inlined_call_operand.hbm [shape: f32[2,16,128], index: 1, kind: input, shape index: {}]   ;;  %s5244_s2 = inlined_call_operand.hbm [shape: f32[8,8], index: 2, kind: input, shape index: {}]   ;;  %s5245_s3 = inlined_call_operand.vmem [shape: f32[1,128], index: 3, kind: input, shape index: {}]   ;;  %s5246_s4 = inlined_call_operand.vmem [shape: f32[1,128], index: 4, kind: input, shape index: {}]   ;;  %s5247_s5 = inlined_call_operand.hbm [shape: bf16[128,384], index: 5, kind: input, shape index: {}]   ;;  %s5248_s6 = inlined_call_operand.vmem [shape: f32[1,384], index: 6, kind: input, shape index: {}]   ;;  %s5249_s7 = inlined_call_operand.hbm [shape: bf16[128,128], index: 7, kind: input, shape index: {}]   ;;  %s5250_s8 = inlined_call_operand.vmem [shape: f32[1,128], index: 8, kind: input, shape index: {}]   ;;  %s5251_s9 = inlined_call_operand.vmem [shape: f32[1,128], index: 9, kind: input, shape index: {}]   ;;  %s5252_s10 = inlined_call_operand.vmem [shape: f32[1,128], index: 10, kind: input, shape index: {}]   ;;  %s5253_s11 = inlined_call_operand.hbm [shape: bf16[128,128], index: 11, kind: input, shape index: {}]   ;;  %s5254_s12 = inlined_call_operand.vmem [shape: f32[1,128], index: 12, kind: input, shape index: {}]   ;;  %s5255_s13 = inlined_call_operand.hbm [shape: bf16[128,256], index: 13, kind: input, shape index: {}]   ;;  %s5256_s14 = inlined_call_operand.vmem [shape: f32[1,256], index: 14, kind: input, shape index: {}]   ;;  %s5257_s15 = inlined_call_operand.hbm [shape: bf16[128,128], index: 15, kind: input, shape index: {}]   ;;  %s5258_s16 = inlined_call_operand.vmem [shape: f32[1,128], index: 16, kind: input, shape index: {}]   ;;  %s5259_s17 = inlined_call_operand.vmem [shape: f32[1,128], index: 17, kind: input, shape index: {}]   ;;  %s5260_s18 = inlined_call_operand.vmem [shape: f32[1,128], index: 18, kind: input, shape index: {}]   ;;  %s5261_s19 = inlined_call_operand.hbm [shape: bf16[128,512], index: 19, kind: input, shape index: {}]   ;;  %s5262_s20 = inlined_call_operand.vmem [shape: f32[1,512], index: 20, kind: input, shape index: {}]   ;;  %s5263_s21 = inlined_call_operand.hbm [shape: bf16[512,128], index: 21, kind: input, shape index: {}]   ;;  %s5264_s22 = inlined_call_operand.vmem [shape: f32[1,128], index: 22, kind: input, shape index: {}]   ;;  %s5265_s23 = inlined_call_operand.hbm [shape: f32[2,8,128], index: 23, kind: output, shape index: {}]  }
   0x1   :  { %5278 = sst [smem:[#allocation27_spill]] %s5242_s0 }
   0x2   :  { %5279 = sst [smem:[#allocation28_spill]] %s5243_s1 }
   0x3   :  { %5280 = sst [smem:[#allocation29_spill]] %s5244_s2 }
   0x4   :  { %5281 = sst [smem:[#allocation30_spill]] %s5245_s3 }
   0x5   :  { %5282 = sst [smem:[#allocation31_spill]] %s5246_s4 }
   0x6   :  { %5283 = sst [smem:[#allocation32_spill]] %s5247_s5 }
   0x7   :  { %5284 = sst [smem:[#allocation33_spill]] %s5248_s6 }
   0x8   :  { %5285 = sst [smem:[#allocation34_spill]] %s5249_s7 }
   0x9   :  { %5286 = sst [smem:[#allocation35_spill]] %s5264_s22 }
   0xa   :  { %5287 = sst [smem:[#allocation36_spill]] %s5265_s23 }
   0xb   :  { %28 = vsyncpa [#allocation3], 0 }
   0xc   :  { %29 = vsyncpa [#allocation6], 0 }
   0xd   :  { %30 = vsyncpa [#allocation9], 0 }
   0xe   :  { %31 = vsyncpa [#allocation12], 0 }
   0xf   :  { %32 = vsyncpa [#allocation15], 0 }
  0x10   :  { %33 = vsyncpa [#allocation18], 0 }
  0x11   :  { %34 = vsyncpa [#allocation4], 0  ;;  %s4376_s4 = smov [#allocation5]   ;;  %s4377_s24 = smov [#allocation8]  }
  0x12   :  { %s52_s30 = sshll.u32 %s4376_s4, 4  ;;  %s78_s25 = sshll.u32 %s4377_s24, 4  ;;  %s53_s30 = int_to_ptr.vmem [resolvable:$true] %s52_s30  ;;  %s4522_s25 = int_to_ptr.vmem [resolvable:$true] %s78_s25 }
  0x13   :  { %s5288_s26 = sld [smem:[#allocation28_spill]] }
  0x19   :  { %s4120_s2 = scalar_lea.hbm %s5288_s26, 512 }
  0x1a   :  { %p4121_p0 = scmp.ne.s32.totalorder %s5288_s26, %s4120_s2  ;;  %p4124_p1 = scmp.lt.u32.totalorder %s4120_s2, %s5288_s26 }
  0x1c   :  { %p4126_p2 = pnand %p4124_p1, %p4121_p0 }
  0x1e   :  { %4129 = shalt.err (!%p4126_p2)
}
  0x1f   :  { %s4130_s29 = scalar_lea.vmem %s53_s30, 512  ;;  %p4135_p4 = scmp.lt.s32.totalorder %s53_s30, %s53_s30 }
  0x20   :  { %p4131_p3 = scmp.ne.s32.totalorder %s53_s30, %s4130_s29  ;;  %p4136_p5 = scmp.lt.s32.totalorder %s4130_s29, %s4130_s29 }
  0x22   :  { %p4137_p6 = por %p4136_p5, %p4135_p4 }
  0x24   :  { %p4138_p7 = pnand %p4137_p6, %p4131_p3 }
  0x26   :  { %4141 = shalt.err (!%p4138_p7)
}
  0x27   :  { %s5272_s3 = smov 128   ;;  %s5274_s0 = smov 8  }
  0x28   :  { %58 = dma.hbm_to_vmem [thread:$0]  %s5288_s26, 512, %s53_s30, [#allocation6], %s5272_s3, %s5272_s3, %s5274_s0  }
  0x29   :  { %s5289_s2 = sld [smem:[#allocation32_spill]] }
  0x2f   :  { %s4142_s6 = scalar_lea.hbm %s5289_s2, 3072 }
  0x30   :  { %p4143_p8 = scmp.ne.s32.totalorder %s5289_s2, %s4142_s6  ;;  %p4146_p9 = scmp.lt.u32.totalorder %s4142_s6, %s5289_s2 }
  0x32   :  { %p4148_p10 = pnand %p4146_p9, %p4143_p8 }
  0x34   :  { %4151 = shalt.err (!%p4148_p10)
}
  0x35   :  { %s4152_s23 = scalar_lea.vmem %s4522_s25, 3072  ;;  %p4157_p12 = scmp.lt.s32.totalorder %s4522_s25, %s4522_s25 }
  0x36   :  { %p4153_p11 = scmp.ne.s32.totalorder %s4522_s25, %s4152_s23  ;;  %p4158_p13 = scmp.lt.s32.totalorder %s4152_s23, %s4152_s23 }
  0x38   :  { %p4159_p0 = por %p4158_p13, %p4157_p12 }
  0x3a   :  { %p4160_p1 = pnand %p4159_p0, %p4153_p11 }
  0x3c   :  { %4163 = shalt.err (!%p4160_p1)
}
  0x3d   :  { %s4380_s30 = smov 192   ;;  %s4381_s26 = smov 12  }
  0x3e   :  { %84 = dma.hbm_to_vmem [thread:$0]  %s5289_s2, 3072, %s4522_s25, [#allocation9], %s4380_s30, %s4380_s30, %s4381_s26  }
  0x3f   :  { %s4382_s5 = smov [#allocation11]   ;;  %s4383_s6 = smov [#allocation14]  }
  0x40   :  { %s110_s1 = sshll.u32 %s4382_s5, 4  ;;  %s138_s27 = sshll.u32 %s4383_s6, 4  ;;  %s111_s1 = int_to_ptr.vmem [resolvable:$true] %s110_s1  ;;  %s4556_s27 = int_to_ptr.vmem [resolvable:$true] %s138_s27 }
  0x41   :  { %s4164_s23 = scalar_lea.hbm %s5253_s11, 1024 }
  0x42   :  { %p4165_p2 = scmp.ne.s32.totalorder %s5253_s11, %s4164_s23  ;;  %p4168_p3 = scmp.lt.u32.totalorder %s4164_s23, %s5253_s11 }
  0x44   :  { %p4170_p4 = pnand %p4168_p3, %p4165_p2 }
  0x46   :  { %4173 = shalt.err (!%p4170_p4)
}
  0x47   :  { %s4174_s25 = scalar_lea.vmem %s111_s1, 1024  ;;  %p4179_p6 = scmp.lt.s32.totalorder %s111_s1, %s111_s1 }
  0x48   :  { %p4175_p5 = scmp.ne.s32.totalorder %s111_s1, %s4174_s25  ;;  %p4180_p7 = scmp.lt.s32.totalorder %s4174_s25, %s4174_s25 }
  0x4a   :  { %p4181_p8 = por %p4180_p7, %p4179_p6 }
  0x4c   :  { %p4182_p9 = pnand %p4181_p8, %p4175_p5 }
  0x4e   :  { %4185 = shalt.err (!%p4182_p9)
}
  0x4f   :  { %s5276_s2 = smov 64   ;;  %s4385_s30 = smov 4  }
  0x50   :  { %116 = dma.hbm_to_vmem [thread:$0]  %s5253_s11, 1024, %s111_s1, [#allocation12], %s5276_s2, %s5276_s2, %s4385_s30  }
  0x51   :  { %s4186_s4 = scalar_lea.hbm %s5257_s15, 1024 }
  0x52   :  { %p4187_p10 = scmp.ne.s32.totalorder %s5257_s15, %s4186_s4  ;;  %p4190_p11 = scmp.lt.u32.totalorder %s4186_s4, %s5257_s15 }
  0x54   :  { %p4192_p12 = pnand %p4190_p11, %p4187_p10 }
  0x56   :  { %4195 = shalt.err (!%p4192_p12)
}
  0x57   :  { %s4196_s28 = scalar_lea.vmem %s4556_s27, 1024  ;;  %p4201_p0 = scmp.lt.s32.totalorder %s4556_s27, %s4556_s27 }
  0x58   :  { %p4197_p13 = scmp.ne.s32.totalorder %s4556_s27, %s4196_s28  ;;  %p4202_p1 = scmp.lt.s32.totalorder %s4196_s28, %s4196_s28 }
  0x5a   :  { %p4203_p2 = por %p4202_p1, %p4201_p0 }
  0x5c   :  { %p4204_p3 = pnand %p4203_p2, %p4197_p13 }
  0x5e   :  { %4207 = shalt.err (!%p4204_p3)
}
  0x5f   :  { %144 = dma.hbm_to_vmem [thread:$0]  %s5257_s15, 1024, %s4556_s27, [#allocation15], %s5276_s2, %s5276_s2, %s4385_s30  }
  0x60   :  { %s4386_s23 = smov [#allocation2]   ;;  %s4387_s25 = smov [#allocation7]  }
  0x61   :  { %s40_s29 = sshll.u32 %s4386_s23, 4  ;;  %s65_s3 = sshll.u32 %s4387_s25, 4  ;;  %s41_s29 = int_to_ptr.vmem [resolvable:$true] %s40_s29  ;;  %s66_s3 = int_to_ptr.vmem [resolvable:$true] %s65_s3 }
  0x62   :  { %s5290_s0 = sld [smem:[#allocation27_spill]] }
  0x68   :  { %s4208_s4 = scalar_lea.hbm %s5290_s0, 256 }
  0x69   :  { %p4209_p4 = scmp.ne.s32.totalorder %s5290_s0, %s4208_s4  ;;  %p4212_p5 = scmp.lt.u32.totalorder %s4208_s4, %s5290_s0 }
  0x6b   :  { %p4214_p6 = pnand %p4212_p5, %p4209_p4 }
  0x6d   :  { %4217 = shalt.err (!%p4214_p6)
}
  0x6e   :  { %s4218_s15 = scalar_lea.vmem %s41_s29, 256  ;;  %p4223_p8 = scmp.lt.s32.totalorder %s41_s29, %s41_s29 }
  0x6f   :  { %p4219_p7 = scmp.ne.s32.totalorder %s41_s29, %s4218_s15  ;;  %p4224_p9 = scmp.lt.s32.totalorder %s4218_s15, %s4218_s15 }
  0x71   :  { %p4225_p10 = por %p4224_p9, %p4223_p8 }
  0x73   :  { %p4226_p11 = pnand %p4225_p10, %p4219_p7 }
  0x75   :  { %4229 = shalt.err (!%p4226_p11)
}
  0x76   :  { %s5291_s27 = smov 8   ;;  %s5292_s28 = smov 128  }
  0x77   :  { %46 = dma.hbm_to_vmem [thread:$0]  %s5290_s0, 256, %s41_s29, [#allocation3], %s5292_s28, %s5292_s28, %s5291_s27  }
  0x78   :  { %s5293_s26 = sld [smem:[#allocation29_spill]] }
  0x7e   :  { %s4230_s22 = scalar_lea.hbm %s5293_s26, 128 }
  0x7f   :  { %p4231_p12 = scmp.ne.s32.totalorder %s5293_s26, %s4230_s22  ;;  %p4234_p13 = scmp.lt.u32.totalorder %s4230_s22, %s5293_s26 }
  0x81   :  { %p4236_p0 = pnand %p4234_p13, %p4231_p12 }
  0x83   :  { %4239 = shalt.err (!%p4236_p0)
}
  0x84   :  { %s4240_s7 = scalar_lea.vmem %s66_s3, 128  ;;  %p4245_p2 = scmp.lt.s32.totalorder %s66_s3, %s66_s3 }
  0x85   :  { %p4241_p1 = scmp.ne.s32.totalorder %s66_s3, %s4240_s7  ;;  %p4246_p3 = scmp.lt.s32.totalorder %s4240_s7, %s4240_s7 }
  0x87   :  { %p4247_p4 = por %p4246_p3, %p4245_p2 }
  0x89   :  { %p4248_p5 = pnand %p4247_p4, %p4241_p1 }
  0x8b   :  { %4251 = shalt.err (!%p4248_p5)
}
  0x8c   :  { %68 = dma.hbm_to_vmem [thread:$0]  %s5293_s26, 128, %s66_s3, [#allocation6]  }
  0x8d   :  { %s4388_s15 = smov [#allocation10]   ;;  %s4389_s1 = smov [#allocation13]  }
  0x8e   :  { %s92_s11 = sshll.u32 %s4388_s15, 4  ;;  %s124_s23 = sshll.u32 %s4389_s1, 4  ;;  %s93_s11 = int_to_ptr.vmem [resolvable:$true] %s92_s11  ;;  %s4620_s23 = int_to_ptr.vmem [resolvable:$true] %s124_s23 }
  0x8f   :  { %s5294_s4 = sld [smem:[#allocation34_spill]] }
  0x95   :  { %s4252_s24 = scalar_lea.hbm %s5294_s4, 1024 }
  0x96   :  { %p4253_p6 = scmp.ne.s32.totalorder %s5294_s4, %s4252_s24  ;;  %p4256_p7 = scmp.lt.u32.totalorder %s4252_s24, %s5294_s4 }
  0x98   :  { %p4258_p8 = pnand %p4256_p7, %p4253_p6 }
  0x9a   :  { %4261 = shalt.err (!%p4258_p8)
}
  0x9b   :  { %s4262_s3 = scalar_lea.vmem %s93_s11, 1024  ;;  %p4267_p10 = scmp.lt.s32.totalorder %s93_s11, %s93_s11 }
  0x9c   :  { %p4263_p9 = scmp.ne.s32.totalorder %s93_s11, %s4262_s3  ;;  %p4268_p11 = scmp.lt.s32.totalorder %s4262_s3, %s4262_s3 }
  0x9e   :  { %p4269_p12 = por %p4268_p11, %p4267_p10 }
  0xa0   :  { %p4270_p13 = pnand %p4269_p12, %p4263_p9 }
  0xa2   :  { %4273 = shalt.err (!%p4270_p13)
}
  0xa3   :  { %s5295_s26 = smov 64   ;;  %s4274_s2 = scalar_lea.hbm %s5255_s13, 2048 }
  0xa4   :  { %98 = dma.hbm_to_vmem [thread:$0]  %s5294_s4, 1024, %s93_s11, [#allocation9], %s5295_s26, %s5295_s26, %s4385_s30  }
  0xa5   :  { %p4275_p0 = scmp.ne.s32.totalorder %s5255_s13, %s4274_s2  ;;  %p4278_p1 = scmp.lt.u32.totalorder %s4274_s2, %s5255_s13 }
  0xa7   :  { %p4280_p2 = pnand %p4278_p1, %p4275_p0 }
  0xa9   :  { %4283 = shalt.err (!%p4280_p2)
}
  0xaa   :  { %s4284_s6 = scalar_lea.vmem %s4620_s23, 2048  ;;  %p4289_p4 = scmp.lt.s32.totalorder %s4620_s23, %s4620_s23 }
  0xab   :  { %p4285_p3 = scmp.ne.s32.totalorder %s4620_s23, %s4284_s6  ;;  %p4290_p5 = scmp.lt.s32.totalorder %s4284_s6, %s4284_s6 }
  0xad   :  { %p4291_p6 = por %p4290_p5, %p4289_p4 }
  0xaf   :  { %p4292_p7 = pnand %p4291_p6, %p4285_p3 }
  0xb1   :  { %4295 = shalt.err (!%p4292_p7)
}
  0xb2   :  { %130 = dma.hbm_to_vmem [thread:$0]  %s5255_s13, 2048, %s4620_s23, [#allocation12], %s5292_s28, %s5292_s28, %s5291_s27  }
  0xb3   :  { %s4390_s7 = smov [#allocation16]   ;;  %s4296_s15 = scalar_lea.hbm %s5261_s19, 4096 }
  0xb4   :  { %s156_s3 = sshll.u32 %s4390_s7, 4  ;;  %p4297_p8 = scmp.ne.s32.totalorder %s5261_s19, %s4296_s15  ;;  %s157_s3 = int_to_ptr.vmem [resolvable:$true] %s156_s3 }
  0xb5   :  { %p4300_p9 = scmp.lt.u32.totalorder %s4296_s15, %s5261_s19 }
  0xb7   :  { %p4302_p10 = pnand %p4300_p9, %p4297_p8 }
  0xb9   :  { %4305 = shalt.err (!%p4302_p10)
}
  0xba   :  { %s4306_s24 = scalar_lea.vmem %s157_s3, 4096  ;;  %p4311_p12 = scmp.lt.s32.totalorder %s157_s3, %s157_s3 }
  0xbb   :  { %p4307_p11 = scmp.ne.s32.totalorder %s157_s3, %s4306_s24  ;;  %p4312_p13 = scmp.lt.s32.totalorder %s4306_s24, %s4306_s24 }
  0xbd   :  { %p4313_p0 = por %p4312_p13, %p4311_p12 }
  0xbf   :  { %p4314_p1 = pnand %p4313_p0, %p4307_p11 }
  0xc1   :  { %4317 = shalt.err (!%p4314_p1)
}
  0xc2   :  { %s4391_s13 = smov 256   ;;  %s4392_s23 = smov 16  }
  0xc3   :  { %162 = dma.hbm_to_vmem [thread:$0]  %s5261_s19, 4096, %s157_s3, [#allocation15], %s4391_s13, %s4391_s13, %s4392_s23  }
  0xc4   :  { %s4393_s11 = smov [#allocation17]   ;;  %s4318_s0 = scalar_lea.hbm %s5263_s21, 4096 }
  0xc5   :  { %s170_s4 = sshll.u32 %s4393_s11, 4  ;;  %p4319_p2 = scmp.ne.s32.totalorder %s5263_s21, %s4318_s0  ;;  %s171_s4 = int_to_ptr.vmem [resolvable:$true] %s170_s4 }
  0xc6   :  { %p4322_p3 = scmp.lt.u32.totalorder %s4318_s0, %s5263_s21 }
  0xc8   :  { %p4324_p4 = pnand %p4322_p3, %p4319_p2 }
  0xca   :  { %4327 = shalt.err (!%p4324_p4)
}
  0xcb   :  { %s4328_s22 = scalar_lea.vmem %s171_s4, 4096  ;;  %p4333_p6 = scmp.lt.s32.totalorder %s171_s4, %s171_s4 }
  0xcc   :  { %p4329_p5 = scmp.ne.s32.totalorder %s171_s4, %s4328_s22  ;;  %p4334_p7 = scmp.lt.s32.totalorder %s4328_s22, %s4328_s22 }
  0xce   :  { %p4335_p8 = por %p4334_p7, %p4333_p6 }
  0xd0   :  { %p4336_p9 = pnand %p4335_p8, %p4329_p5 }
  0xd2   :  { %4339 = shalt.err (!%p4336_p9)
}
  0xd3   :  { %176 = dma.hbm_to_vmem [thread:$0]  %s5263_s21, 4096, %s171_s4, [#allocation18], %s5295_s26, %s5295_s26, %s4385_s30  }
  0xd4   :  { %4362 = dma.done.wait [#allocation3], 256  }
  0xd5   :  { %4363 = vsyncadd [#allocation3], 4294967040 }
  0xd6   :  { %4364 = dma.done.wait [#allocation6], 640  }
  0xd7   :  { %4365 = vsyncadd [#allocation6], 4294966656 }
  0xd8   :  { %4366 = dma.done.wait [#allocation9], 4096  }
  0xd9   :  { %4367 = vsyncadd [#allocation9], 4294963200 }
  0xda   :  { %4368 = dma.done.wait [#allocation12], 3072  }
  0xdb   :  { %4369 = vsyncadd [#allocation12], 4294964224 }
  0xdc   :  { %4370 = dma.done.wait [#allocation15], 5120  }
  0xdd   :  { %4371 = vsyncadd [#allocation15], 4294962176 }
  0xde   :  { %4372 = dma.done.wait [#allocation18], 4096  }
  0xdf   :  { %4373 = vsyncadd [#allocation18], 4294963200  ;;  %v210_v0 = vld [vmem:[#allocation2] sm:$0xff]  ;;  %v211_v1 = vld [vmem:[#allocation2 + $0x8] sm:$0xff]  ;;  %v4394_v4 = vmov 0.0   ;;  %v4395_v30 = vmov 0   ;;  %v216_v53 = vlaneseq }
  0xe0   :  { %249 = vadd.xlane.f32.xlu0 %v210_v0  ;;  %v3850_v2 = vld [vmem:[#allocation8 + $0x4] ss:$12 sps:$4 sm:$0xff]   ;;  %v3852_v3 = vld [vmem:[#allocation8] ss:$12 sps:$4 sm:$0xff]   ;;  %3482 = vmatprep.subr.bf16.mxu1 %v4394_v4  ;;  %v3853_v5 = vld [vmem:[#allocation8 + $0x8] ss:$12 sps:$4 sm:$0xff]  }
  0xe1   :  { %v3854_v6 = vld [vmem:[#allocation8 + $0x1c] ss:$12 sps:$4 sm:$0xff]   ;;  %466 = vmatprep.subr.bf16.mxu0 %v3850_v2  ;;  %3483 = vmatpush3.bf16.msra.mxu1 %v3853_v5  ;;  %v3856_v15 = vld [vmem:[#allocation8 + $0x18] ss:$12 sps:$4 sm:$0xff]   ;;  %v3857_v16 = vld [vmem:[#allocation8 + $0x20] ss:$12 sps:$4 sm:$0xff]  }
  0xe2   :  { %467 = vmatpush1.bf16.msra.mxu0 %v3852_v3  ;;  %3484 = vmatprep.subr.bf16.mxu1 %v4394_v4  ;;  %v3858_v17 = vld [vmem:[#allocation8 + $0x34] ss:$12 sps:$4 sm:$0xff]   ;;  %v3860_v18 = vld [vmem:[#allocation8 + $0x30] ss:$12 sps:$4 sm:$0xff]   ;;  %v3861_v19 = vld [vmem:[#allocation8 + $0x38] ss:$12 sps:$4 sm:$0xff]  }
  0xe3   :  { %468 = vmatprep.subr.bf16.mxu0 %v3854_v6  ;;  %v3862_v20 = vld [vmem:[#allocation8 + $0x4c] ss:$12 sps:$4 sm:$0xff]   ;;  %v3864_v21 = vld [vmem:[#allocation8 + $0x48] ss:$12 sps:$4 sm:$0xff]   ;;  %v3865_v22 = vld [vmem:[#allocation8 + $0x50] ss:$12 sps:$4 sm:$0xff]   ;;  %498 = vmatprep.mubr.bf16.mxu0 %v4395_v30 }
  0xe4   :  { %251 = vadd.xlane.f32.xlu0 %v211_v1  ;;  %v3866_v23 = vld [vmem:[#allocation8 + $0x64] ss:$12 sps:$4 sm:$0xff]   ;;  %v3868_v24 = vld [vmem:[#allocation8 + $0x60] ss:$12 sps:$4 sm:$0xff]   ;;  %v3869_v25 = vld [vmem:[#allocation8 + $0x68] ss:$12 sps:$4 sm:$0xff]  }
  0xe5   :  { %3485 = vmatpush3.bf16.msra.mxu1 %v3857_v16  ;;  %v3870_v26 = vld [vmem:[#allocation8 + $0x7c] ss:$12 sps:$4 sm:$0xff]   ;;  %v3872_v27 = vld [vmem:[#allocation8 + $0x78] ss:$12 sps:$4 sm:$0xff]   ;;  %v3873_v28 = vld [vmem:[#allocation8 + $0x80] ss:$12 sps:$4 sm:$0xff]  }
  0xe6   :  { %469 = vmatpush1.bf16.msra.mxu0 %v3856_v15  ;;  %3486 = vmatprep.subr.bf16.mxu1 %v4394_v4  ;;  %v3874_v29 = vld [vmem:[#allocation8 + $0x94] ss:$12 sps:$4 sm:$0xff]   ;;  %vm4396_vm0 = vmmov 0   ;;  %v3876_v31 = vld [vmem:[#allocation8 + $0x90] ss:$12 sps:$4 sm:$0xff]   ;;  %s5296_s24 = sld [smem:[#allocation30_spill]] }
  0xe7   :  { %470 = vmatprep.subr.bf16.mxu0 %v3858_v17  ;;  %3498 = vmatprep.mubr.msk.bf16.mxu1 %vm4396_vm0, %v4394_v4  ;;  %v3877_v32 = vld [vmem:[#allocation8 + $0x98] ss:$12 sps:$4 sm:$0xff]   ;;  %v3880_v34 = vld [vmem:[#allocation8 + $0xa8] ss:$12 sps:$4 sm:$0xff]   ;;  %v3881_v35 = vld [vmem:[#allocation8 + $0xb0] ss:$12 sps:$4 sm:$0xff]  }
  0xe8   :  { %v3878_v33 = vld [vmem:[#allocation8 + $0xac] ss:$12 sps:$4 sm:$0xff]   ;;  %s5297_s5 = sld [smem:[#allocation31_spill]]  ;;  %v4718_v54 = vshrl.u32 %v216_v53, 7  ;;  %s5298_s4 = sld [smem:[#allocation33_spill]]  ;;  %vm618_vm1 = vcmask 261120  }
  0xe9   :  { %3487 = vmatpush3.bf16.msra.mxu1 %v3861_v19  ;;  %s4397_s7 = smov 96   ;;  %s4398_s29 = smov 32   ;;  %vm237_vm2 = vcmask 64512   ;;  %vm807_vm5 = vcmask 130048   ;;  %vm1106_vm6 = vcmask 523264   ;;  %vm1109_vm7 = vcmask 785408  }
  0xea   :  { %471 = vmatpush1.bf16.msra.mxu0 %v3860_v18  ;;  %3488 = vmatprep.subr.bf16.mxu1 %v4394_v4  ;;  %v4721_v55 = vsub.s32 0, %v4718_v54  ;;  %v333_v56 = vsub.s32 2, %v4718_v54  ;;  %v4728_v58 = vsub.s32 1, %v4718_v54  ;;  %s4401_s13 = smov [#allocation19]  }
  0xeb   :  { %472 = vmatprep.subr.bf16.mxu0 %v3862_v20  ;;  %v232_v20 = vld [vmem:[#allocation7] sm:$0xff]  ;;  %s3191_s23 = sshll.u32 %s4401_s13, 4  ;;  %s3192_s23 = int_to_ptr.vmem [resolvable:$true] %s3191_s23 }
  0xec   :  { %v3208_v44 = vld [vmem:[%s5296_s24] ss:$0 sm:$0xff]  ;;  %s5299_s24 = sld [smem:[#allocation35_spill]]  ;;  %p4345_p11 = scmp.lt.s32.totalorder %s3192_s23, %s3192_s23 }
  0xed   :  { %3489 = vmatpush3.bf16.msra.mxu1 %v3865_v22 }
  0xee   :  { %473 = vmatpush1.bf16.msra.mxu0 %v3864_v21  ;;  %3490 = vmatprep.subr.bf16.mxu1 %v4394_v4  ;;  %v3209_v48 = vld [vmem:[%s5297_s5] ss:$0 sm:$0xff]  ;;  %s4340_s5 = scalar_lea.vmem %s3192_s23, 256 }
  0xef   :  { %474 = vmatprep.subr.bf16.mxu0 %v3866_v23  ;;  %v321_v57 = vld [vmem:[%s5298_s4] sm:$0x7]  ;;  %p4341_p10 = scmp.ne.s32.totalorder %s3192_s23, %s4340_s5  ;;  %p4346_p12 = scmp.lt.s32.totalorder %s4340_s5, %s4340_s5 }
  0xf0   :  { %v326_v59 = vrot.slane %v321_v57, %v4721_v55  ;;  %v334_v60 = vrot.slane %v321_v57, %v333_v56  ;;  %v330_v63 = vrot.slane %v321_v57, %v4728_v58 }
  0xf1   :  { %3491 = vmatpush3.bf16.msra.mxu1 %v3869_v25  ;;  %p4347_p13 = por %p4346_p12, %p4345_p11 }
  0xf2   :  { %475 = vmatpush1.bf16.msra.mxu0 %v3868_v24  ;;  %3492 = vmatprep.subr.bf16.mxu1 %v4394_v4 }
  0xf3   :  { %476 = vmatprep.subr.bf16.mxu0 %v3870_v26  ;;  %p4348_p0 = pnand %p4347_p13, %p4341_p10 }
  0xf5   :  { %3493 = vmatpush3.bf16.msra.mxu1 %v3873_v28 }
  0xf6   :  { %477 = vmatpush1.bf16.msra.mxu0 %v3872_v27  ;;  %3494 = vmatprep.subr.bf16.mxu1 %v4394_v4 }
  0xf7   :  { %478 = vmatprep.subr.bf16.mxu0 %v3874_v29 }
  0xf9   :  { %3495 = vmatpush3.bf16.msra.mxu1 %v3877_v32 }
  0xfa   :  { %479 = vmatpush1.bf16.msra.mxu0 %v3876_v31  ;;  %3496 = vmatprep.subr.bf16.mxu1 %v4394_v4 }
  0xfb   :  { %480 = vmatprep.subr.bf16.mxu0 %v3878_v33 }
  0xfd   :  { %3497 = vmatpush3.bf16.msra.mxu1 %v3881_v35 }
  0xfe   :  { %481 = vmatpush1.bf16.msra.mxu0 %v3880_v34  ;;  %3502 = vmatprep.subr.bf16.mxu1 %v4394_v4 }
  0xff   :  { %3526 = vmatprep.subr.bf16.mxu0 %v4394_v4 }
 0x16d   :  { %v250_v7 = vpop.xlane.xlu0 %249 }
 0x16e   :  { %v254_v8 = vmul.f32 0.0078125, %v250_v7 }
 0x170   :  { %v4686_v9 = vsub.f32 %v210_v0, %v254_v8 }
 0x171   :  { %v252_v10 = vpop.xlane.xlu0 %251 }
 0x172   :  { %v255_v11 = vmul.f32 0.0078125, %v252_v10  ;;  %v258_v12 = vmul.f32 %v4686_v9, %v4686_v9 }
 0x174   :  { %v4690_v13 = vsub.f32 %v211_v1, %v255_v11  ;;  %260 = vadd.xlane.f32.xlu1 %v258_v12 }
 0x176   :  { %v259_v14 = vmul.f32 %v4690_v13, %v4690_v13 }
 0x178   :  { %262 = vadd.xlane.f32.xlu1 %v259_v14 }
 0x201   :  { %v261_v36 = vpop.xlane.xlu1 %260 }
 0x202   :  { %v264_v37 = vmul.f32 0.0078125, %v261_v36 }
 0x204   :  { %v266_v38 = vadd.f32 1e-05, %v264_v37 }
 0x205   :  { %v263_v39 = vpop.xlane.xlu1 %262 }
 0x206   :  { %4010 = vrsqrt.f32 %v266_v38  ;;  %v265_v40 = vmul.f32 0.0078125, %v263_v39 }
 0x208   :  { %v267_v41 = vadd.f32 1e-05, %v265_v40 }
 0x20a   :  { %4012 = vrsqrt.f32 %v267_v41 }
 0x210   :  { %v4011_v42 = vpop.eup %4010 }
 0x211   :  { %v270_v43 = vmul.f32 %v4011_v42, %v4686_v9 }
 0x213   :  { %v278_v47 = vmul.f32 %v3208_v44, %v270_v43 }
 0x214   :  { %v4013_v45 = vpop.eup %4012 }
 0x215   :  { %v271_v46 = vmul.f32 %v4013_v45, %v4690_v13  ;;  %v286_v50 = vadd.f32 %v3209_v48, %v278_v47 }
 0x217   :  { %v279_v49 = vmul.f32 %v3208_v44, %v271_v46 }
 0x219   :  { %v287_v51 = vadd.f32 %v3209_v48, %v279_v49  ;;  %v4765_v49 = vand.u32 127, %v216_v53 }
 0x21b   :  { %v288_v52 = vpack.c.bf16 %v287_v51, %v286_v50  ;;  %v218_v50 = vadd.s32 8, %v4718_v54  ;;  %v219_v51 = vcvt.s32.f32 %v4718_v54 }
 0x21d   :  { %499 = vmatmul.mubr.bf16.vlgmr.msra.gmra.mrb[0].mxu0 %v288_v52  ;;  %3499 = vmatmul.mubr.bf16.vlgmr.msra.gmra.mrb[0].mxu1 %v288_v52  ;;  %v223_v52 = vcvt.s32.f32 %v4765_v49  ;;  %v220_v57 = vcvt.s32.f32 %v218_v50 }
 0x21e   :  { %3504 = vmatprep.mubr.msk.bf16.mxu1 %vm4396_vm0, %v4394_v4  ;;  %3528 = vmatprep.mubr.msk.bf16.mxu0 %vm4396_vm0, %v4394_v4 }
 0x2f0   :  { %v500_v61 = vpop.f32.mrb[0].mxu0  ;;  %v543_v62 = vpop.f32.mrb[0].mxu1 }
 0x2f1   :  { %v502_v0 = vpop.f32.mrb[1].mxu0  ;;  %v3500_v1 = vpop.f32.mrb[1].mxu1  ;;  %v501_v5 = vadd.f32 %v500_v61, %v326_v59  ;;  %v544_v6 = vadd.f32 %v543_v62, %v334_v60  ;;  %v4774_v61 = vmul.f32 0.125, %v220_v57 }
 0x2f2   :  { %v504_v2 = vpop.f32.mrb[2].mxu0  ;;  %v546_v3 = vpop.f32.mrb[2].mxu1  ;;  %v503_v11 = vadd.f32 %v502_v0, %v330_v63 }
 0x2f3   :  { %v505_v7 = vadd.f32 %v504_v2, %v326_v59  ;;  %v547_v8 = vadd.f32 %v546_v3, %v334_v60  ;;  %v506_v9 = vpop.f32.mrb[3].mxu0  ;;  %v3501_v10 = vpop.f32.mrb[3].mxu1  ;;  %v4770_v59 = vmul.f32 0.125, %v219_v51  ;;  %v228_v60 = vmul.f32 0.125, %v223_v52 }
 0x2f4   :  { %v507_v12 = vadd.f32 %v506_v9, %v330_v63  ;;  %v227_v0 = vfloor.f32 %v4774_v61 }
 0x2f5   :  { %v610_v13 = vpack.c.bf16 %v505_v7, %v501_v5  ;;  %v900_v14 = vpack.c.bf16 %v547_v8, %v544_v6  ;;  %v3705_v15 = vpack.i.bf16 %v505_v7, %v501_v5  ;;  %v4735_v18 = vpack.i.bf16 %v547_v8, %v544_v6 }
 0x2f6   :  { %v3700_v16 = vpack.i.bf16 %v507_v12, %v503_v11  ;;  %v614_v17 = vpack.c.bf16 %v507_v12, %v503_v11  ;;  %v226_v62 = vfloor.f32 %v4770_v59  ;;  %v229_v63 = vfloor.f32 %v228_v60 }
 0x2f7   :  { %3527 = vmatpush3.bf16.msra.mxu0 %v900_v14  ;;  %3706 = vrot.lane.b32.xlu1 %v3705_v15, %s4397_s7 }
 0x2f8   :  { %3701 = vrot.lane.b32.xlu0 %v3700_v16, %s4397_s7  ;;  %v623_v19 = vsel %vm618_vm1, %v614_v17, 0  ;;  %3538 = vmatprep.subr.bf16.mxu0 %v4394_v4  ;;  %vm230_vm3 = vcmp.eq.f32.partialorder %v226_v62, %v229_v63  ;;  %vm231_vm4 = vcmp.eq.f32.partialorder %v227_v0, %v229_v63 }
 0x2f9   :  { %3503 = vmatpush3.bf16.xpose.msra.mxu1 %v623_v19 }
 0x2fa   :  { %3508 = vmatprep.subr.bf16.mxu1 %v4394_v4 }
 0x2fb   :  { %3711 = vrot.lane.b32.xlu1 %v3700_v16, %s5295_s26 }
 0x2fc   :  { %3721 = vrot.lane.b32.xlu0 %v3700_v16, %s4398_s29 }
 0x2ff   :  { %3716 = vrot.lane.b32.xlu1 %v3705_v15, %s5295_s26 }
 0x300   :  { %3505 = vmatmul.mubr.msk.bf16.vlgmr.msra.gmra.mrb[4].mxu1 %vm618_vm1, %v610_v13  ;;  %234 = vrot.lane.b32.xlu0 %v232_v20, %s5291_s27 }
 0x301   :  { %3510 = vmatprep.mubr.msk.bf16.mxu1 %vm4396_vm0, %v4394_v4 }
 0x303   :  { %3726 = vrot.lane.b32.xlu1 %v3705_v15, %s4398_s29 }
 0x369   :  { %v3707_v21 = vpop.permute.xlu1 %3706 }
 0x36a   :  { %v3702_v22 = vpop.permute.xlu0 %3701  ;;  %v3709_v31 = vunpack.i.h.bf16 %v3707_v21  ;;  %v3708_v32 = vunpack.i.l.bf16 %v3707_v21 }
 0x36b   :  { %v3704_v23 = vunpack.i.h.bf16 %v3702_v22  ;;  %v3703_v24 = vunpack.i.l.bf16 %v3702_v22 }
 0x36c   :  { %v611_v35 = vpack.c.bf16 %v3709_v31, %v3708_v32 }
 0x36d   :  { %v615_v25 = vpack.c.bf16 %v3704_v23, %v3703_v24  ;;  %v3712_v26 = vpop.permute.xlu1 %3711 }
 0x36e   :  { %v3714_v27 = vunpack.i.h.bf16 %v3712_v26  ;;  %v3713_v28 = vunpack.i.l.bf16 %v3712_v26  ;;  %v3722_v34 = vpop.permute.xlu0 %3721 }
 0x36f   :  { %v670_v29 = vsel %vm618_vm1, %v615_v25, 0  ;;  %v3724_v37 = vunpack.i.h.bf16 %v3722_v34  ;;  %v3723_v38 = vunpack.i.l.bf16 %v3722_v34 }
 0x370   :  { %3509 = vmatpush3.bf16.xpose.msra.mxu1 %v670_v29  ;;  %v616_v33 = vpack.c.bf16 %v3714_v27, %v3713_v28 }
 0x371   :  { %3514 = vmatprep.subr.bf16.mxu1 %v4394_v4  ;;  %v3717_v36 = vpop.permute.xlu1 %3716  ;;  %v617_v42 = vpack.c.bf16 %v3724_v37, %v3723_v38 }
 0x372   :  { %v717_v39 = vsel %vm618_vm1, %v616_v33, 0  ;;  %v3719_v40 = vunpack.i.h.bf16 %v3717_v36  ;;  %v3718_v41 = vunpack.i.l.bf16 %v3717_v36  ;;  %v235_v53 = vpop.permute.xlu0 %234 }
 0x373   :  { %v764_v45 = vsel %vm618_vm1, %v617_v42, 0  ;;  %v238_v1 = vsel %vm237_vm2, %v232_v20, %v235_v53 }
 0x374   :  { %v612_v43 = vpack.c.bf16 %v3719_v40, %v3718_v41  ;;  %v239_v2 = vsel %vm230_vm3, %v238_v1, -1e+09  ;;  %v240_v3 = vsel %vm231_vm4, %v238_v1, -1e+09 }
 0x375   :  { %v3727_v44 = vpop.permute.xlu1 %3726 }
 0x376   :  { %v3729_v46 = vunpack.i.h.bf16 %v3727_v44  ;;  %v3728_v47 = vunpack.i.l.bf16 %v3727_v44 }
 0x377   :  { %3511 = vmatmul.mubr.msk.bf16.vlgmr.msra.gmra.mrb[8].mxu1 %vm618_vm1, %v611_v35 }
 0x378   :  { %3515 = vmatpush3.bf16.xpose.msra.mxu1 %v717_v39  ;;  %3516 = vmatprep.mubr.msk.bf16.mxu1 %vm4396_vm0, %v4394_v4  ;;  %v613_v48 = vpack.c.bf16 %v3729_v46, %v3728_v47 }
 0x379   :  { %3520 = vmatprep.subr.bf16.mxu1 %v4394_v4 }
 0x37f   :  { %3517 = vmatmul.mubr.msk.bf16.vlgmr.msra.gmra.mrb[12].mxu1 %vm618_vm1, %v612_v43 }
 0x380   :  { %3521 = vmatpush3.bf16.xpose.msra.mxu1 %v764_v45  ;;  %3522 = vmatprep.mubr.msk.bf16.mxu1 %vm4396_vm0, %v4394_v4 }
 0x381   :  { %3532 = vmatprep.subr.bf16.mxu1 %v4394_v4 }
 0x387   :  { %3523 = vmatmul.mubr.msk.bf16.vlgmr.msra.gmra.mrb[16].mxu1 %vm618_vm1, %v613_v48 }
 0x388   :  { %3534 = vmatprep.mubr.msk.bf16.mxu1 %vm4396_vm0, %v4394_v4 }
 0x3d3   :  { %v659_v5 = vpop.f32.mrb[4].mxu1 }
 0x3d4   :  { %v660_v6 = vadd.f32 %v659_v5, %v239_v2  ;;  %v3506_v7 = vpop.f32.mrb[5].mxu1 }
 0x3d5   :  { %v662_v8 = vpop.f32.mrb[6].mxu1 }
 0x3d6   :  { %v663_v9 = vadd.f32 %v662_v8, %v240_v3  ;;  %v3507_v10 = vpop.f32.mrb[7].mxu1  ;;  %v808_v11 = vsel %vm807_vm5, %v660_v6, -inf }
 0x3d7   :  { %809 = vmax.xlane.f32.xlu1 %v808_v11 }
 0x3d8   :  { %v811_v12 = vsel %vm807_vm5, %v663_v9, -inf }
 0x3d9   :  { %812 = vmax.xlane.f32.xlu0 %v811_v12 }
 0x44a   :  { %v706_v13 = vpop.f32.mrb[8].mxu1 }
 0x44b   :  { %v707_v14 = vadd.f32 %v706_v13, %v239_v2  ;;  %v3512_v15 = vpop.f32.mrb[9].mxu1 }
 0x44c   :  { %v709_v16 = vpop.f32.mrb[10].mxu1 }
 0x44d   :  { %v710_v17 = vadd.f32 %v709_v16, %v240_v3  ;;  %v3513_v19 = vpop.f32.mrb[11].mxu1  ;;  %v814_v20 = vsel %vm807_vm5, %v707_v14, -inf }
 0x44e   :  { %815 = vmax.xlane.f32.xlu0 %v814_v20 }
 0x44f   :  { %v817_v21 = vsel %vm807_vm5, %v710_v17, -inf }
 0x452   :  { %818 = vmax.xlane.f32.xlu0 %v817_v21  ;;  %v753_v22 = vpop.f32.mrb[12].mxu1 }
 0x453   :  { %v754_v23 = vadd.f32 %v753_v22, %v239_v2  ;;  %v3518_v24 = vpop.f32.mrb[13].mxu1 }
 0x454   :  { %v756_v25 = vpop.f32.mrb[14].mxu1 }
 0x455   :  { %v757_v26 = vadd.f32 %v756_v25, %v240_v3  ;;  %v3519_v27 = vpop.f32.mrb[15].mxu1  ;;  %v820_v28 = vsel %vm807_vm5, %v754_v23, -inf }
 0x456   :  { %821 = vmax.xlane.f32.xlu1 %v820_v28 }
 0x457   :  { %v823_v29 = vsel %vm807_vm5, %v757_v26, -inf }
 0x458   :  { %824 = vmax.xlane.f32.xlu0 %v823_v29 }
 0x45a   :  { %v800_v31 = vpop.f32.mrb[16].mxu1 }
 0x45b   :  { %v801_v32 = vadd.f32 %v800_v31, %v239_v2  ;;  %v3524_v33 = vpop.f32.mrb[17].mxu1 }
 0x45c   :  { %v803_v34 = vpop.f32.mrb[18].mxu1 }
 0x45d   :  { %v804_v35 = vadd.f32 %v803_v34, %v240_v3  ;;  %v3525_v36 = vpop.f32.mrb[19].mxu1  ;;  %v826_v37 = vsel %vm807_vm5, %v801_v32, -inf }
 0x45e   :  { %827 = vmax.xlane.f32.xlu1 %v826_v37 }
 0x45f   :  { %v829_v38 = vsel %vm807_vm5, %v804_v35, -inf }
 0x460   :  { %830 = vmax.xlane.f32.xlu0 %v829_v38 }
 0x464   :  { %v810_v44 = vpop.xlane.xlu1 %809 }
 0x465   :  { %v832_v45 = vsub.f32 %v660_v6, %v810_v44 }
 0x466   :  { %v813_v39 = vpop.xlane.xlu0 %812 }
 0x467   :  { %v833_v40 = vsub.f32 %v663_v9, %v813_v39  ;;  %v840_v46 = vmul.f32 1.442695, %v832_v45 }
 0x469   :  { %v842_v41 = vmul.f32 1.442695, %v833_v40 }
 0x46b   :  { %4014 = vpow2.f32 %v842_v41 }
 0x46c   :  { %4016 = vpow2.f32 %v840_v46 }
 0x46f   :  { %3731 = vrot.lane.b32.xlu1 %v4735_v18, %s4397_s7 }
 0x475   :  { %v4792_v42 = vpop.eup %4014 }
 0x476   :  { %v859_v43 = vsel %vm807_vm5, %v4792_v42, 0.0  ;;  %v4017_v47 = vpop.eup %4016 }
 0x477   :  { %860 = vadd.xlane.f32.xlu0 %v859_v43  ;;  %v856_v48 = vsel %vm807_vm5, %v4017_v47, 0.0 }
 0x493   :  { %857 = vadd.xlane.f32.xlu1 %v856_v48 }
 0x4db   :  { %v816_v50 = vpop.xlane.xlu0 %815 }
 0x4dc   :  { %v834_v51 = vsub.f32 %v707_v14, %v816_v50 }
 0x4de   :  { %v844_v57 = vmul.f32 1.442695, %v834_v51 }
 0x4df   :  { %v819_v60 = vpop.xlane.xlu0 %818 }
 0x4e0   :  { %4018 = vpow2.f32 %v844_v57  ;;  %v835_v63 = vsub.f32 %v710_v17, %v819_v60 }
 0x4e2   :  { %v846_v53 = vmul.f32 1.442695, %v835_v63 }
 0x4e3   :  { %v822_v1 = vpop.xlane.xlu1 %821 }
 0x4e4   :  { %4020 = vpow2.f32 %v846_v53  ;;  %v836_v2 = vsub.f32 %v754_v23, %v822_v1 }
 0x4e5   :  { %v825_v3 = vpop.xlane.xlu0 %824 }
 0x4e6   :  { %v848_v5 = vmul.f32 1.442695, %v836_v2  ;;  %v837_v7 = vsub.f32 %v757_v26, %v825_v3 }
 0x4e8   :  { %4022 = vpow2.f32 %v848_v5  ;;  %v850_v6 = vmul.f32 1.442695, %v837_v7 }
 0x4ea   :  { %v4019_v8 = vpop.eup %4018  ;;  %4024 = vpow2.f32 %v850_v6 }
 0x4eb   :  { %v828_v9 = vpop.xlane.xlu1 %827  ;;  %v862_v10 = vsel %vm807_vm5, %v4019_v8, 0.0 }
 0x4ec   :  { %v838_v11 = vsub.f32 %v801_v32, %v828_v9  ;;  %863 = vadd.xlane.f32.xlu1 %v862_v10 }
 0x4ed   :  { %v831_v12 = vpop.xlane.xlu0 %830 }
 0x4ee   :  { %v4021_v13 = vpop.eup %4020  ;;  %v852_v14 = vmul.f32 1.442695, %v838_v11  ;;  %v839_v15 = vsub.f32 %v804_v35, %v831_v12 }
 0x4ef   :  { %v3732_v16 = vpop.permute.xlu1 %3731  ;;  %v865_v17 = vsel %vm807_vm5, %v4021_v13, 0.0 }
 0x4f0   :  { %4026 = vpow2.f32 %v852_v14  ;;  %v854_v19 = vmul.f32 1.442695, %v839_v15  ;;  %v3734_v20 = vunpack.i.h.bf16 %v3732_v16  ;;  %v3733_v21 = vunpack.i.l.bf16 %v3732_v16  ;;  %866 = vadd.xlane.f32.xlu0 %v865_v17  ;;  %v3882_v14 = vld [vmem:[#allocation10] sm:$0xff]   ;;  %v3883_v15 = vld [vmem:[#allocation10 + $0x8] sm:$0xff]   ;;  %v3884_v16 = vld [vmem:[#allocation10 + $0x10] sm:$0xff]  }
 0x4f2   :  { %v4023_v22 = vpop.eup %4022  ;;  %4028 = vpow2.f32 %v854_v19  ;;  %v901_v23 = vpack.c.bf16 %v3734_v20, %v3733_v21 }
 0x4f3   :  { %v868_v24 = vsel %vm807_vm5, %v4023_v22, 0.0 }
 0x4f4   :  { %v4025_v25 = vpop.eup %4024  ;;  %869 = vadd.xlane.f32.xlu1 %v868_v24  ;;  %3533 = vmatpush3.bf16.msra.mxu1 %v901_v23  ;;  %v3886_v23 = vld [vmem:[#allocation10 + $0x20] sm:$0xff]   ;;  %v3887_v24 = vld [vmem:[#allocation10 + $0x28] sm:$0xff]  }
 0x4f5   :  { %v871_v26 = vsel %vm807_vm5, %v4025_v25, 0.0  ;;  %3544 = vmatprep.subr.bf16.mxu1 %v4394_v4 }
 0x4f6   :  { %872 = vadd.xlane.f32.xlu0 %v871_v26 }
 0x4fa   :  { %v4027_v27 = vpop.eup %4026 }
 0x4fb   :  { %v874_v28 = vsel %vm807_vm5, %v4027_v27, 0.0 }
 0x4fc   :  { %v4029_v29 = vpop.eup %4028  ;;  %875 = vadd.xlane.f32.xlu1 %v874_v28 }
 0x4fd   :  { %v877_v31 = vsel %vm807_vm5, %v4029_v29, 0.0 }
 0x4fe   :  { %878 = vadd.xlane.f32.xlu0 %v877_v31  ;;  %v3888_v31 = vld [vmem:[#allocation10 + $0x30] sm:$0xff]  }
 0x504   :  { %v861_v32 = vpop.xlane.xlu0 %860 }
 0x505   :  { %4030 = vrcp.f32 %v861_v32  ;;  %v3889_v32 = vld [vmem:[#allocation10 + $0x38] sm:$0xff]  }
 0x50d   :  { %3741 = vrot.lane.b32.xlu1 %v4735_v18, %s4398_s29 }
 0x50f   :  { %v4031_v34 = vpop.eup %4030 }
 0x510   :  { %v883_v36 = vmul.f32 %v4031_v34, %v4792_v42 }
 0x514   :  { %3736 = vrot.lane.b32.xlu0 %v4735_v18, %s5295_s26 }
 0x520   :  { %v858_v33 = vpop.xlane.xlu1 %857 }
 0x521   :  { %4032 = vrcp.f32 %v858_v33 }
 0x52b   :  { %v4033_v35 = vpop.eup %4032 }
 0x52c   :  { %v881_v37 = vmul.f32 %v4033_v35, %v4017_v47 }
 0x52e   :  { %v896_v38 = vpack.c.bf16 %v883_v36, %v881_v37 }
 0x530   :  { %3529 = vmatmul.mubr.msk.bf16.vlgmr.msra.gmra.mrb[4].mxu0 %vm807_vm5, %v896_v38 }
 0x531   :  { %3540 = vmatprep.mubr.msk.bf16.mxu0 %vm4396_vm0, %v4394_v4 }
 0x579   :  { %v864_v39 = vpop.xlane.xlu1 %863 }
 0x57a   :  { %4034 = vrcp.f32 %v864_v39 }
 0x57d   :  { %v867_v40 = vpop.xlane.xlu0 %866 }
 0x57e   :  { %4036 = vrcp.f32 %v867_v40 }
 0x581   :  { %v870_v18 = vpop.xlane.xlu1 %869 }
 0x583   :  { %v873_v41 = vpop.xlane.xlu0 %872 }
 0x584   :  { %4038 = vrcp.f32 %v873_v41  ;;  %v4035_v43 = vpop.eup %4034 }
 0x585   :  { %4040 = vrcp.f32 %v870_v18  ;;  %v885_v45 = vmul.f32 %v4035_v43, %v4019_v8 }
 0x588   :  { %v4037_v44 = vpop.eup %4036 }
 0x589   :  { %v887_v46 = vmul.f32 %v4037_v44, %v4021_v13  ;;  %v876_v42 = vpop.xlane.xlu1 %875 }
 0x58a   :  { %4042 = vrcp.f32 %v876_v42 }
 0x58b   :  { %v879_v47 = vpop.xlane.xlu0 %878  ;;  %v897_v48 = vpack.c.bf16 %v887_v46, %v885_v45 }
 0x58c   :  { %4044 = vrcp.f32 %v879_v47 }
 0x58d   :  { %v3742_v50 = vpop.permute.xlu1 %3741  ;;  %3535 = vmatmul.mubr.msk.bf16.vlgmr.msra.gmra.mrb[20].mxu1 %vm807_vm5, %v897_v48 }
 0x58e   :  { %v4039_v51 = vpop.eup %4038  ;;  %v3744_v57 = vunpack.i.h.bf16 %v3742_v50  ;;  %v3743_v60 = vunpack.i.l.bf16 %v3742_v50  ;;  %3546 = vmatprep.mubr.msk.bf16.mxu1 %vm4396_vm0, %v4394_v4 }
 0x58f   :  { %v3737_v63 = vpop.permute.xlu0 %3736  ;;  %v4041_v53 = vpop.eup %4040  ;;  %v891_v5 = vmul.f32 %v4039_v51, %v4025_v25 }
 0x590   :  { %v903_v1 = vpack.c.bf16 %v3744_v57, %v3743_v60  ;;  %v3739_v2 = vunpack.i.h.bf16 %v3737_v63  ;;  %v3738_v3 = vunpack.i.l.bf16 %v3737_v63  ;;  %v889_v6 = vmul.f32 %v4041_v53, %v4023_v22  ;;  %v3885_v22 = vld [vmem:[#allocation10 + $0x18] sm:$0xff]  }
 0x592   :  { %v902_v7 = vpack.c.bf16 %v3739_v2, %v3738_v3  ;;  %3545 = vmatpush3.bf16.msra.mxu1 %v903_v1  ;;  %v898_v9 = vpack.c.bf16 %v891_v5, %v889_v6  ;;  %v3242_v5 = vld [vmem:[%s5250_s8] ss:$0 sm:$0xff] }
 0x593   :  { %3570 = vmatprep.subr.bf16.mxu1 %v4394_v4 }
 0x594   :  { %v4043_v8 = vpop.eup %4042  ;;  %3539 = vmatpush3.bf16.msra.mxu0 %v902_v7 }
 0x595   :  { %3550 = vmatprep.subr.bf16.mxu0 %v4394_v4  ;;  %v893_v11 = vmul.f32 %v4043_v8, %v4027_v27 }
 0x596   :  { %v4045_v10 = vpop.eup %4044 }
 0x597   :  { %v895_v12 = vmul.f32 %v4045_v10, %v4029_v29  ;;  %3541 = vmatmul.mubr.msk.bf16.vlgmr.msra.gmra.mrb[8].mxu0 %vm807_vm5, %v898_v9  ;;  %v4118_v10 = vld [vmem:[#allocation2] sm:$0xff] }
 0x598   :  { %3566 = vmatprep.mubr.msk.bf16.mxu0 %vm4396_vm0, %v4394_v4  ;;  %3551 = vmatpush3.bf16.msra.mxu0 %v3882_v14  ;;  %v4119_v14 = vld [vmem:[#allocation2 + $0x8] sm:$0xff] }
 0x599   :  { %v899_v13 = vpack.c.bf16 %v895_v12, %v893_v11  ;;  %3552 = vmatprep.subr.bf16.mxu0 %v4394_v4 }
 0x59b   :  { %3547 = vmatmul.mubr.msk.bf16.vlgmr.msra.gmra.mrb[24].mxu1 %vm807_vm5, %v899_v13 }
 0x59c   :  { %3586 = vmatprep.mubr.msk.bf16.mxu1 %vm4396_vm0, %v4394_v4  ;;  %3553 = vmatpush3.bf16.msra.mxu0 %v3883_v15 }
 0x59d   :  { %3554 = vmatprep.subr.bf16.mxu0 %v4394_v4 }
 0x5a0   :  { %3555 = vmatpush3.bf16.msra.mxu0 %v3884_v16  ;;  %v3890_v16 = vld [vmem:[#allocation13] ss:$8 sps:$4 sm:$0xff]  }
 0x5a1   :  { %3556 = vmatprep.subr.bf16.mxu0 %v4394_v4 }
 0x5a4   :  { %3557 = vmatpush3.bf16.msra.mxu0 %v3885_v22  ;;  %v3911_v22 = vld [vmem:[#allocation11] sm:$0xff]  }
 0x5a5   :  { %3558 = vmatprep.subr.bf16.mxu0 %v4394_v4  ;;  %3571 = vmatpush3.bf16.msra.mxu1 %v3911_v22  ;;  %v1398_v22 = vld [vmem:[%s5256_s14] sm:$0x3] }
 0x5a6   :  { %3572 = vmatprep.subr.bf16.mxu1 %v4394_v4 }
 0x5a8   :  { %3559 = vmatpush3.bf16.msra.mxu0 %v3886_v23  ;;  %v3896_v23 = vld [vmem:[#allocation13 + $0x20] ss:$8 sps:$4 sm:$0xff]  }
 0x5a9   :  { %3560 = vmatprep.subr.bf16.mxu0 %v4394_v4 }
 0x5ac   :  { %3561 = vmatpush3.bf16.msra.mxu0 %v3887_v24  ;;  %v3901_v24 = vld [vmem:[#allocation13 + $0x34] ss:$8 sps:$4 sm:$0xff]  }
 0x5ad   :  { %3562 = vmatprep.subr.bf16.mxu0 %v4394_v4 }
 0x5b0   :  { %3563 = vmatpush3.bf16.msra.mxu0 %v3888_v31  ;;  %v3910_v31 = vld [vmem:[#allocation13 + $0x64] ss:$8 sps:$4 sm:$0xff]  }
 0x5b1   :  { %3564 = vmatprep.subr.bf16.mxu0 %v4394_v4 }
 0x5b4   :  { %3565 = vmatpush3.bf16.msra.mxu0 %v3889_v32  ;;  %v3908_v32 = vld [vmem:[#allocation13 + $0x60] ss:$8 sps:$4 sm:$0xff]  }
 0x603   :  { %v941_v17 = vpop.f32.mrb[4].mxu0 }
 0x604   :  { %v3530_v19 = vpop.f32.mrb[5].mxu0 }
 0x605   :  { %v944_v20 = vpop.f32.mrb[6].mxu0  ;;  %v3895_v19 = vld [vmem:[#allocation13 + $0x14] ss:$8 sps:$4 sm:$0xff]  }
 0x606   :  { %v3531_v21 = vpop.f32.mrb[7].mxu0 }
 0x607   :  { %v3898_v21 = vld [vmem:[#allocation13 + $0x24] ss:$8 sps:$4 sm:$0xff]  }
 0x660   :  { %v985_v25 = vpop.f32.mrb[20].mxu1 }
 0x661   :  { %v3536_v26 = vpop.f32.mrb[21].mxu1 }
 0x662   :  { %v988_v27 = vpop.f32.mrb[22].mxu1  ;;  %v3904_v26 = vld [vmem:[#allocation13 + $0x44] ss:$8 sps:$4 sm:$0xff]  }
 0x663   :  { %v3745_v28 = vpack.i.bf16 %v988_v27, %v985_v25  ;;  %v3537_v29 = vpop.f32.mrb[23].mxu1  ;;  %v3899_v25 = vld [vmem:[#allocation13 + $0x30] ss:$8 sps:$4 sm:$0xff]   ;;  %v3902_v27 = vld [vmem:[#allocation13 + $0x40] ss:$8 sps:$4 sm:$0xff]  }
 0x664   :  { %v3905_v29 = vld [vmem:[#allocation13 + $0x50] ss:$8 sps:$4 sm:$0xff]  }
 0x665   :  { %3746 = vrot.lane.b32.xlu1 %v3745_v28, %s4398_s29  ;;  %v3907_v28 = vld [vmem:[#allocation13 + $0x54] ss:$8 sps:$4 sm:$0xff]  }
 0x66a   :  { %v1029_v33 = vpop.f32.mrb[8].mxu0 }
 0x66b   :  { %v3542_v34 = vpop.f32.mrb[9].mxu0 }
 0x66c   :  { %v1032_v35 = vpop.f32.mrb[10].mxu0  ;;  %v3912_v34 = vld [vmem:[#allocation13 + $0x70] ss:$8 sps:$4 sm:$0xff]  }
 0x66d   :  { %v3750_v36 = vpack.i.bf16 %v1032_v35, %v1029_v33  ;;  %v3543_v37 = vpop.f32.mrb[11].mxu0  ;;  %v3914_v33 = vld [vmem:[#allocation13 + $0x74] ss:$8 sps:$4 sm:$0xff]  }
 0x66e   :  { %v1073_v38 = vpop.f32.mrb[24].mxu1 }
 0x66f   :  { %3751 = vrot.lane.b32.xlu1 %v3750_v36, %s5295_s26  ;;  %v3548_v39 = vpop.f32.mrb[25].mxu1 }
 0x670   :  { %v1076_v40 = vpop.f32.mrb[26].mxu1 }
 0x671   :  { %v3755_v18 = vpack.i.bf16 %v1076_v40, %v1073_v38  ;;  %v3549_v41 = vpop.f32.mrb[27].mxu1 }
 0x673   :  { %3756 = vrot.lane.b32.xlu0 %v3755_v18, %s4397_s7 }
 0x6d7   :  { %v3747_v43 = vpop.permute.xlu1 %3746 }
 0x6d8   :  { %v3749_v45 = vunpack.i.h.bf16 %v3747_v43  ;;  %v3748_v46 = vunpack.i.l.bf16 %v3747_v43  ;;  %v212_v43 = vld [vmem:[#allocation5] sm:$0xff] }
 0x6da   :  { %v1105_v50 = vsel %vm618_vm1, %v944_v20, %v3749_v45  ;;  %v1104_v51 = vsel %vm618_vm1, %v941_v17, %v3748_v46  ;;  %v3892_v17 = vld [vmem:[#allocation13 + $0x4] ss:$8 sps:$4 sm:$0xff]   ;;  %v3893_v20 = vld [vmem:[#allocation13 + $0x10] ss:$8 sps:$4 sm:$0xff]  }
 0x6db   :  { %1490 = vmatprep.subr.bf16.mxu0 %v3892_v17  ;;  %v3915_v45 = vld [vmem:[#allocation11 + $0x8] sm:$0xff]  }
 0x6dc   :  { %3573 = vmatpush3.bf16.msra.mxu1 %v3915_v45 }
 0x6dd   :  { %3574 = vmatprep.subr.bf16.mxu1 %v4394_v4 }
 0x6e1   :  { %v3752_v44 = vpop.permute.xlu1 %3751 }
 0x6e2   :  { %v3754_v42 = vunpack.i.h.bf16 %v3752_v44  ;;  %v3753_v47 = vunpack.i.l.bf16 %v3752_v44  ;;  %v213_v44 = vld [vmem:[#allocation5 + $0x8] sm:$0xff] }
 0x6e3   :  { %v1380_v46 = vpack.c.bf16 %v213_v44, %v212_v43 }
 0x6e4   :  { %v1107_v63 = vsel %vm1106_vm6, %v1104_v51, %v3753_v47  ;;  %v1108_v53 = vsel %vm1106_vm6, %v1105_v50, %v3754_v42  ;;  %v3916_v42 = vld [vmem:[#allocation11 + $0x10] sm:$0xff]   ;;  %v3917_v47 = vld [vmem:[#allocation11 + $0x18] sm:$0xff]   ;;  %v3918_v51 = vld [vmem:[#allocation11 + $0x20] sm:$0xff]  }
 0x6e5   :  { %v3757_v48 = vpop.permute.xlu0 %3756  ;;  %3575 = vmatpush3.bf16.msra.mxu1 %v3916_v42  ;;  %v215_v50 = vld [vmem:[#allocation5 + $0x18] sm:$0xff] }
 0x6e6   :  { %v3759_v57 = vunpack.i.h.bf16 %v3757_v48  ;;  %v3758_v60 = vunpack.i.l.bf16 %v3757_v48  ;;  %3576 = vmatprep.subr.bf16.mxu1 %v4394_v4  ;;  %v214_v48 = vld [vmem:[#allocation5 + $0x10] sm:$0xff] }
 0x6e8   :  { %v1111_v1 = vsel %vm1109_vm7, %v1108_v53, %v3759_v57  ;;  %v1110_v2 = vsel %vm1109_vm7, %v1107_v63, %v3758_v60  ;;  %v1381_v57 = vpack.c.bf16 %v215_v50, %v214_v48  ;;  %v3919_v60 = vld [vmem:[#allocation11 + $0x28] sm:$0xff]   ;;  %v3920_v63 = vld [vmem:[#allocation11 + $0x30] sm:$0xff]   ;;  %v3921_v53 = vld [vmem:[#allocation11 + $0x38] sm:$0xff]  }
 0x6e9   :  { %v1112_v3 = vpack.c.bf16 %v1111_v1, %v1110_v2  ;;  %3577 = vmatpush3.bf16.msra.mxu1 %v3917_v47 }
 0x6ea   :  { %3578 = vmatprep.subr.bf16.mxu1 %v4394_v4 }
 0x6eb   :  { %3567 = vmatmul.mubr.bf16.vlgmr.msra.gmra.mrb[12].mxu0 %v1112_v3 }
 0x6ec   :  { %1522 = vmatprep.mubr.bf16.mxu0 %v4395_v30  ;;  %1491 = vmatpush1.bf16.msra.mxu0 %v3890_v16  ;;  %v3252_v16 = vld [vmem:[%s5252_s10] ss:$0 sm:$0xff] }
 0x6ed   :  { %1492 = vmatprep.subr.bf16.mxu0 %v3895_v19  ;;  %3579 = vmatpush3.bf16.msra.mxu1 %v3918_v51 }
 0x6ee   :  { %3580 = vmatprep.subr.bf16.mxu1 %v4394_v4 }
 0x6f0   :  { %1493 = vmatpush1.bf16.msra.mxu0 %v3893_v20 }
 0x6f1   :  { %1494 = vmatprep.subr.bf16.mxu0 %v3898_v21  ;;  %3581 = vmatpush3.bf16.msra.mxu1 %v3919_v60 }
 0x6f2   :  { %3582 = vmatprep.subr.bf16.mxu1 %v4394_v4 }
 0x6f4   :  { %1495 = vmatpush1.bf16.msra.mxu0 %v3896_v23  ;;  %v1403_v23 = vrot.slane %v1398_v22, %v4721_v55 }
 0x6f5   :  { %1496 = vmatprep.subr.bf16.mxu0 %v3901_v24  ;;  %3583 = vmatpush3.bf16.msra.mxu1 %v3920_v63  ;;  %v1407_v24 = vrot.slane %v1398_v22, %v4728_v58 }
 0x6f6   :  { %3584 = vmatprep.subr.bf16.mxu1 %v4394_v4 }
 0x6f8   :  { %1497 = vmatpush1.bf16.msra.mxu0 %v3899_v25 }
 0x6f9   :  { %1498 = vmatprep.subr.bf16.mxu0 %v3904_v26  ;;  %3585 = vmatpush3.bf16.msra.mxu1 %v3921_v53 }
 0x6fa   :  { %3590 = vmatprep.subr.bf16.mxu1 %v4394_v4 }
 0x6fc   :  { %1499 = vmatpush1.bf16.msra.mxu0 %v3902_v27 }
 0x6fd   :  { %1500 = vmatprep.subr.bf16.mxu0 %v3907_v28 }
 0x700   :  { %1501 = vmatpush1.bf16.msra.mxu0 %v3905_v29 }
 0x701   :  { %1502 = vmatprep.subr.bf16.mxu0 %v3910_v31 }
 0x704   :  { %1503 = vmatpush1.bf16.msra.mxu0 %v3908_v32 }
 0x705   :  { %1504 = vmatprep.subr.bf16.mxu0 %v3914_v33 }
 0x708   :  { %1505 = vmatpush1.bf16.msra.mxu0 %v3912_v34 }
 0x709   :  { %3606 = vmatprep.subr.bf16.mxu0 %v4394_v4 }
 0x70b   :  { %1523 = vmatmul.mubr.bf16.vlgmr.msra.gmra.mrb[16].mxu0 %v1380_v46 }
 0x70c   :  { %1532 = vmatprep.mubr.bf16.mxu0 %v4395_v30 }
 0x713   :  { %1533 = vmatmul.mubr.bf16.gmra.mrb[20].mxu0 %v1381_v57 }
 0x714   :  { %3610 = vmatprep.mubr.msk.bf16.mxu0 %vm4396_vm0, %v4394_v4 }
 0x7be   :  { %v1218_v7 = vpop.f32.mrb[12].mxu0 }
 0x7bf   :  { %v1219_v6 = vadd.f32 %v3242_v5, %v1218_v7  ;;  %v3568_v8 = vpop.f32.mrb[13].mxu0 }
 0x7c0   :  { %v1221_v9 = vpop.f32.mrb[14].mxu0 }
 0x7c1   :  { %v4843_v11 = vadd.f32 %v4118_v10, %v1219_v6  ;;  %v1222_v12 = vadd.f32 %v3242_v5, %v1221_v9  ;;  %v3569_v13 = vpop.f32.mrb[15].mxu0  ;;  %v3251_v10 = vld [vmem:[%s5251_s9] ss:$0 sm:$0xff] }
 0x7c3   :  { %v4845_v15 = vadd.f32 %v4119_v14, %v1222_v12  ;;  %1229 = vadd.xlane.f32.xlu1 %v4843_v11 }
 0x7c5   :  { %1231 = vadd.xlane.f32.xlu0 %v4845_v15 }
 0x7de   :  { %v1524_v25 = vpop.f32.mrb[16].mxu0 }
 0x7df   :  { %v1525_v26 = vadd.f32 %v1524_v25, %v1403_v23  ;;  %v1526_v27 = vpop.f32.mrb[17].mxu0 }
 0x7e0   :  { %v4876_v28 = vadd.f32 %v1526_v27, %v1407_v24  ;;  %v1528_v29 = vpop.f32.mrb[18].mxu0 }
 0x7e1   :  { %v1529_v31 = vadd.f32 %v1528_v29, %v1403_v23  ;;  %v1530_v32 = vpop.f32.mrb[19].mxu0 }
 0x7e2   :  { %v4878_v33 = vadd.f32 %v1530_v32, %v1407_v24 }
 0x7e3   :  { %v3760_v34 = vpack.i.bf16 %v1529_v31, %v1525_v26 }
 0x7e5   :  { %3761 = vrot.lane.b32.xlu1 %v3760_v34, %s4397_s7 }
 0x7e9   :  { %3771 = vrot.lane.b32.xlu1 %v3760_v34, %s5295_s26 }
 0x7ed   :  { %3776 = vrot.lane.b32.xlu1 %v3760_v34, %s4398_s29 }
 0x850   :  { %v1230_v35 = vpop.xlane.xlu1 %1229 }
 0x851   :  { %v1233_v36 = vmul.f32 0.0078125, %v1230_v35  ;;  %v1647_v35 = vpack.c.bf16 %v1529_v31, %v1525_v26 }
 0x852   :  { %v1232_v37 = vpop.xlane.xlu0 %1231 }
 0x853   :  { %v1235_v38 = vsub.f32 %v4843_v11, %v1233_v36  ;;  %v1234_v39 = vmul.f32 0.0078125, %v1232_v37  ;;  %v1659_v36 = vsel %vm618_vm1, %v1647_v35, 0  ;;  %v1534_v37 = vpop.f32.mrb[20].mxu0 }
 0x855   :  { %v1236_v40 = vsub.f32 %v4845_v15, %v1234_v39  ;;  %v1237_v18 = vmul.f32 %v1235_v38, %v1235_v38  ;;  %v1536_v39 = vpop.f32.mrb[21].mxu0 }
 0x856   :  { %v1538_v43 = vpop.f32.mrb[22].mxu0 }
 0x857   :  { %1239 = vadd.xlane.f32.xlu0 %v1237_v18  ;;  %v1238_v41 = vmul.f32 %v1236_v40, %v1236_v40  ;;  %v4888_v18 = vpack.i.bf16 %v4878_v33, %v4876_v28  ;;  %v1539_v44 = vadd.f32 %v1538_v43, %v1403_v23  ;;  %v1540_v45 = vpop.f32.mrb[23].mxu0  ;;  %v3762_v57 = vpop.permute.xlu1 %3761 }
 0x858   :  { %v4893_v46 = vadd.f32 %v1540_v45, %v1407_v24 }
 0x85b   :  { %1241 = vadd.xlane.f32.xlu0 %v1238_v41  ;;  %v4890_v41 = vadd.f32 %v1536_v39, %v1407_v24  ;;  %v3772_v60 = vpop.permute.xlu1 %3771 }
 0x85c   :  { %v3774_v63 = vunpack.i.h.bf16 %v3772_v60  ;;  %v3773_v53 = vunpack.i.l.bf16 %v3772_v60 }
 0x85d   :  { %v1948_v50 = vpack.c.bf16 %v4893_v46, %v4890_v41  ;;  %v4902_v51 = vpack.i.bf16 %v4893_v46, %v4890_v41  ;;  %v241_v41 = vmul.f32 0.0625, %v223_v52 }
 0x85f   :  { %v3777_v32 = vpop.permute.xlu1 %3776  ;;  %v242_v46 = vfloor.f32 %v241_v41 }
 0x860   :  { %v3779_v34 = vunpack.i.h.bf16 %v3777_v32  ;;  %v3778_v35 = vunpack.i.l.bf16 %v3777_v32 }
 0x861   :  { %vm243_vm8 = vcmp.eq.f32.partialorder %v226_v62, %v242_v46  ;;  %vm244_vm9 = vcmp.eq.f32.partialorder %v227_v0, %v242_v46 }
 0x8e4   :  { %v1240_v1 = vpop.xlane.xlu0 %1239 }
 0x8e5   :  { %v1243_v2 = vmul.f32 0.0078125, %v1240_v1  ;;  %v1651_v1 = vpack.c.bf16 %v3774_v63, %v3773_v53 }
 0x8e7   :  { %v1245_v3 = vadd.f32 1e-05, %v1243_v2  ;;  %v1759_v2 = vsel %vm618_vm1, %v1651_v1, 0 }
 0x8e8   :  { %v1242_v5 = vpop.xlane.xlu0 %1241  ;;  %3607 = vmatpush3.bf16.xpose.msra.mxu0 %v1759_v2 }
 0x8e9   :  { %4046 = vrsqrt.f32 %v1245_v3  ;;  %v1244_v7 = vmul.f32 0.0078125, %v1242_v5  ;;  %3608 = vmatprep.subr.bf16.mxu0 %v4394_v4 }
 0x8eb   :  { %v1246_v6 = vadd.f32 1e-05, %v1244_v7 }
 0x8ed   :  { %4048 = vrsqrt.f32 %v1246_v6 }
 0x8f3   :  { %v4047_v8 = vpop.eup %4046 }
 0x8f4   :  { %v1249_v9 = vmul.f32 %v4047_v8, %v1235_v38  ;;  %v1535_v38 = vadd.f32 %v1534_v37, %v1403_v23 }
 0x8f6   :  { %v1257_v14 = vmul.f32 %v3251_v10, %v1249_v9  ;;  %v3765_v42 = vpack.i.bf16 %v1539_v44, %v1535_v38  ;;  %v1648_v47 = vpack.c.bf16 %v1539_v44, %v1535_v38 }
 0x8f7   :  { %v4049_v12 = vpop.eup %4048 }
 0x8f8   :  { %v1250_v13 = vmul.f32 %v4049_v12, %v1236_v40  ;;  %v1265_v19 = vadd.f32 %v3252_v16, %v1257_v14  ;;  %v1947_v40 = vpack.c.bf16 %v4878_v33, %v4876_v28  ;;  %3766 = vrot.lane.b32.xlu0 %v3765_v42, %s4397_s7  ;;  %v1662_v48 = vsel %vm618_vm1, %v1648_v47, 0 }
 0x8f9   :  { %v3763_v12 = vunpack.i.l.bf16 %v3762_v57 }
 0x8fa   :  { %v1258_v17 = vmul.f32 %v3251_v10, %v1250_v13  ;;  %v3764_v10 = vunpack.i.h.bf16 %v3762_v57  ;;  %v3253_v13 = vld [vmem:[%s5254_s12] ss:$0 sm:$0xff] }
 0x8fc   :  { %v1266_v20 = vadd.f32 %v3252_v16, %v1258_v17  ;;  %3786 = vrot.lane.b32.xlu0 %v3765_v42, %s5295_s26 }
 0x8fe   :  { %v1267_v21 = vpack.c.bf16 %v1266_v20, %v1265_v19  ;;  %v1649_v19 = vpack.c.bf16 %v3764_v10, %v3763_v12 }
 0x900   :  { %3587 = vmatmul.mubr.bf16.vlgmr.msra.gmra.mrb[28].mxu1 %v1267_v21  ;;  %v1709_v27 = vsel %vm618_vm1, %v1649_v19, 0 }
 0x901   :  { %3594 = vmatprep.mubr.msk.bf16.mxu1 %vm4396_vm0, %v4394_v4  ;;  %3591 = vmatpush3.bf16.xpose.msra.mxu1 %v1659_v36  ;;  %v1653_v36 = vpack.c.bf16 %v3779_v34, %v3778_v35 }
 0x902   :  { %3592 = vmatprep.subr.bf16.mxu1 %v4394_v4 }
 0x903   :  { %v1809_v63 = vsel %vm618_vm1, %v1653_v36, 0 }
 0x909   :  { %3593 = vmatpush3.bf16.xpose.msra.mxu1 %v1662_v48 }
 0x90a   :  { %3598 = vmatprep.subr.bf16.mxu1 %v4394_v4 }
 0x96a   :  { %v3767_v3 = vpop.permute.xlu0 %3766 }
 0x96b   :  { %v3769_v25 = vunpack.i.h.bf16 %v3767_v3  ;;  %v3768_v26 = vunpack.i.l.bf16 %v3767_v3 }
 0x96d   :  { %v1650_v29 = vpack.c.bf16 %v3769_v25, %v3768_v26 }
 0x96e   :  { %v3787_v5 = vpop.permute.xlu0 %3786 }
 0x96f   :  { %v3789_v7 = vunpack.i.h.bf16 %v3787_v5  ;;  %v3788_v6 = vunpack.i.l.bf16 %v3787_v5  ;;  %v1712_v31 = vsel %vm618_vm1, %v1650_v29, 0 }
 0x971   :  { %v1652_v8 = vpack.c.bf16 %v3789_v7, %v3788_v6 }
 0x973   :  { %v1762_v9 = vsel %vm618_vm1, %v1652_v8, 0 }
 0x974   :  { %3609 = vmatpush3.bf16.xpose.msra.mxu0 %v1762_v9 }
 0x975   :  { %3622 = vmatprep.subr.bf16.mxu0 %v4394_v4 }
 0x9d3   :  { %v1373_v14 = vpop.f32.mrb[28].mxu1 }
 0x9d4   :  { %v3588_v16 = vpop.f32.mrb[29].mxu1  ;;  %v1374_v20 = vadd.f32 %v3253_v13, %v1373_v14 }
 0x9d5   :  { %v1376_v17 = vpop.f32.mrb[30].mxu1 }
 0x9d6   :  { %v1377_v21 = vadd.f32 %v3253_v13, %v1376_v17  ;;  %v3589_v22 = vpop.f32.mrb[31].mxu1 }
 0x9d8   :  { %v1643_v23 = vpack.c.bf16 %v1377_v21, %v1374_v20  ;;  %v3795_v24 = vpack.i.bf16 %v1377_v21, %v1374_v20 }
 0x9da   :  { %3796 = vrot.lane.b32.xlu0 %v3795_v24, %s5295_s26  ;;  %3781 = vrot.lane.b32.xlu1 %v3795_v24, %s4397_s7 }
 0x9db   :  { %3595 = vmatmul.mubr.msk.bf16.vlgmr.msra.gmra.mrb[32].mxu1 %vm618_vm1, %v1643_v23 }
 0x9dc   :  { %3599 = vmatpush3.bf16.xpose.msra.mxu1 %v1709_v27  ;;  %3602 = vmatprep.mubr.msk.bf16.mxu1 %vm4396_vm0, %v4394_v4 }
 0x9dd   :  { %3600 = vmatprep.subr.bf16.mxu1 %v4394_v4 }
 0x9de   :  { %3791 = vrot.lane.b32.xlu1 %v3765_v42, %s4398_s29 }
 0x9e2   :  { %3801 = vrot.lane.b32.xlu1 %v3795_v24, %s4398_s29 }
 0x9e4   :  { %3601 = vmatpush3.bf16.xpose.msra.mxu1 %v1712_v31 }
 0x9e5   :  { %3614 = vmatprep.subr.bf16.mxu1 %v4394_v4 }
 0xa4c   :  { %v3797_v37 = vpop.permute.xlu0 %3796  ;;  %v3782_v38 = vpop.permute.xlu1 %3781 }
 0xa4d   :  { %v3799_v39 = vunpack.i.h.bf16 %v3797_v37  ;;  %v3798_v43 = vunpack.i.l.bf16 %v3797_v37  ;;  %v3784_v44 = vunpack.i.h.bf16 %v3782_v38  ;;  %v3783_v45 = vunpack.i.l.bf16 %v3782_v38 }
 0xa4f   :  { %v1645_v47 = vpack.c.bf16 %v3799_v39, %v3798_v43  ;;  %v1644_v48 = vpack.c.bf16 %v3784_v44, %v3783_v45 }
 0xa50   :  { %v3792_v42 = vpop.permute.xlu1 %3791 }
 0xa51   :  { %v3794_v57 = vunpack.i.h.bf16 %v3792_v42  ;;  %v3793_v60 = vunpack.i.l.bf16 %v3792_v42  ;;  %3603 = vmatmul.mubr.msk.bf16.vlgmr.msra.gmra.mrb[36].mxu1 %vm618_vm1, %v1644_v48  ;;  %3611 = vmatmul.mubr.msk.bf16.vlgmr.msra.gmra.mrb[24].mxu0 %vm618_vm1, %v1645_v47 }
 0xa52   :  { %3615 = vmatpush3.bf16.xpose.msra.mxu1 %v1809_v63  ;;  %3623 = vmatpush3.bf16.msra.mxu0 %v1947_v40 }
 0xa53   :  { %3624 = vmatprep.subr.bf16.mxu0 %v4394_v4  ;;  %3616 = vmatprep.subr.bf16.mxu1 %v4394_v4  ;;  %v1654_v53 = vpack.c.bf16 %v3794_v57, %v3793_v60 }
 0xa54   :  { %3618 = vmatprep.mubr.msk.bf16.mxu1 %vm4396_vm0, %v4394_v4  ;;  %3626 = vmatprep.mubr.msk.bf16.mxu0 %vm4396_vm0, %v4394_v4  ;;  %v3802_v1 = vpop.permute.xlu1 %3801 }
 0xa55   :  { %v1812_v28 = vsel %vm618_vm1, %v1654_v53, 0  ;;  %v3804_v33 = vunpack.i.h.bf16 %v3802_v1  ;;  %v3803_v40 = vunpack.i.l.bf16 %v3802_v1 }
 0xa56   :  { %3625 = vmatpush3.bf16.msra.mxu0 %v1948_v50  ;;  %v4399_v50 = vmov -1e+09  }
 0xa57   :  { %3638 = vmatprep.subr.bf16.mxu0 %v4394_v4  ;;  %v1646_v2 = vpack.c.bf16 %v3804_v33, %v3803_v40  ;;  %v245_v3 = vsel %vm243_vm8, 0.0, %v4399_v50  ;;  %v246_v7 = vsel %vm244_vm9, 0.0, %v4399_v50 }
 0xa5a   :  { %3617 = vmatpush3.bf16.xpose.msra.mxu1 %v1812_v28 }
 0xa5b   :  { %3630 = vmatprep.subr.bf16.mxu1 %v4394_v4 }
 0xa61   :  { %3619 = vmatmul.mubr.msk.bf16.vlgmr.msra.gmra.mrb[40].mxu1 %vm618_vm1, %v1646_v2 }
 0xa62   :  { %3634 = vmatprep.mubr.msk.bf16.mxu1 %vm4396_vm0, %v4394_v4 }
 0xaae   :  { %v1698_v5 = vpop.f32.mrb[32].mxu1 }
 0xaaf   :  { %v1699_v6 = vadd.f32 %v1698_v5, %v245_v3  ;;  %v3596_v8 = vpop.f32.mrb[33].mxu1 }
 0xab0   :  { %v1701_v9 = vpop.f32.mrb[34].mxu1 }
 0xab1   :  { %v1702_v10 = vadd.f32 %v1701_v9, %v246_v7  ;;  %v3597_v12 = vpop.f32.mrb[35].mxu1  ;;  %v1855_v13 = vsel %vm618_vm1, %v1699_v6, -inf }
 0xab2   :  { %1856 = vmax.xlane.f32.xlu0 %v1855_v13 }
 0xab3   :  { %v1858_v49 = vsel %vm618_vm1, %v1702_v10, -inf }
 0xab4   :  { %1859 = vmax.xlane.f32.xlu1 %v1858_v49 }
 0xb24   :  { %v1748_v52 = vpop.f32.mrb[36].mxu1  ;;  %v1798_v59 = vpop.f32.mrb[24].mxu0 }
 0xb25   :  { %v1749_v62 = vadd.f32 %v1748_v52, %v245_v3  ;;  %v3604_v61 = vpop.f32.mrb[37].mxu1  ;;  %v3612_v0 = vpop.f32.mrb[25].mxu0  ;;  %v1799_v24 = vadd.f32 %v1798_v59, %v245_v3 }
 0xb26   :  { %v1751_v14 = vpop.f32.mrb[38].mxu1  ;;  %v1801_v16 = vpop.f32.mrb[26].mxu0 }
 0xb27   :  { %v1752_v17 = vadd.f32 %v1751_v14, %v246_v7  ;;  %v1802_v19 = vadd.f32 %v1801_v16, %v246_v7  ;;  %v3605_v20 = vpop.f32.mrb[39].mxu1  ;;  %v3613_v21 = vpop.f32.mrb[27].mxu0  ;;  %v1861_v22 = vsel %vm618_vm1, %v1749_v62, -inf  ;;  %v1867_v26 = vsel %vm618_vm1, %v1799_v24, -inf }
 0xb28   :  { %1862 = vmax.xlane.f32.xlu0 %v1861_v22 }
 0xb29   :  { %v1870_v23 = vsel %vm618_vm1, %v1802_v19, -inf  ;;  %v1864_v25 = vsel %vm618_vm1, %v1752_v17, -inf }
 0xb2a   :  { %1871 = vmax.xlane.f32.xlu1 %v1870_v23 }
 0xb2c   :  { %1865 = vmax.xlane.f32.xlu0 %v1864_v25 }
 0xb30   :  { %1868 = vmax.xlane.f32.xlu0 %v1867_v26 }
 0xb34   :  { %v1848_v27 = vpop.f32.mrb[40].mxu1 }
 0xb35   :  { %v1849_v29 = vadd.f32 %v1848_v27, %v245_v3  ;;  %v3620_v31 = vpop.f32.mrb[41].mxu1 }
 0xb36   :  { %v1851_v32 = vpop.f32.mrb[42].mxu1 }
 0xb37   :  { %v1852_v34 = vadd.f32 %v1851_v32, %v246_v7  ;;  %v3621_v35 = vpop.f32.mrb[43].mxu1  ;;  %v1873_v36 = vsel %vm618_vm1, %v1849_v29, -inf }
 0xb38   :  { %1874 = vmax.xlane.f32.xlu0 %v1873_v36 }
 0xb39   :  { %v1876_v37 = vsel %vm618_vm1, %v1852_v34, -inf }
 0xb3a   :  { %1877 = vmax.xlane.f32.xlu1 %v1876_v37 }
 0xb3f   :  { %v1857_v38 = vpop.xlane.xlu0 %1856 }
 0xb40   :  { %v1879_v39 = vsub.f32 %v1699_v6, %v1857_v38 }
 0xb41   :  { %v1860_v44 = vpop.xlane.xlu1 %1859 }
 0xb42   :  { %v1887_v43 = vmul.f32 1.442695, %v1879_v39  ;;  %v1880_v45 = vsub.f32 %v1702_v10, %v1860_v44 }
 0xb44   :  { %4050 = vpow2.f32 %v1887_v43  ;;  %v1889_v47 = vmul.f32 1.442695, %v1880_v45 }
 0xb46   :  { %4052 = vpow2.f32 %v1889_v47 }
 0xb4b   :  { %3811 = vrot.lane.b32.xlu1 %v4902_v51, %s4397_s7 }
 0xb4e   :  { %3806 = vrot.lane.b32.xlu0 %v4888_v18, %s4397_s7  ;;  %v4966_v48 = vpop.eup %4050 }
 0xb4f   :  { %3816 = vrot.lane.b32.xlu1 %v4888_v18, %s5295_s26  ;;  %v1903_v42 = vsel %vm618_vm1, %v4966_v48, 0.0 }
 0xb50   :  { %v4970_v57 = vpop.eup %4052 }
 0xb51   :  { %v1906_v60 = vsel %vm618_vm1, %v4970_v57, 0.0 }
 0xb53   :  { %3821 = vrot.lane.b32.xlu1 %v4888_v18, %s4398_s29 }
 0xb6d   :  { %1904 = vadd.xlane.f32.xlu0 %v1903_v42 }
 0xb77   :  { %1907 = vadd.xlane.f32.xlu1 %v1906_v60 }
 0xbb5   :  { %v1863_v18 = vpop.xlane.xlu0 %1862 }
 0xbb6   :  { %v1881_v63 = vsub.f32 %v1749_v62, %v1863_v18 }
 0xbb7   :  { %v1872_v53 = vpop.xlane.xlu1 %1871 }
 0xbb8   :  { %v1891_v1 = vmul.f32 1.442695, %v1881_v63  ;;  %v1884_v28 = vsub.f32 %v1802_v19, %v1872_v53 }
 0xbb9   :  { %v1866_v33 = vpop.xlane.xlu0 %1865 }
 0xbba   :  { %4054 = vpow2.f32 %v1891_v1  ;;  %v1882_v40 = vsub.f32 %v1752_v17, %v1866_v33  ;;  %v1897_v41 = vmul.f32 1.442695, %v1884_v28 }
 0xbbc   :  { %v1893_v2 = vmul.f32 1.442695, %v1882_v40 }
 0xbbd   :  { %v1869_v46 = vpop.xlane.xlu0 %1868 }
 0xbbe   :  { %4056 = vpow2.f32 %v1893_v2  ;;  %v1883_v50 = vsub.f32 %v1799_v24, %v1869_v46 }
 0xbbf   :  { %4058 = vpow2.f32 %v1897_v41 }
 0xbc0   :  { %v1895_v3 = vmul.f32 1.442695, %v1883_v50 }
 0xbc2   :  { %4060 = vpow2.f32 %v1895_v3 }
 0xbc4   :  { %v4974_v5 = vpop.eup %4054 }
 0xbc5   :  { %v1875_v7 = vpop.xlane.xlu0 %1874  ;;  %v1909_v6 = vsel %vm618_vm1, %v4974_v5, 0.0 }
 0xbc6   :  { %v1885_v8 = vsub.f32 %v1849_v29, %v1875_v7  ;;  %1910 = vadd.xlane.f32.xlu0 %v1909_v6 }
 0xbc7   :  { %v1878_v9 = vpop.xlane.xlu1 %1877 }
 0xbc8   :  { %v4978_v10 = vpop.eup %4056  ;;  %v1899_v12 = vmul.f32 1.442695, %v1885_v8  ;;  %v1886_v13 = vsub.f32 %v1852_v34, %v1878_v9 }
 0xbc9   :  { %v3807_v49 = vpop.permute.xlu0 %3806  ;;  %v1912_v52 = vsel %vm618_vm1, %v4978_v10, 0.0  ;;  %v4982_v0 = vpop.eup %4058 }
 0xbca   :  { %4062 = vpow2.f32 %v1899_v12  ;;  %v1901_v59 = vmul.f32 1.442695, %v1886_v13  ;;  %v3809_v62 = vunpack.i.h.bf16 %v3807_v49  ;;  %v3808_v61 = vunpack.i.l.bf16 %v3807_v49  ;;  %1913 = vadd.xlane.f32.xlu1 %v1912_v52 }
 0xbcb   :  { %v3812_v14 = vpop.permute.xlu1 %3811  ;;  %v1918_v22 = vsel %vm618_vm1, %v4982_v0, 0.0 }
 0xbcc   :  { %v4984_v16 = vpop.eup %4060  ;;  %4064 = vpow2.f32 %v1901_v59  ;;  %v1949_v17 = vpack.c.bf16 %v3809_v62, %v3808_v61  ;;  %v3814_v19 = vunpack.i.h.bf16 %v3812_v14  ;;  %v3813_v20 = vunpack.i.l.bf16 %v3812_v14  ;;  %v3922_v14 = vld [vmem:[#allocation14] sm:$0xff]  }
 0xbcd   :  { %v1915_v21 = vsel %vm618_vm1, %v4984_v16, 0.0 }
 0xbce   :  { %3631 = vmatpush3.bf16.msra.mxu1 %v1949_v17  ;;  %1916 = vadd.xlane.f32.xlu0 %v1915_v21  ;;  %v1950_v23 = vpack.c.bf16 %v3814_v19, %v3813_v20  ;;  %v3924_v17 = vld [vmem:[#allocation14 + $0x10] sm:$0xff]   ;;  %v3925_v19 = vld [vmem:[#allocation14 + $0x18] sm:$0xff]  }
 0xbcf   :  { %1919 = vadd.xlane.f32.xlu1 %v1918_v22  ;;  %3632 = vmatprep.subr.bf16.mxu1 %v4394_v4  ;;  %v3817_v29 = vpop.permute.xlu1 %3816 }
 0xbd0   :  { %v3819_v37 = vunpack.i.h.bf16 %v3817_v29  ;;  %v3818_v38 = vunpack.i.l.bf16 %v3817_v29 }
 0xbd2   :  { %3633 = vmatpush3.bf16.msra.mxu1 %v1950_v23  ;;  %v1951_v45 = vpack.c.bf16 %v3819_v37, %v3818_v38 }
 0xbd3   :  { %3646 = vmatprep.subr.bf16.mxu1 %v4394_v4  ;;  %v3822_v31 = vpop.permute.xlu1 %3821 }
 0xbd4   :  { %v4992_v24 = vpop.eup %4062  ;;  %v3824_v18 = vunpack.i.h.bf16 %v3822_v31  ;;  %v3823_v63 = vunpack.i.l.bf16 %v3822_v31  ;;  %v3928_v31 = vld [vmem:[#allocation14 + $0x30] sm:$0xff]  }
 0xbd5   :  { %v1921_v25 = vsel %vm618_vm1, %v4992_v24, 0.0 }
 0xbd6   :  { %v4996_v26 = vpop.eup %4064  ;;  %1922 = vadd.xlane.f32.xlu0 %v1921_v25  ;;  %v1953_v41 = vpack.c.bf16 %v3824_v18, %v3823_v63 }
 0xbd7   :  { %v1924_v27 = vsel %vm618_vm1, %v4996_v26, 0.0 }
 0xbd8   :  { %1925 = vadd.xlane.f32.xlu1 %v1924_v27 }
 0xbe9   :  { %3831 = vrot.lane.b32.xlu1 %v4902_v51, %s4398_s29 }
 0xbec   :  { %3826 = vrot.lane.b32.xlu0 %v4902_v51, %s5295_s26 }
 0xbfa   :  { %v1905_v32 = vpop.xlane.xlu0 %1904 }
 0xbfb   :  { %4066 = vrcp.f32 %v1905_v32 }
 0xc04   :  { %v1908_v34 = vpop.xlane.xlu1 %1907 }
 0xc05   :  { %4068 = vrcp.f32 %v1908_v34  ;;  %v4067_v35 = vpop.eup %4066 }
 0xc06   :  { %v1928_v39 = vmul.f32 %v4067_v35, %v4966_v48 }
 0xc0f   :  { %v4069_v36 = vpop.eup %4068 }
 0xc10   :  { %v1930_v43 = vmul.f32 %v4069_v36, %v4970_v57  ;;  %v3929_v36 = vld [vmem:[#allocation14 + $0x38] sm:$0xff]  }
 0xc12   :  { %v1943_v44 = vpack.c.bf16 %v1930_v43, %v1928_v39 }
 0xc14   :  { %3627 = vmatmul.mubr.msk.bf16.vlgmr.msra.gmra.mrb[28].mxu0 %vm618_vm1, %v1943_v44 }
 0xc15   :  { %3639 = vmatpush3.bf16.msra.mxu0 %v1951_v45  ;;  %3642 = vmatprep.mubr.msk.bf16.mxu0 %vm4396_vm0, %v4394_v4 }
 0xc16   :  { %3640 = vmatprep.subr.bf16.mxu0 %v4394_v4 }
 0xc53   :  { %v1911_v51 = vpop.xlane.xlu0 %1910 }
 0xc54   :  { %4070 = vrcp.f32 %v1911_v51 }
 0xc57   :  { %v1914_v47 = vpop.xlane.xlu1 %1913 }
 0xc58   :  { %4072 = vrcp.f32 %v1914_v47 }
 0xc5b   :  { %v1917_v42 = vpop.xlane.xlu0 %1916 }
 0xc5c   :  { %4074 = vrcp.f32 %v1917_v42  ;;  %v1920_v60 = vpop.xlane.xlu1 %1919 }
 0xc5d   :  { %4076 = vrcp.f32 %v1920_v60 }
 0xc5e   :  { %v4071_v48 = vpop.eup %4070 }
 0xc5f   :  { %v1932_v53 = vmul.f32 %v4071_v48, %v4974_v5 }
 0xc62   :  { %v4073_v57 = vpop.eup %4072 }
 0xc63   :  { %v1934_v1 = vmul.f32 %v4073_v57, %v4978_v10  ;;  %v1923_v28 = vpop.xlane.xlu0 %1922 }
 0xc64   :  { %4078 = vrcp.f32 %v1923_v28 }
 0xc65   :  { %v1926_v33 = vpop.xlane.xlu1 %1925  ;;  %v1944_v40 = vpack.c.bf16 %v1934_v1, %v1932_v53 }
 0xc66   :  { %v4075_v2 = vpop.eup %4074  ;;  %4080 = vrcp.f32 %v1926_v33 }
 0xc67   :  { %v4077_v46 = vpop.eup %4076  ;;  %v3827_v50 = vpop.permute.xlu0 %3826  ;;  %3635 = vmatmul.mubr.msk.bf16.vlgmr.msra.gmra.mrb[44].mxu1 %vm618_vm1, %v1944_v40  ;;  %v1936_v5 = vmul.f32 %v4075_v2, %v4984_v16  ;;  %v3923_v16 = vld [vmem:[#allocation14 + $0x8] sm:$0xff]  }
 0xc68   :  { %v3829_v3 = vunpack.i.h.bf16 %v3827_v50  ;;  %v3828_v7 = vunpack.i.l.bf16 %v3827_v50  ;;  %3647 = vmatpush3.bf16.msra.mxu1 %v1953_v41  ;;  %3650 = vmatprep.mubr.msk.bf16.mxu1 %vm4396_vm0, %v4394_v4  ;;  %v1938_v6 = vmul.f32 %v4077_v46, %v4982_v0 }
 0xc69   :  { %v3832_v8 = vpop.permute.xlu1 %3831  ;;  %3648 = vmatprep.subr.bf16.mxu1 %v4394_v4 }
 0xc6a   :  { %v1952_v9 = vpack.c.bf16 %v3829_v3, %v3828_v7  ;;  %v3834_v10 = vunpack.i.h.bf16 %v3832_v8  ;;  %v3833_v12 = vunpack.i.l.bf16 %v3832_v8  ;;  %v1945_v49 = vpack.c.bf16 %v1938_v6, %v1936_v5  ;;  %v3286_v7 = vld [vmem:[%s5258_s16] ss:$0 sm:$0xff] }
 0xc6c   :  { %v1954_v13 = vpack.c.bf16 %v3834_v10, %v3833_v12  ;;  %3641 = vmatpush3.bf16.msra.mxu0 %v1952_v9 }
 0xc6d   :  { %3654 = vmatprep.subr.bf16.mxu0 %v4394_v4 }
 0xc6e   :  { %v4079_v52 = vpop.eup %4078  ;;  %3649 = vmatpush3.bf16.msra.mxu1 %v1954_v13 }
 0xc6f   :  { %3643 = vmatmul.mubr.msk.bf16.vlgmr.msra.gmra.mrb[32].mxu0 %vm618_vm1, %v1945_v49  ;;  %v1940_v62 = vmul.f32 %v4079_v52, %v4992_v24  ;;  %v3926_v24 = vld [vmem:[#allocation14 + $0x20] sm:$0xff]  }
 0xc70   :  { %v4081_v59 = vpop.eup %4080  ;;  %3670 = vmatprep.mubr.msk.bf16.mxu0 %vm4396_vm0, %v4394_v4  ;;  %3655 = vmatpush3.bf16.msra.mxu0 %v3922_v14  ;;  %v3932_v52 = vld [vmem:[#allocation16 + $0x4] ss:$16 sps:$4 sm:$0xff]   ;;  %v3939_v14 = vld [vmem:[#allocation16 + $0x28] ss:$16 sps:$4 sm:$0xff]  }
 0xc71   :  { %v1942_v61 = vmul.f32 %v4081_v59, %v4996_v26  ;;  %3656 = vmatprep.subr.bf16.mxu0 %v4394_v4  ;;  %v3927_v26 = vld [vmem:[#allocation14 + $0x28] sm:$0xff]   ;;  %2531 = vmatprep.subr.bf16.mxu1 %v3932_v52  ;;  %v3980_v52 = vld [vmem:[#allocation17] sm:$0xff]  }
 0xc72   :  { %v3933_v59 = vld [vmem:[#allocation16 + $0x8] ss:$16 sps:$4 sm:$0xff]  }
 0xc73   :  { %v1946_v0 = vpack.c.bf16 %v1942_v61, %v1940_v62  ;;  %v3935_v62 = vld [vmem:[#allocation16 + $0xc] ss:$16 sps:$4 sm:$0xff]   ;;  %v3938_v61 = vld [vmem:[#allocation16 + $0x24] ss:$16 sps:$4 sm:$0xff]  }
 0xc74   :  { %3657 = vmatpush3.bf16.msra.mxu0 %v3923_v16 }
 0xc75   :  { %3651 = vmatmul.mubr.msk.bf16.vlgmr.msra.gmra.mrb[48].mxu1 %vm618_vm1, %v1946_v0  ;;  %3658 = vmatprep.subr.bf16.mxu0 %v4394_v4  ;;  %v3941_v0 = vld [vmem:[#allocation16 + $0x2c] ss:$16 sps:$4 sm:$0xff]  }
 0xc76   :  { %2563 = vmatprep.mubr.bf16.mxu1 %v4395_v30 }
 0xc78   :  { %3659 = vmatpush3.bf16.msra.mxu0 %v3924_v17 }
 0xc79   :  { %3660 = vmatprep.subr.bf16.mxu0 %v4394_v4 }
 0xc7c   :  { %3661 = vmatpush3.bf16.msra.mxu0 %v3925_v19 }
 0xc7d   :  { %3662 = vmatprep.subr.bf16.mxu0 %v4394_v4 }
 0xc80   :  { %3663 = vmatpush3.bf16.msra.mxu0 %v3926_v24  ;;  %v3944_v24 = vld [vmem:[#allocation16 + $0x44] ss:$16 sps:$4 sm:$0xff]  }
 0xc81   :  { %3664 = vmatprep.subr.bf16.mxu0 %v4394_v4 }
 0xc84   :  { %3665 = vmatpush3.bf16.msra.mxu0 %v3927_v26  ;;  %v3942_v26 = vld [vmem:[#allocation16 + $0x40] ss:$16 sps:$4 sm:$0xff]  }
 0xc85   :  { %3666 = vmatprep.subr.bf16.mxu0 %v4394_v4 }
 0xc88   :  { %3667 = vmatpush3.bf16.msra.mxu0 %v3928_v31  ;;  %v3953_v31 = vld [vmem:[#allocation16 + $0x6c] ss:$16 sps:$4 sm:$0xff]  }
 0xc89   :  { %3668 = vmatprep.subr.bf16.mxu0 %v4394_v4 }
 0xc8c   :  { %3669 = vmatpush3.bf16.msra.mxu0 %v3929_v36  ;;  %v3959_v36 = vld [vmem:[#allocation16 + $0x8c] ss:$16 sps:$4 sm:$0xff]  }
 0xc8d   :  { %2574 = vmatprep.subr.bf16.mxu0 %v3935_v62  ;;  %v3982_v62 = vld [vmem:[#allocation17 + $0x48] sm:$0xff]  }
 0xce7   :  { %v1992_v20 = vpop.f32.mrb[28].mxu0 }
 0xce8   :  { %v3628_v21 = vpop.f32.mrb[29].mxu0 }
 0xce9   :  { %v1995_v22 = vpop.f32.mrb[30].mxu0 }
 0xcea   :  { %v3629_v23 = vpop.f32.mrb[31].mxu0 }
 0xd3a   :  { %v2036_v25 = vpop.f32.mrb[44].mxu1 }
 0xd3b   :  { %v3636_v27 = vpop.f32.mrb[45].mxu1 }
 0xd3c   :  { %v2039_v29 = vpop.f32.mrb[46].mxu1  ;;  %v3945_v27 = vld [vmem:[#allocation16 + $0x48] ss:$16 sps:$4 sm:$0xff]  }
 0xd3d   :  { %v3835_v32 = vpack.i.bf16 %v2039_v29, %v2036_v25  ;;  %v3637_v34 = vpop.f32.mrb[47].mxu1  ;;  %v3947_v25 = vld [vmem:[#allocation16 + $0x4c] ss:$16 sps:$4 sm:$0xff]   ;;  %v3950_v29 = vld [vmem:[#allocation16 + $0x64] ss:$16 sps:$4 sm:$0xff]  }
 0xd3e   :  { %v3951_v34 = vld [vmem:[#allocation16 + $0x68] ss:$16 sps:$4 sm:$0xff]  }
 0xd3f   :  { %3836 = vrot.lane.b32.xlu0 %v3835_v32, %s4398_s29  ;;  %v3948_v32 = vld [vmem:[#allocation16 + $0x60] ss:$16 sps:$4 sm:$0xff]  }
 0xd42   :  { %v2080_v35 = vpop.f32.mrb[32].mxu0 }
 0xd43   :  { %v3644_v37 = vpop.f32.mrb[33].mxu0 }
 0xd44   :  { %v2083_v38 = vpop.f32.mrb[34].mxu0  ;;  %v3954_v37 = vld [vmem:[#allocation16 + $0x80] ss:$16 sps:$4 sm:$0xff]  }
 0xd45   :  { %v3840_v39 = vpack.i.bf16 %v2083_v38, %v2080_v35  ;;  %v3645_v43 = vpop.f32.mrb[35].mxu0  ;;  %v3956_v35 = vld [vmem:[#allocation16 + $0x84] ss:$16 sps:$4 sm:$0xff]   ;;  %v3957_v38 = vld [vmem:[#allocation16 + $0x88] ss:$16 sps:$4 sm:$0xff]  }
 0xd46   :  { %v3965_v43 = vld [vmem:[#allocation16 + $0xac] ss:$16 sps:$4 sm:$0xff]  }
 0xd47   :  { %3841 = vrot.lane.b32.xlu1 %v3840_v39, %s5295_s26  ;;  %v3962_v39 = vld [vmem:[#allocation16 + $0xa4] ss:$16 sps:$4 sm:$0xff]  }
 0xd48   :  { %v2124_v44 = vpop.f32.mrb[48].mxu1 }
 0xd49   :  { %v3652_v45 = vpop.f32.mrb[49].mxu1 }
 0xd4a   :  { %v2127_v51 = vpop.f32.mrb[50].mxu1  ;;  %v3963_v45 = vld [vmem:[#allocation16 + $0xa8] ss:$16 sps:$4 sm:$0xff]  }
 0xd4b   :  { %v3845_v47 = vpack.i.bf16 %v2127_v51, %v2124_v44  ;;  %v3653_v42 = vpop.f32.mrb[51].mxu1  ;;  %v3960_v44 = vld [vmem:[#allocation16 + $0xa0] ss:$16 sps:$4 sm:$0xff]  }
 0xd4c   :  { %v3966_v51 = vld [vmem:[#allocation16 + $0xc0] ss:$16 sps:$4 sm:$0xff]   ;;  %v3969_v42 = vld [vmem:[#allocation16 + $0xc8] ss:$16 sps:$4 sm:$0xff]  }
 0xd4d   :  { %3846 = vrot.lane.b32.xlu0 %v3845_v47, %s4397_s7  ;;  %v3968_v47 = vld [vmem:[#allocation16 + $0xc4] ss:$16 sps:$4 sm:$0xff]  }
 0xdb1   :  { %v3837_v60 = vpop.permute.xlu0 %3836 }
 0xdb2   :  { %v3839_v57 = vunpack.i.h.bf16 %v3837_v60  ;;  %v3838_v4 = vunpack.i.l.bf16 %v3837_v60  ;;  %v3971_v60 = vld [vmem:[#allocation16 + $0xcc] ss:$16 sps:$4 sm:$0xff]  }
 0xdb4   :  { %v2156_v1 = vsel %vm618_vm1, %v1995_v22, %v3839_v57  ;;  %v2155_v28 = vsel %vm618_vm1, %v1992_v20, %v3838_v4  ;;  %v3977_v57 = vld [vmem:[#allocation16 + $0xec] ss:$16 sps:$4 sm:$0xff]   ;;  %v3972_v4 = vld [vmem:[#allocation16 + $0xe0] ss:$16 sps:$4 sm:$0xff]  }
 0xdb9   :  { %v3842_v48 = vpop.permute.xlu1 %3841 }
 0xdba   :  { %v3844_v18 = vunpack.i.h.bf16 %v3842_v48  ;;  %v3843_v63 = vunpack.i.l.bf16 %v3842_v48  ;;  %v3974_v48 = vld [vmem:[#allocation16 + $0xe4] ss:$16 sps:$4 sm:$0xff]  }
 0xdbc   :  { %v2157_v2 = vsel %vm1106_vm6, %v2155_v28, %v3843_v63  ;;  %v2158_v41 = vsel %vm1106_vm6, %v2156_v1, %v3844_v18  ;;  %v3975_v18 = vld [vmem:[#allocation16 + $0xe8] ss:$16 sps:$4 sm:$0xff]  }
 0xdbf   :  { %v3847_v53 = vpop.permute.xlu0 %3846 }
 0xdc0   :  { %v3849_v33 = vunpack.i.h.bf16 %v3847_v53  ;;  %v3848_v40 = vunpack.i.l.bf16 %v3847_v53 }
 0xdc2   :  { %v2160_v46 = vsel %vm1109_vm7, %v2158_v41, %v3849_v33  ;;  %v2159_v50 = vsel %vm1109_vm7, %v2157_v2, %v3848_v40 }
 0xdc3   :  { %v2161_v3 = vpack.c.bf16 %v2160_v46, %v2159_v50  ;;  %v3295_v46 = vld [vmem:[%s5259_s17] ss:$0 sm:$0xff] }
 0xdc5   :  { %3671 = vmatmul.mubr.bf16.vlgmr.msra.gmra.mrb[36].mxu0 %v2161_v3 }
 0xdc6   :  { %2606 = vmatprep.mubr.bf16.mxu0 %v4395_v30  ;;  %v3930_v30 = vld [vmem:[#allocation16] ss:$16 sps:$4 sm:$0xff]   ;;  %2575 = vmatpush1.bf16.msra.mxu0 %v3933_v59 }
 0xdc7   :  { %2532 = vmatpush1.bf16.msra.mxu1 %v3930_v30  ;;  %2576 = vmatprep.subr.bf16.mxu0 %v3941_v0  ;;  %v3979_v30 = vld [vmem:[#allocation17 + $0xc0] sm:$0xff]   ;;  %v3984_v0 = vld [vmem:[#allocation17 + $0x8] sm:$0xff]  }
 0xdc8   :  { %2533 = vmatprep.subr.bf16.mxu1 %v3938_v61  ;;  %v3981_v59 = vld [vmem:[#allocation17 + $0x80] sm:$0xff]   ;;  %v3983_v61 = vld [vmem:[#allocation17 + $0xc8] sm:$0xff]  }
 0xdca   :  { %2577 = vmatpush1.bf16.msra.mxu0 %v3939_v14  ;;  %v3986_v14 = vld [vmem:[#allocation17 + $0x50] sm:$0xff]  }
 0xdcb   :  { %2578 = vmatprep.subr.bf16.mxu0 %v3947_v25  ;;  %v3996_v25 = vld [vmem:[#allocation17 + $0x20] sm:$0xff]  }
 0xdce   :  { %2579 = vmatpush1.bf16.msra.mxu0 %v3945_v27  ;;  %v3998_v27 = vld [vmem:[#allocation17 + $0x68] sm:$0xff]  }
 0xdcf   :  { %2580 = vmatprep.subr.bf16.mxu0 %v3953_v31  ;;  %v4000_v31 = vld [vmem:[#allocation17 + $0x28] sm:$0xff]  }
 0xdd2   :  { %2581 = vmatpush1.bf16.msra.mxu0 %v3951_v34  ;;  %v4002_v34 = vld [vmem:[#allocation17 + $0x70] sm:$0xff]  }
 0xdd3   :  { %2582 = vmatprep.subr.bf16.mxu0 %v3959_v36  ;;  %v4004_v36 = vld [vmem:[#allocation17 + $0x30] sm:$0xff]  }
 0xdd6   :  { %2583 = vmatpush1.bf16.msra.mxu0 %v3957_v38  ;;  %v4006_v38 = vld [vmem:[#allocation17 + $0x78] sm:$0xff]  }
 0xdd7   :  { %2584 = vmatprep.subr.bf16.mxu0 %v3965_v43  ;;  %v4008_v43 = vld [vmem:[#allocation17 + $0x38] sm:$0xff]  }
 0xdda   :  { %2585 = vmatpush1.bf16.msra.mxu0 %v3963_v45  ;;  %v2349_v45 = vld [vmem:[%s5262_s20] sm:$0xf] }
 0xddb   :  { %2586 = vmatprep.subr.bf16.mxu0 %v3971_v60  ;;  %v2358_v60 = vrot.slane %v2349_v45, %v4728_v58 }
 0xdde   :  { %2587 = vmatpush1.bf16.msra.mxu0 %v3969_v42  ;;  %v2362_v42 = vrot.slane %v2349_v45, %v333_v56 }
 0xddf   :  { %2588 = vmatprep.subr.bf16.mxu0 %v3977_v57 }
 0xde2   :  { %2589 = vmatpush1.bf16.msra.mxu0 %v3975_v18 }
 0xde3   :  { %3460 = vmatprep.subr.bf16.mxu0 %v3979_v30 }
 0xe98   :  { %v2267_v5 = vpop.f32.mrb[36].mxu0 }
 0xe99   :  { %v2268_v6 = vadd.f32 %v3286_v7, %v2267_v5  ;;  %v3672_v8 = vpop.f32.mrb[37].mxu0  ;;  %v3296_v5 = vld [vmem:[%s5260_s18] ss:$0 sm:$0xff] }
 0xe9a   :  { %v2270_v9 = vpop.f32.mrb[38].mxu0 }
 0xe9b   :  { %v5047_v10 = vadd.f32 %v2268_v6, %v4843_v11  ;;  %v2271_v12 = vadd.f32 %v3286_v7, %v2270_v9  ;;  %v3673_v13 = vpop.f32.mrb[39].mxu0  ;;  %v3936_v11 = vld [vmem:[#allocation16 + $0x20] ss:$16 sps:$4 sm:$0xff]  }
 0xe9c   :  { %2534 = vmatpush1.bf16.msra.mxu1 %v3936_v11  ;;  %v3978_v13 = vld [vmem:[#allocation17 + $0x40] sm:$0xff]   ;;  %v3985_v11 = vld [vmem:[#allocation17 + $0x88] sm:$0xff]  }
 0xe9d   :  { %v5050_v49 = vadd.f32 %v2271_v12, %v4845_v15  ;;  %2278 = vadd.xlane.f32.xlu1 %v5047_v10  ;;  %2535 = vmatprep.subr.bf16.mxu1 %v3944_v24  ;;  %v3995_v24 = vld [vmem:[#allocation17 + $0xe0] sm:$0xff]  }
 0xe9f   :  { %2280 = vadd.xlane.f32.xlu0 %v5050_v49 }
 0xea0   :  { %2536 = vmatpush1.bf16.msra.mxu1 %v3942_v26  ;;  %v3997_v26 = vld [vmem:[#allocation17 + $0xa0] sm:$0xff]  }
 0xea1   :  { %2537 = vmatprep.subr.bf16.mxu1 %v3950_v29  ;;  %v3999_v29 = vld [vmem:[#allocation17 + $0xe8] sm:$0xff]  }
 0xea4   :  { %2538 = vmatpush1.bf16.msra.mxu1 %v3948_v32  ;;  %v4001_v32 = vld [vmem:[#allocation17 + $0xa8] sm:$0xff]  }
 0xea5   :  { %2539 = vmatprep.subr.bf16.mxu1 %v3956_v35  ;;  %v4003_v35 = vld [vmem:[#allocation17 + $0xf0] sm:$0xff]  }
 0xea8   :  { %2540 = vmatpush1.bf16.msra.mxu1 %v3954_v37  ;;  %v4005_v37 = vld [vmem:[#allocation17 + $0xb0] sm:$0xff]  }
 0xea9   :  { %2541 = vmatprep.subr.bf16.mxu1 %v3962_v39  ;;  %v4007_v39 = vld [vmem:[#allocation17 + $0xf8] sm:$0xff]  }
 0xeac   :  { %2542 = vmatpush1.bf16.msra.mxu1 %v3960_v44  ;;  %v4009_v44 = vld [vmem:[#allocation17 + $0xb8] sm:$0xff]  }
 0xead   :  { %2543 = vmatprep.subr.bf16.mxu1 %v3968_v47  ;;  %v2354_v47 = vrot.slane %v2349_v45, %v4721_v55 }
 0xeb0   :  { %2544 = vmatpush1.bf16.msra.mxu1 %v3966_v51  ;;  %v2365_v51 = vsub.s32 3, %v4718_v54 }
 0xeb1   :  { %2545 = vmatprep.subr.bf16.mxu1 %v3974_v48 }
 0xeb2   :  { %v2366_v48 = vrot.slane %v2349_v45, %v2365_v51 }
 0xeb4   :  { %2546 = vmatpush1.bf16.msra.mxu1 %v3972_v4 }
 0xeb5   :  { %3438 = vmatprep.subr.bf16.mxu1 %v3978_v13 }
 0xf2a   :  { %v2279_v15 = vpop.xlane.xlu1 %2278 }
 0xf2b   :  { %v2282_v16 = vmul.f32 0.0078125, %v2279_v15  ;;  %v3987_v15 = vld [vmem:[#allocation17 + $0xd0] sm:$0xff]  }
 0xf2c   :  { %v2281_v17 = vpop.xlane.xlu0 %2280 }
 0xf2d   :  { %v5055_v19 = vsub.f32 %v5047_v10, %v2282_v16  ;;  %v2283_v20 = vmul.f32 0.0078125, %v2281_v17  ;;  %v3988_v16 = vld [vmem:[#allocation17 + $0x10] sm:$0xff]  }
 0xf2e   :  { %v3989_v17 = vld [vmem:[#allocation17 + $0x90] sm:$0xff]  }
 0xf2f   :  { %v5058_v21 = vsub.f32 %v5050_v49, %v2283_v20  ;;  %v2286_v22 = vmul.f32 %v5055_v19, %v5055_v19  ;;  %v3991_v20 = vld [vmem:[#allocation17 + $0xd8] sm:$0xff]  }
 0xf31   :  { %2288 = vadd.xlane.f32.xlu0 %v2286_v22  ;;  %v2287_v23 = vmul.f32 %v5058_v21, %v5058_v21  ;;  %v3993_v22 = vld [vmem:[#allocation17 + $0x98] sm:$0xff]  }
 0xf35   :  { %2290 = vadd.xlane.f32.xlu0 %v2287_v23  ;;  %v3994_v23 = vld [vmem:[#allocation17 + $0x60] sm:$0xff]  }
 0xfbe   :  { %v2289_v63 = vpop.xlane.xlu0 %2288 }
 0xfbf   :  { %v2292_v53 = vmul.f32 0.0078125, %v2289_v63 }
 0xfc1   :  { %v2294_v1 = vadd.f32 1e-05, %v2292_v53 }
 0xfc2   :  { %v2291_v28 = vpop.xlane.xlu0 %2290 }
 0xfc3   :  { %4082 = vrsqrt.f32 %v2294_v1  ;;  %v2293_v33 = vmul.f32 0.0078125, %v2291_v28 }
 0xfc5   :  { %v2295_v40 = vadd.f32 1e-05, %v2293_v33 }
 0xfc7   :  { %4084 = vrsqrt.f32 %v2295_v40 }
 0xfcd   :  { %v4083_v2 = vpop.eup %4082 }
 0xfce   :  { %v2298_v41 = vmul.f32 %v4083_v2, %v5055_v19  ;;  %v3990_v19 = vld [vmem:[#allocation17 + $0x58] sm:$0xff]  }
 0xfd0   :  { %v2306_v7 = vmul.f32 %v3295_v46, %v2298_v41 }
 0xfd1   :  { %v4085_v50 = vpop.eup %4084 }
 0xfd2   :  { %v2299_v3 = vmul.f32 %v4085_v50, %v5058_v21  ;;  %v2314_v8 = vadd.f32 %v3296_v5, %v2306_v7  ;;  %v3992_v21 = vld [vmem:[#allocation17 + $0x18] sm:$0xff]  }
 0xfd4   :  { %v2307_v6 = vmul.f32 %v3295_v46, %v2299_v3 }
 0xfd6   :  { %v2315_v9 = vadd.f32 %v3296_v5, %v2307_v6 }
 0xfd8   :  { %v2316_v12 = vpack.c.bf16 %v2315_v9, %v2314_v8 }
 0xfda   :  { %2564 = vmatmul.mubr.bf16.vlgmr.msra.gmra.mrb[52].mxu1 %v2316_v12  ;;  %2607 = vmatmul.mubr.bf16.vlgmr.msra.gmra.mrb[40].mxu0 %v2316_v12 }
 0xfdb   :  { %3439 = vmatpush3.bf16.msra.mxu1 %v3980_v52  ;;  %3461 = vmatpush3.bf16.msra.mxu0 %v3981_v59 }
 0xfdc   :  { %3440 = vmatprep.subr.bf16.mxu1 %v3982_v62  ;;  %3462 = vmatprep.subr.bf16.mxu0 %v3983_v61 }
 0xfdf   :  { %3441 = vmatpush3.bf16.msra.mxu1 %v3984_v0  ;;  %3463 = vmatpush3.bf16.msra.mxu0 %v3985_v11 }
 0xfe0   :  { %3442 = vmatprep.subr.bf16.mxu1 %v3986_v14  ;;  %3464 = vmatprep.subr.bf16.mxu0 %v3987_v15 }
 0xfe3   :  { %3443 = vmatpush3.bf16.msra.mxu1 %v3988_v16  ;;  %3465 = vmatpush3.bf16.msra.mxu0 %v3989_v17 }
 0xfe4   :  { %3444 = vmatprep.subr.bf16.mxu1 %v3990_v19  ;;  %3466 = vmatprep.subr.bf16.mxu0 %v3991_v20 }
 0xfe7   :  { %3445 = vmatpush3.bf16.msra.mxu1 %v3992_v21  ;;  %3467 = vmatpush3.bf16.msra.mxu0 %v3993_v22 }
 0xfe8   :  { %3446 = vmatprep.subr.bf16.mxu1 %v3994_v23  ;;  %3468 = vmatprep.subr.bf16.mxu0 %v3995_v24 }
 0xfeb   :  { %3447 = vmatpush3.bf16.msra.mxu1 %v3996_v25  ;;  %3469 = vmatpush3.bf16.msra.mxu0 %v3997_v26 }
 0xfec   :  { %3448 = vmatprep.subr.bf16.mxu1 %v3998_v27  ;;  %3470 = vmatprep.subr.bf16.mxu0 %v3999_v29 }
 0xfef   :  { %3449 = vmatpush3.bf16.msra.mxu1 %v4000_v31  ;;  %3471 = vmatpush3.bf16.msra.mxu0 %v4001_v32 }
 0xff0   :  { %3450 = vmatprep.subr.bf16.mxu1 %v4002_v34  ;;  %3472 = vmatprep.subr.bf16.mxu0 %v4003_v35 }
 0xff3   :  { %3451 = vmatpush3.bf16.msra.mxu1 %v4004_v36  ;;  %3473 = vmatpush3.bf16.msra.mxu0 %v4005_v37 }
 0xff4   :  { %3452 = vmatprep.subr.bf16.mxu1 %v4006_v38  ;;  %3474 = vmatprep.subr.bf16.mxu0 %v4007_v39 }
 0xff7   :  { %3453 = vmatpush3.bf16.msra.mxu1 %v4008_v43  ;;  %3475 = vmatpush3.bf16.msra.mxu0 %v4009_v44 }
0x10ad   :  { %v2565_v57 = vpop.f32.mrb[52].mxu1  ;;  %v2608_v4 = vpop.f32.mrb[40].mxu0 }
0x10ae   :  { %v2566_v18 = vadd.f32 %v2565_v57, %v2354_v47  ;;  %v2609_v63 = vadd.f32 %v2608_v4, %v2362_v42  ;;  %v2567_v53 = vpop.f32.mrb[53].mxu1  ;;  %v2610_v1 = vpop.f32.mrb[41].mxu0 }
0x10af   :  { %v5080_v28 = vadd.f32 %v2567_v53, %v2358_v60  ;;  %v5082_v33 = vadd.f32 %v2610_v1, %v2366_v48  ;;  %v2569_v40 = vpop.f32.mrb[54].mxu1  ;;  %v2612_v2 = vpop.f32.mrb[42].mxu0 }
0x10b0   :  { %v5084_v41 = vmul.f32 0.70710677, %v2566_v18  ;;  %v5086_v55 = vmul.f32 0.70710677, %v2609_v63  ;;  %v2571_v3 = vpop.f32.mrb[55].mxu1  ;;  %v2614_v8 = vpop.f32.mrb[43].mxu0  ;;  %v5098_v52 = vadd.f32 %v2569_v40, %v2354_v47  ;;  %v5103_v61 = vadd.f32 %v2612_v2, %v2362_v42 }
0x10b1   :  { %v5089_v54 = vmul.f32 0.70710677, %v5080_v28  ;;  %v5095_v50 = vmul.f32 0.70710677, %v5082_v33  ;;  %v5105_v11 = vadd.f32 %v2571_v3, %v2358_v60  ;;  %v5115_v24 = vadd.f32 %v2614_v8, %v2366_v48 }
0x10b2   :  { %v2649_v56 = vand.u32 2147483647, %v5084_v41  ;;  %v2651_v58 = vand.u32 2147483647, %v5086_v55  ;;  %v5101_v62 = vmul.f32 0.70710677, %v5098_v52 }
0x10b3   :  { %v2650_v46 = vand.u32 2147483647, %v5089_v54  ;;  %v2652_v13 = vand.u32 2147483647, %v5095_v50  ;;  %v5109_v16 = vmul.f32 0.70710677, %v5103_v61 }
0x10b4   :  { %v2657_v7 = vmul.f32 0.3275911, %v2649_v56  ;;  %v2659_v5 = vmul.f32 0.3275911, %v2651_v58  ;;  %v2653_v14 = vand.u32 2147483647, %v5101_v62 }
0x10b5   :  { %v2658_v6 = vmul.f32 0.3275911, %v2650_v46  ;;  %v2660_v59 = vmul.f32 0.3275911, %v2652_v13  ;;  %v2761_v15 = vsub.f32 0.0, %v2649_v56  ;;  %v2763_v17 = vsub.f32 0.0, %v2651_v58 }
0x10b6   :  { %v2665_v9 = vadd.f32 1.0, %v2657_v7  ;;  %v2667_v12 = vadd.f32 1.0, %v2659_v5  ;;  %v2661_v19 = vmul.f32 0.3275911, %v2653_v14  ;;  %v2762_v20 = vsub.f32 0.0, %v2650_v46 }
0x10b7   :  { %v2666_v30 = vadd.f32 1.0, %v2658_v6  ;;  %v2668_v0 = vadd.f32 1.0, %v2660_v59  ;;  %v2655_v21 = vand.u32 2147483647, %v5109_v16  ;;  %v5113_v22 = vmul.f32 0.70710677, %v5105_v11 }
0x10b8   :  { %4086 = vrcp.f32 %v2665_v9  ;;  %v2669_v23 = vadd.f32 1.0, %v2661_v19  ;;  %v2769_v25 = vmul.f32 %v2761_v15, %v2649_v56  ;;  %v2771_v31 = vmul.f32 %v2763_v17, %v2651_v58 }
0x10b9   :  { %4088 = vrcp.f32 %v2667_v12  ;;  %v2663_v26 = vmul.f32 0.3275911, %v2655_v21  ;;  %v5118_v27 = vand.u32 2147483647, %v5113_v22  ;;  %v2764_v32 = vsub.f32 0.0, %v2652_v13 }
0x10ba   :  { %4090 = vrcp.f32 %v2666_v30  ;;  %v2770_v36 = vmul.f32 %v2762_v20, %v2650_v46  ;;  %v5126_v39 = vmul.f32 0.5, %v2566_v18  ;;  %v5128_v43 = vmul.f32 0.5, %v2609_v63 }
0x10bb   :  { %4092 = vrcp.f32 %v2668_v0  ;;  %v2671_v37 = vadd.f32 1.0, %v2663_v26  ;;  %v2662_v38 = vmul.f32 0.3275911, %v5118_v27  ;;  %v5132_v45 = vmul.f32 0.70710677, %v5115_v24 }
0x10bc   :  { %4094 = vrcp.f32 %v2669_v23  ;;  %v2777_v47 = vmul.f32 1.442695, %v2769_v25  ;;  %v2781_v57 = vmul.f32 1.442695, %v2771_v31  ;;  %v2772_v4 = vmul.f32 %v2764_v32, %v2652_v13 }
0x10bd   :  { %4096 = vrcp.f32 %v2671_v37  ;;  %v2670_v42 = vadd.f32 1.0, %v2662_v38  ;;  %v5137_v53 = vand.u32 2147483647, %v5132_v45  ;;  %v2779_v1 = vmul.f32 1.442695, %v2770_v36 }
0x10be   :  { %v2765_v40 = vsub.f32 0.0, %v2653_v14  ;;  %v2767_v58 = vsub.f32 0.0, %v2655_v21  ;;  %v2783_v8 = vmul.f32 1.442695, %v2772_v4  ;;  %vm2633_vm10 = vcmp.ge.f32.partialorder %v5084_v41, 0.0 }
0x10bf   :  { %4098 = vrcp.f32 %v2670_v42  ;;  %v2664_v46 = vmul.f32 0.3275911, %v5137_v53  ;;  %v2766_v31 = vsub.f32 0.0, %v5118_v27  ;;  %vm2635_vm11 = vcmp.ge.f32.partialorder %v5086_v55, 0.0 }
0x10c0   :  { %4100 = vpow2.f32 %v2777_v47  ;;  %v2773_v15 = vmul.f32 %v2765_v40, %v2653_v14  ;;  %v2775_v17 = vmul.f32 %v2767_v58, %v2655_v21  ;;  %v2768_v40 = vsub.f32 0.0, %v5137_v53 }
0x10c1   :  { %4102 = vpow2.f32 %v2781_v57  ;;  %v2672_v9 = vadd.f32 1.0, %v2664_v46  ;;  %vm2634_vm12 = vcmp.ge.f32.partialorder %v5089_v54, 0.0  ;;  %vm2637_vm13 = vcmp.ge.f32.partialorder %v5101_v62, 0.0 }
0x10c2   :  { %v5120_v29 = vpop.eup %4086  ;;  %4104 = vpow2.f32 %v2779_v1  ;;  %v2785_v38 = vmul.f32 1.442695, %v2773_v15  ;;  %v2774_v1 = vmul.f32 %v2766_v31, %v5118_v27  ;;  %vm2639_vm14 = vcmp.ge.f32.partialorder %v5109_v16, 0.0 }
0x10c3   :  { %v5122_v34 = vpop.eup %4088  ;;  %v2689_v35 = vmul.f32 1.0614054, %v5120_v29  ;;  %4106 = vrcp.f32 %v2672_v9  ;;  %vm2636_vm15 = vcmp.ge.f32.partialorder %v5095_v50, 0.0  ;;  %vm2638_vm0 = vcmp.ge.f32.partialorder %v5113_v22, 0.0 }
0x10c4   :  { %v2691_v44 = vmul.f32 1.0614054, %v5122_v34  ;;  %v5134_v60 = vpop.eup %4090  ;;  %4108 = vpow2.f32 %v2783_v8  ;;  %vm2640_vm1 = vcmp.ge.f32.partialorder %v5132_v45, 0.0  ;;  %v2624_v45 = vmul.f32 0.5, %v5115_v24 }
0x10c5   :  { %v2697_v51 = vadd.f32 -1.4531521, %v2689_v35  ;;  %v2690_v63 = vmul.f32 1.0614054, %v5134_v60  ;;  %v5141_v2 = vpop.eup %4092  ;;  %4110 = vpow2.f32 %v2785_v38 }
0x10c6   :  { %v2699_v48 = vadd.f32 -1.4531521, %v2691_v44  ;;  %v2692_v5 = vmul.f32 1.0614054, %v5141_v2  ;;  %v5148_v59 = vpop.eup %4094 }
0x10c7   :  { %v2705_v18 = vmul.f32 %v5120_v29, %v2697_v51  ;;  %v2698_v7 = vadd.f32 -1.4531521, %v2690_v63  ;;  %v2693_v25 = vmul.f32 1.0614054, %v5148_v59  ;;  %v5155_v32 = vpop.eup %4096  ;;  %v2789_v51 = vmul.f32 1.442695, %v2775_v17 }
0x10c8   :  { %v2707_v56 = vmul.f32 %v5122_v34, %v2699_v48  ;;  %v2700_v30 = vadd.f32 -1.4531521, %v2692_v5  ;;  %v2695_v44 = vmul.f32 1.0614054, %v5155_v32 }
0x10c9   :  { %v2713_v3 = vadd.f32 1.4214138, %v2705_v18  ;;  %v2706_v13 = vmul.f32 %v5134_v60, %v2698_v7  ;;  %v2701_v36 = vadd.f32 -1.4531521, %v2693_v25  ;;  %v5163_v4 = vpop.eup %4098  ;;  %4112 = vpow2.f32 %v2789_v51 }
0x10ca   :  { %v2715_v6 = vadd.f32 1.4214138, %v2707_v56  ;;  %v2708_v23 = vmul.f32 %v5141_v2, %v2700_v30  ;;  %v2703_v63 = vadd.f32 -1.4531521, %v2695_v44  ;;  %v4101_v56 = vpop.eup %4100  ;;  %v2694_v8 = vmul.f32 1.0614054, %v5163_v4 }
0x10cb   :  { %v2721_v12 = vmul.f32 %v5120_v29, %v2713_v3  ;;  %v2714_v20 = vadd.f32 1.4214138, %v2706_v13  ;;  %v2709_v57 = vmul.f32 %v5148_v59, %v2701_v36  ;;  %v4103_v5 = vpop.eup %4102  ;;  %v2787_v25 = vmul.f32 1.442695, %v2774_v1 }
0x10cc   :  { %v2723_v0 = vmul.f32 %v5122_v34, %v2715_v6  ;;  %v2716_v21 = vadd.f32 1.4214138, %v2708_v23  ;;  %v2711_v6 = vmul.f32 %v5155_v32, %v2703_v63  ;;  %v4105_v9 = vpop.eup %4104 }
0x10cd   :  { %v2729_v19 = vadd.f32 -0.28449672, %v2721_v12  ;;  %v2722_v14 = vmul.f32 %v5134_v60, %v2714_v20  ;;  %v2717_v7 = vadd.f32 1.4214138, %v2709_v57  ;;  %v5175_v30 = vpop.eup %4106  ;;  %4114 = vpow2.f32 %v2787_v25 }
0x10ce   :  { %v2731_v26 = vadd.f32 -0.28449672, %v2723_v0  ;;  %v2724_v48 = vmul.f32 %v5141_v2, %v2716_v21  ;;  %v4400_v0 = vmov -1.0   ;;  %v2719_v17 = vadd.f32 1.4214138, %v2711_v6 }
0x10cf   :  { %v2737_v35 = vmul.f32 %v5120_v29, %v2729_v19  ;;  %v2730_v42 = vadd.f32 -0.28449672, %v2722_v14  ;;  %v2641_v15 = vsel %vm2633_vm10, 1.0, %v4400_v0  ;;  %v2702_v19 = vadd.f32 -1.4531521, %v2694_v8 }
0x10d0   :  { %v2739_v37 = vmul.f32 %v5122_v34, %v2731_v26  ;;  %v2732_v3 = vadd.f32 -0.28449672, %v2724_v48  ;;  %v4109_v26 = vpop.eup %4108  ;;  %v2643_v31 = vsel %vm2635_vm11, 1.0, %v4400_v0  ;;  %v2696_v41 = vmul.f32 1.0614054, %v5175_v30 }
0x10d1   :  { %v2745_v47 = vadd.f32 0.2548296, %v2737_v35  ;;  %v2738_v46 = vmul.f32 %v5134_v60, %v2730_v42  ;;  %v2727_v35 = vmul.f32 %v5155_v32, %v2719_v17  ;;  %v2710_v14 = vmul.f32 %v5163_v4, %v2702_v19 }
0x10d2   :  { %v2747_v18 = vadd.f32 0.2548296, %v2739_v37  ;;  %v2740_v13 = vmul.f32 %v5141_v2, %v2732_v3  ;;  %v2642_v54 = vsel %vm2634_vm12, 1.0, %v4400_v0  ;;  %v2645_v8 = vsel %vm2637_vm13, 1.0, %v4400_v0 }
0x10d3   :  { %v2753_v58 = vmul.f32 %v5120_v29, %v2745_v47  ;;  %v2746_v12 = vadd.f32 0.2548296, %v2738_v46  ;;  %v2725_v29 = vmul.f32 %v5148_v59, %v2717_v7  ;;  %v2735_v44 = vadd.f32 -0.28449672, %v2727_v35 }
0x10d4   :  { %v2755_v27 = vmul.f32 %v5122_v34, %v2747_v18  ;;  %v2776_v34 = vmul.f32 %v2768_v40, %v5137_v53  ;;  %v2748_v37 = vadd.f32 0.2548296, %v2740_v13  ;;  %v2718_v51 = vadd.f32 1.4214138, %v2710_v14  ;;  %v4111_v40 = vpop.eup %4110 }
0x10d5   :  { %v2793_v20 = vmul.f32 %v4101_v56, %v2753_v58  ;;  %v2733_v23 = vadd.f32 -0.28449672, %v2725_v29  ;;  %v2754_v36 = vmul.f32 %v5134_v60, %v2746_v12  ;;  %v2704_v53 = vadd.f32 -1.4531521, %v2696_v41  ;;  %v4113_v6 = vpop.eup %4112 }
0x10d6   :  { %v2795_v21 = vmul.f32 %v4103_v5, %v2755_v27  ;;  %v2791_v55 = vmul.f32 1.442695, %v2776_v34  ;;  %v2743_v48 = vmul.f32 %v5155_v32, %v2735_v44  ;;  %v2726_v57 = vmul.f32 %v5163_v4, %v2718_v51 }
0x10d7   :  { %v2741_v38 = vmul.f32 %v5148_v59, %v2733_v23  ;;  %v2801_v47 = vsub.f32 1.0, %v2793_v20  ;;  %v2712_v18 = vmul.f32 %v5175_v30, %v2704_v53  ;;  %v2794_v60 = vmul.f32 %v4105_v9, %v2754_v36  ;;  %v4115_v35 = vpop.eup %4114 }
0x10d8   :  { %v2803_v63 = vsub.f32 1.0, %v2795_v21  ;;  %v2756_v56 = vmul.f32 %v5141_v2, %v2748_v37  ;;  %v2751_v58 = vadd.f32 0.2548296, %v2743_v48  ;;  %v2734_v46 = vadd.f32 -0.28449672, %v2726_v57 }
0x10d9   :  { %v2749_v42 = vadd.f32 0.2548296, %v2741_v38  ;;  %v2720_v3 = vadd.f32 1.4214138, %v2712_v18  ;;  %v2809_v7 = vmul.f32 %v2801_v47, %v2641_v15  ;;  %4116 = vpow2.f32 %v2791_v55 }
0x10da   :  { %v2759_v9 = vmul.f32 %v5155_v32, %v2751_v58  ;;  %v2742_v62 = vmul.f32 %v5163_v4, %v2734_v46  ;;  %v2811_v27 = vmul.f32 %v2803_v63, %v2643_v31  ;;  %v2802_v12 = vsub.f32 1.0, %v2794_v60 }
0x10db   :  { %v2757_v1 = vmul.f32 %v5148_v59, %v2749_v42  ;;  %v2728_v59 = vmul.f32 %v5175_v30, %v2720_v3  ;;  %v2796_v13 = vmul.f32 %v4109_v26, %v2756_v56  ;;  %v2817_v19 = vadd.f32 1.0, %v2809_v7 }
0x10dc   :  { %v2799_v29 = vmul.f32 %v4113_v6, %v2759_v9  ;;  %v2750_v15 = vadd.f32 0.2548296, %v2742_v62  ;;  %v2621_v20 = vmul.f32 0.5, %v5098_v52  ;;  %v2647_v32 = vsel %vm2639_vm14, 1.0, %v4400_v0 }
0x10dd   :  { %v2797_v5 = vmul.f32 %v4111_v40, %v2757_v1  ;;  %v2736_v17 = vadd.f32 -0.28449672, %v2728_v59  ;;  %v2819_v14 = vadd.f32 1.0, %v2811_v27  ;;  %v2810_v16 = vmul.f32 %v2802_v12, %v2642_v54 }
0x10de   :  { %v2807_v25 = vsub.f32 1.0, %v2799_v29  ;;  %v2758_v34 = vmul.f32 %v5163_v4, %v2750_v15  ;;  %v2804_v41 = vsub.f32 1.0, %v2796_v13  ;;  %v2825_v52 = vmul.f32 %v2817_v19, %v5126_v39 }
0x10df   :  { %v2805_v2 = vsub.f32 1.0, %v2797_v5  ;;  %v2744_v31 = vmul.f32 %v5175_v30, %v2736_v17  ;;  %v2644_v38 = vsel %vm2636_vm15, 1.0, %v4400_v0  ;;  %v2623_v4 = vmul.f32 0.5, %v5103_v61 }
0x10e0   :  { %v2815_v21 = vmul.f32 %v2807_v25, %v2647_v32  ;;  %v2798_v36 = vmul.f32 %v4115_v35, %v2758_v34  ;;  %v2646_v53 = vsel %vm2638_vm0, 1.0, %v4400_v0  ;;  %v2827_v55 = vmul.f32 %v2819_v14, %v5128_v43 }
0x10e1   :  { %v2813_v23 = vmul.f32 %v2805_v2, %v2645_v8  ;;  %v2752_v37 = vadd.f32 0.2548296, %v2744_v31  ;;  %v2818_v48 = vadd.f32 1.0, %v2810_v16  ;;  %v2812_v39 = vmul.f32 %v2804_v41, %v2644_v38 }
0x10e2   :  { %v2823_v51 = vadd.f32 1.0, %v2815_v21  ;;  %v2806_v47 = vsub.f32 1.0, %v2798_v36  ;;  %v2618_v60 = vmul.f32 0.5, %v5080_v28  ;;  %v2622_v1 = vmul.f32 0.5, %v5105_v11 }
0x10e3   :  { %v2821_v26 = vadd.f32 1.0, %v2813_v23  ;;  %v2760_v42 = vmul.f32 %v5175_v30, %v2752_v37  ;;  %v4117_v22 = vpop.eup %4116  ;;  %v2648_v30 = vsel %vm2640_vm1, 1.0, %v4400_v0  ;;  %v2820_v46 = vadd.f32 1.0, %v2812_v39  ;;  %v3329_v0 = vld [vmem:[%s5299_s24] ss:$0 sm:$0xff] }
0x10e4   :  { %v2831_v18 = vmul.f32 %v2823_v51, %v2623_v4  ;;  %v2814_v50 = vmul.f32 %v2806_v47, %v2646_v53  ;;  %v2826_v58 = vmul.f32 %v2818_v48, %v2618_v60  ;;  %v2620_v7 = vmul.f32 0.5, %v5082_v33 }
0x10e5   :  { %v2829_v44 = vmul.f32 %v2821_v26, %v2621_v20  ;;  %v2800_v63 = vmul.f32 %v4117_v22, %v2760_v42 }
0x10e6   :  { %v2835_v61 = vpack.c.bf16 %v2831_v18, %v2827_v55  ;;  %v2822_v40 = vadd.f32 1.0, %v2814_v50  ;;  %v2828_v6 = vmul.f32 %v2820_v46, %v2620_v7 }
0x10e7   :  { %v2833_v57 = vpack.c.bf16 %v2829_v44, %v2825_v52  ;;  %v2808_v56 = vsub.f32 1.0, %v2800_v63 }
0x10e8   :  { %v2830_v43 = vmul.f32 %v2822_v40, %v2622_v1 }
0x10e9   :  { %v2816_v3 = vmul.f32 %v2808_v56, %v2648_v30 }
0x10ea   :  { %v2834_v5 = vpack.c.bf16 %v2830_v43, %v2826_v58 }
0x10eb   :  { %v2824_v54 = vadd.f32 1.0, %v2816_v3 }
0x10ec   :  { %3132 = vmatprep.mubr.bf16.mxu1 %v2834_v5 }
0x10ed   :  { %v2832_v8 = vmul.f32 %v2824_v54, %v2624_v45  ;;  %3133 = vmatmul.mubr.bf16.vlgmr.msra.gmra.mrb[56].mxu1 %v2833_v57 }
0x10ef   :  { %v2836_v28 = vpack.c.bf16 %v2832_v8, %v2828_v6 }
0x10f1   :  { %3173 = vmatprep.mubr.bf16.mxu0 %v2836_v28 }
0x10f2   :  { %3174 = vmatmul.mubr.bf16.vlgmr.msra.gmra.mrb[44].mxu0 %v2835_v61 }
0x11c0   :  { %v3454_v11 = vpop.f32.mrb[56].mxu1 }
0x11c1   :  { %v3455_v9 = vpop.f32.mrb[57].mxu1 }
0x11c2   :  { %v3456_v62 = vadd.f32 %v3455_v9, %v3454_v11  ;;  %v3457_v59 = vpop.f32.mrb[58].mxu1 }
0x11c3   :  { %v3458_v33 = vpop.f32.mrb[59].mxu1 }
0x11c4   :  { %v3135_v24 = vadd.f32 %v3456_v62, %v3329_v0  ;;  %v3459_v12 = vadd.f32 %v3458_v33, %v3457_v59 }
0x11c5   :  { %v3476_v27 = vpop.f32.mrb[44].mxu0 }
0x11c6   :  { %v3477_v2 = vpop.f32.mrb[45].mxu0  ;;  %v3138_v15 = vadd.f32 %v3459_v12, %v3329_v0 }
0x11c7   :  { %v3478_v13 = vadd.f32 %v3477_v2, %v3476_v27  ;;  %v3479_v29 = vpop.f32.mrb[46].mxu0 }
0x11c8   :  { %v3480_v17 = vpop.f32.mrb[47].mxu0 }
0x11c9   :  { %v3176_v19 = vadd.f32 %v3478_v13, %v3135_v24  ;;  %v3481_v20 = vadd.f32 %v3480_v17, %v3479_v29 }
0x11cb   :  { %v3182_v23 = vadd.f32 %v3176_v19, %v5047_v10  ;;  %v3179_v32 = vadd.f32 %v3481_v20, %v3138_v15 }
0x11cd   :  { %3184 = vst [vmem:[#allocation19] sm:$0xff] %v3182_v23  ;;  %v3183_v25 = vadd.f32 %v3179_v32, %v5050_v49 }
0x11cf   :  { %3185 = vst [vmem:[#allocation19 + $0x8] sm:$0xff] %v3183_v25 }
0x11d0   :  { %4351 = shalt.err (!%p4348_p0)
}
0x11d1   :  { %s5300_s4 = sld [smem:[#allocation36_spill]] }
0x11d7   :  { %s4352_s7 = scalar_lea.hbm %s5300_s4, 256 }
0x11d8   :  { %p4353_p1 = scmp.ne.s32.totalorder %s5300_s4, %s4352_s7  ;;  %p4356_p2 = scmp.lt.u32.totalorder %s4352_s7, %s5300_s4 }
0x11da   :  { %p4358_p3 = pnand %p4356_p2, %p4353_p1 }
0x11dc   :  { %4361 = shalt.err (!%p4358_p3)
}
0x11dd   :  { %3197 = dma.vmem_to_hbm [thread:$0]  %s3192_s23, 256, %s5300_s4, [#allocation4], %s5292_s28, %s5292_s28, %s5291_s27  }
0x11de   :  { %4374 = dma.done.wait [#allocation4], 256  }
0x11df   :  { %4375 = vsyncadd [#allocation4], 4294967040 }
0x11e0   :  { %3201 = vsyncpa [#allocation3], 1 }
0x11e1   :  { %3202 = vsyncpa [#allocation6], 1 }
0x11e2   :  { %3203 = vsyncpa [#allocation9], 1 }
0x11e3   :  { %3204 = vsyncpa [#allocation12], 1 }
0x11e4   :  { %3205 = vsyncpa [#allocation15], 1 }
0x11e5   :  { %3206 = vsyncpa [#allocation18], 1 }
0x11e6   :  { %3207 = vsyncpa [#allocation4], 1 }

</bundles_post_ra>
